<compile_context>
chip_gen: v6e
topology: v6e:2x2x1
jax: 0.10.0
libtpu: 0.0.40
codegen_flags: <defaults>
</compile_context>

<pallas_src>
import functools

import jax
import jax.numpy as jnp
from jax import lax
from jax.experimental import pallas as pl
from jax.experimental.pallas import tpu as pltpu

LEAKY_SLOPE = 0.01
BN_EPS = 1e-5
LANE = 128
SUBLANE = 8


def _round_up(x, m):
    return (x + m - 1) // m * m


def _arm_kernel(x_ref, w_ref, bn1_b_ref, watt_ref, bn2_b_ref, out_ref, *, width):
    """One batch element.

    x_ref:    (1, Hp, Wal, Cin_p)   zero-padded NHWC input (pad=1 left/top, aligned right)
    w_ref:    (Cin_p, 9*Cout_p)     3x3 weights, BN1 scale folded, cols = (dh*3+dw)*Cp + co
    bn1_b_ref:(1, Cout_p)           BN1 folded bias
    watt_ref: (Cout_p, Cout_p)      1x1 attention conv, BN2 scale folded
    bn2_b_ref:(1, Cout_p)           BN2 folded bias
    out_ref:  (1, H, Wal, Cout_p)   valid outputs parked at columns [2, 2+width)
    """
    Hp, Wal, Cin = x_ref.shape[1], x_ref.shape[2], x_ref.shape[3]
    H = out_ref.shape[1]
    Cp = out_ref.shape[3]
    n = H * Wal
    inv_hw = 1.0 / (H * width)

    x = x_ref[0]                                               # (Hp, Wal, Cin)

    # --- input channel attention: sigmoid(mean over the real HxW window) ---
    # Zero padding (spatial, alignment and channel) does not change the sum.
    se_row = jax.nn.sigmoid(
        jnp.sum(x, axis=(0, 1), keepdims=True).reshape(1, Cin) * inv_hw)      # (1, Cin)

    # Move the per-Cin scale to sublane orientation (Cin, 1) via mask + lane-reduce,
    # then fold it into the conv weights (conv is linear in x) so we never build x*se.
    ii = lax.broadcasted_iota(jnp.int32, (Cin, Cin), 0)
    jj = lax.broadcasted_iota(jnp.int32, (Cin, Cin), 1)
    se_col = jnp.sum(jnp.where(ii == jj, se_row, 0.0), axis=1, keepdims=True)  # (Cin, 1)
    w_se = w_ref[...] * se_col                                 # (Cin, 9*Cp)

    # --- 3x3 conv as 3 row-tap matmuls: (H*Wal, Cin) @ (Cin, 3*Cout) per dh ---
    # x[dh:dh+H] is a major-axis slice and Wal % 8 == 0, so the reshape is free.
    acc = jnp.zeros((n, 3 * Cp), jnp.float32)
    for dh in range(3):
        rows = x[dh:dh + H].reshape(n, Cin)
        acc = acc + jnp.dot(rows, w_se[:, dh * 3 * Cp:(dh + 1) * 3 * Cp],
                            preferred_element_type=jnp.float32)

    # --- combine the three dw taps with sublane rolls (XLU) on the matmul result ---
    # Valid conv outputs end up parked at padded columns j in [2, 2+width):
    #   stored[h, j] = acc_dw2[h, j] + acc_dw1[h, j-1] + acc_dw0[h, j-2] = out[h, j-2]
    y = acc[:, 2 * Cp:3 * Cp]
    y = y + pltpu.roll(acc[:, Cp:2 * Cp], 1, 0)                # shift +1 along rows (np.roll semantics)
    y = y + pltpu.roll(acc[:, 0:Cp], 2, 0)                     # shift +2 along rows

    # --- BN bias (scale already folded into weights) + leaky_relu, mask pad columns ---
    y = (y + bn1_b_ref[...]).reshape(H, Wal, Cp)
    feat = jnp.where(y > 0, y, LEAKY_SLOPE * y)
    col = lax.broadcasted_iota(jnp.int32, (H, Wal, Cp), 1)
    feat = jnp.where((col >= 2) & (col < 2 + width), feat, 0.0)

    # --- attention branch: global avg pool -> 1x1 conv (BN2 scale folded) -> bias -> sigmoid ---
    pooled = (jnp.sum(feat, axis=(0, 1), keepdims=True) * inv_hw).reshape(1, Cp)
    att = jnp.dot(pooled, watt_ref[...], preferred_element_type=jnp.float32)
    att = jax.nn.sigmoid(att + bn2_b_ref[...])                 # (1, Cp)
    # Padded Cout channels: feat==0 there, so att=sigmoid(0)=0.5 is harmless; sliced off in wrapper.

    out_ref[0] = (feat * att.reshape(1, 1, Cp)).astype(out_ref.dtype)


@functools.partial(jax.jit, static_argnames=("out_chan",))
def attention_refinement_module(x_nchw, w_cat, bn1_b, watt, bn2_b, *, out_chan):
    """x_nchw: (N, Cin, H, W). Packed params from pack_params(). Returns (N, out_chan, H, W)."""
    N, Cin, H, W = x_nchw.shape
    Cin_p = w_cat.shape[0]
    Cout_p = w_cat.shape[1] // 9
    Hp = H + 2
    Wal = _round_up(W + 2, SUBLANE)

    # Single fused layout pass on the input: NCHW->NHWC transpose + spatial zero pad
    # (pad=1 top/left, alignment pad on the right) + channel pad to lane-dense Cin.
    x_nhwc = jnp.transpose(x_nchw, (0, 2, 3, 1))
    x_pad = jnp.pad(x_nhwc, ((0, 0), (1, 1), (1, Wal - W - 1), (0, Cin_p - Cin)))

    kernel = functools.partial(_arm_kernel, width=W)
    out_full = pl.pallas_call(
        kernel,
        out_shape=jax.ShapeDtypeStruct((N, H, Wal, Cout_p), x_nchw.dtype),
        grid_spec=pltpu.PrefetchScalarGridSpec(
            num_scalar_prefetch=0,
            grid=(N,),
            in_specs=[
                pl.BlockSpec((1, Hp, Wal, Cin_p), lambda b: (b, 0, 0, 0)),   # padded input image
                pl.BlockSpec((Cin_p, 9 * Cout_p), lambda b: (0, 0)),         # folded 3x3 weights
                pl.BlockSpec((1, Cout_p), lambda b: (0, 0)),                 # bn1 folded bias
                pl.BlockSpec((Cout_p, Cout_p), lambda b: (0, 0)),            # folded 1x1 atten conv
                pl.BlockSpec((1, Cout_p), lambda b: (0, 0)),                 # bn_atten folded bias
            ],
            out_specs=pl.BlockSpec((1, H, Wal, Cout_p), lambda b: (b, 0, 0, 0)),
        ),
        compiler_params=pltpu.CompilerParams(dimension_semantics=("parallel",)),
    )(x_pad, w_cat, bn1_b, watt, bn2_b)

    # Valid conv outputs live at padded columns [2, 2+W); the slice + channel slice fuse
    # with the required NHWC->NCHW transpose back.
    out = out_full[:, :, 2:2 + W, :out_chan]
    return jnp.transpose(out, (0, 3, 1, 2))


def _fold_bn(gamma, beta, mean, var):
    scale = gamma / jnp.sqrt(var + BN_EPS)
    bias = beta - mean * scale
    return scale, bias


def pack_params(w1_oihw, bn1_s, bn1_b, watt_oihw, bn2_s, bn2_b):
    """Fold BN scales into the conv weights and pad channels to lane-dense (128) sizes."""
    Cout, Cin = w1_oihw.shape[0], w1_oihw.shape[1]
    Cin_p, Cout_p = _round_up(Cin, LANE), _round_up(Cout, LANE)

    # (kh, kw, Cin, Cout) with BN1 scale folded into the Cout columns.
    w_hwio = jnp.transpose(w1_oihw, (2, 3, 1, 0)) * bn1_s
    w_hwio = jnp.pad(w_hwio, ((0, 0), (0, 0), (0, Cin_p - Cin), (0, Cout_p - Cout)))
    # -> (Cin_p, 9*Cout_p) with column index (dh*3 + dw)*Cout_p + co.
    w_cat = jnp.transpose(w_hwio, (2, 0, 1, 3)).reshape(Cin_p, 9 * Cout_p)

    bn1_b_p = jnp.pad(bn1_b, (0, Cout_p - Cout)).reshape(1, Cout_p)

    # 1x1 attention conv as (ci, co) with BN2 scale folded; zero-pad both dims so padded
    # channels cannot leak into the attention.
    watt = jnp.transpose(watt_oihw[:, :, 0, 0], (1, 0)) * bn2_s
    watt_p = jnp.pad(watt, ((0, Cout_p - Cout), (0, Cout_p - Cout)))
    bn2_b_p = jnp.pad(bn2_b, (0, Cout_p - Cout)).reshape(1, Cout_p)

    return w_cat, bn1_b_p, watt_p, bn2_b_p


def _reference(x, w1_oihw, bn1_s, bn1_b, watt_oihw, bn2_s, bn2_b):
    """Plain-JAX reference in NCHW, mirroring the PyTorch forward."""
    se = jax.nn.sigmoid(jnp.mean(x, axis=(2, 3), keepdims=True))
    xs = x * se
    y = lax.conv_general_dilated(xs, w1_oihw, (1, 1), ((1, 1), (1, 1)),
                                 dimension_numbers=("NCHW", "OIHW", "NCHW"))
    y = y * bn1_s.reshape(1, -1, 1, 1) + bn1_b.reshape(1, -1, 1, 1)
    y = jnp.where(y > 0, y, LEAKY_SLOPE * y)
    att = jnp.mean(y, axis=(2, 3), keepdims=True)
    att = lax.conv_general_dilated(att, watt_oihw, (1, 1), "VALID",
                                   dimension_numbers=("NCHW", "OIHW", "NCHW"))
    att = att * bn2_s.reshape(1, -1, 1, 1) + bn2_b.reshape(1, -1, 1, 1)
    att = jax.nn.sigmoid(att)
    return y * att


if __name__ == "__main__":
    N, Cin, Cout, H, W = 2, 4, 8, 16, 16

    key = jax.random.PRNGKey(0)
    ks = jax.random.split(key, 10)

    # Deterministic synthetic parameters (kaiming_normal_ with a=1 => std = 1/sqrt(fan_in)).
    w1_oihw = jax.random.normal(ks[0], (Cout, Cin, 3, 3), jnp.float32) * (1.0 / (Cin * 9)) ** 0.5
    watt_oihw = jax.random.normal(ks[1], (Cout, Cout, 1, 1), jnp.float32) * (1.0 / Cout) ** 0.5

    gamma1 = 1.0 + 0.1 * jax.random.normal(ks[2], (Cout,), jnp.float32)
    beta1 = 0.1 * jax.random.normal(ks[3], (Cout,), jnp.float32)
    mean1 = 0.1 * jax.random.normal(ks[4], (Cout,), jnp.float32)
    var1 = jax.random.uniform(ks[5], (Cout,), jnp.float32, 0.5, 1.5)

    gamma2 = 1.0 + 0.1 * jax.random.normal(ks[6], (Cout,), jnp.float32)
    beta2 = 0.1 * jax.random.normal(ks[7], (Cout,), jnp.float32)
    mean2 = 0.1 * jax.random.normal(ks[8], (Cout,), jnp.float32)
    var2 = jax.random.uniform(ks[9], (Cout,), jnp.float32, 0.5, 1.5)

    bn1_s, bn1_b = _fold_bn(gamma1, beta1, mean1, var1)
    bn2_s, bn2_b = _fold_bn(gamma2, beta2, mean2, var2)

    w_cat, bn1_b_p, watt_p, bn2_b_p = pack_params(w1_oihw, bn1_s, bn1_b,
                                                  watt_oihw, bn2_s, bn2_b)

    x = jax.random.normal(jax.random.PRNGKey(42), (N, Cin, H, W), jnp.float32)

    out = attention_refinement_module(x, w_cat, bn1_b_p, watt_p, bn2_b_p, out_chan=Cout)
    out = jax.block_until_ready(out)

    ref = _reference(x, w1_oihw, bn1_s, bn1_b, watt_oihw, bn2_s, bn2_b)
    ref = jax.block_until_ready(ref)

    assert out.shape == (N, Cout, H, W), out.shape
    max_err = float(jnp.max(jnp.abs(out - ref)))
    assert jnp.allclose(out, ref, rtol=1e-4, atol=3e-5), max_err

    print("KERNEL_OK")
</pallas_src>

<mosaic_0001>
module attributes {stable_mosaic.version = 11 : i64} {
  func.func @_arm_kernel(%arg0: i32, %arg1: memref<1x18x24x128xf32, #tpu.memory_space<vmem>>, %arg2: memref<128x1152xf32, #tpu.memory_space<vmem>>, %arg3: memref<1x128xf32, #tpu.memory_space<vmem>>, %arg4: memref<128x128xf32, #tpu.memory_space<vmem>>, %arg5: memref<1x128xf32, #tpu.memory_space<vmem>>, %arg6: memref<1x16x24x128xf32, #tpu.memory_space<vmem>>) attributes {dimension_semantics = [#tpu.dimension_semantics<parallel>], iteration_bounds = array<i64: 2>, scalar_prefetch = 0 : i64, scratch_operands = 0 : i64, tpu.core_type = #tpu.core_type<tc>, window_params = [{transform_indices = @transform_0, window_bounds = array<i64: 1, 18, 24, 128>}, {pipeline_mode = #tpu.pipeline_mode<synchronous>, transform_indices = @transform_1, window_bounds = array<i64: 128, 1152>}, {pipeline_mode = #tpu.pipeline_mode<synchronous>, transform_indices = @transform_2, window_bounds = array<i64: 1, 128>}, {pipeline_mode = #tpu.pipeline_mode<synchronous>, transform_indices = @transform_3, window_bounds = array<i64: 128, 128>}, {pipeline_mode = #tpu.pipeline_mode<synchronous>, transform_indices = @transform_4, window_bounds = array<i64: 1, 128>}, {transform_indices = @transform_5, window_bounds = array<i64: 1, 16, 24, 128>}]} {
    %c0 = arith.constant 0 : index
    %c0_0 = arith.constant 0 : index
    %c0_1 = arith.constant 0 : index
    %c0_2 = arith.constant 0 : index
    %0 = vector.load %arg1[%c0, %c0_0, %c0_1, %c0_2] : memref<1x18x24x128xf32, #tpu.memory_space<vmem>>, vector<1x18x24x128xf32>
    %1 = vector.shape_cast %0 : vector<1x18x24x128xf32> to vector<18x24x128xf32>
    %cst = arith.constant dense<0.000000e+00> : vector<128xf32>
    %2 = vector.multi_reduction <add>, %1, %cst [0, 1] : vector<18x24x128xf32> to vector<128xf32>
    %3 = vector.shape_cast %2 : vector<128xf32> to vector<1x1x128xf32>
    %4 = vector.shape_cast %3 : vector<1x1x128xf32> to vector<1x128xf32>
    %cst_3 = arith.constant 3.906250e-03 : f32
    %5 = vector.broadcast %cst_3 : f32 to vector<1x128xf32>
    %6 = arith.mulf %4, %5 : vector<1x128xf32>
    %7 = arith.negf %6 : vector<1x128xf32>
    %8 = math.exp %7 : vector<1x128xf32>
    %cst_4 = arith.constant 1.000000e+00 : f32
    %9 = vector.broadcast %cst_4 : f32 to vector<1x128xf32>
    %10 = arith.addf %9, %8 : vector<1x128xf32>
    %11 = arith.divf %9, %10 : vector<1x128xf32>
    %12 = tpu.iota {dimensions = array<i32: 0>} : vector<128x128xi32>
    %13 = tpu.iota {dimensions = array<i32: 1>} : vector<128x128xi32>
    %14 = arith.cmpi eq, %12, %13 : vector<128x128xi32>
    %cst_5 = arith.constant 0.000000e+00 : f32
    %15 = vector.shape_cast %11 : vector<1x128xf32> to vector<1x128xf32>
    %16 = vector.broadcast %15 : vector<1x128xf32> to vector<128x128xf32>
    %17 = vector.broadcast %cst_5 : f32 to vector<128x128xf32>
    %18 = arith.select %14, %16, %17 : vector<128x128xi1>, vector<128x128xf32>
    %cst_6 = arith.constant dense<0.000000e+00> : vector<128xf32>
    %19 = vector.multi_reduction <add>, %18, %cst_6 [1] : vector<128x128xf32> to vector<128xf32>
    %20 = vector.shape_cast %19 : vector<128xf32> to vector<128x1xf32>
    %c0_7 = arith.constant 0 : index
    %c0_8 = arith.constant 0 : index
    %21 = vector.load %arg2[%c0_7, %c0_8] : memref<128x1152xf32, #tpu.memory_space<vmem>>, vector<128x1152xf32>
    %22 = vector.broadcast %20 : vector<128x1xf32> to vector<128x1152xf32>
    %23 = arith.mulf %21, %22 : vector<128x1152xf32>
    %cst_9 = arith.constant 0.000000e+00 : f32
    %24 = vector.broadcast %cst_9 : f32 to vector<384x384xf32>
    %25 = vector.extract_strided_slice %1 {offsets = [0, 0, 0], sizes = [16, 24, 128], strides = [1, 1, 1]} : vector<18x24x128xf32> to vector<16x24x128xf32>
    %26 = vector.shape_cast %25 : vector<16x24x128xf32> to vector<384x128xf32>
    %27 = vector.extract_strided_slice %23 {offsets = [0, 0], sizes = [128, 384], strides = [1, 1]} : vector<128x1152xf32> to vector<128x384xf32>
    %cst_10 = arith.constant dense<0.000000e+00> : vector<384x384xf32>
    %28 = tpu.matmul %26, %27, %cst_10 {dimension_numbers = #tpu.dot_dimension_numbers<[1], [0], [0], [1], [0, 0, 1, 1], [], []>} : vector<384x128xf32>, vector<128x384xf32>, vector<384x384xf32> -> vector<384x384xf32>
    %29 = arith.addf %24, %28 : vector<384x384xf32>
    %30 = vector.extract_strided_slice %1 {offsets = [1, 0, 0], sizes = [16, 24, 128], strides = [1, 1, 1]} : vector<18x24x128xf32> to vector<16x24x128xf32>
    %31 = vector.shape_cast %30 : vector<16x24x128xf32> to vector<384x128xf32>
    %32 = vector.extract_strided_slice %23 {offsets = [0, 384], sizes = [128, 384], strides = [1, 1]} : vector<128x1152xf32> to vector<128x384xf32>
    %cst_11 = arith.constant dense<0.000000e+00> : vector<384x384xf32>
    %33 = tpu.matmul %31, %32, %cst_11 {dimension_numbers = #tpu.dot_dimension_numbers<[1], [0], [0], [1], [0, 0, 1, 1], [], []>} : vector<384x128xf32>, vector<128x384xf32>, vector<384x384xf32> -> vector<384x384xf32>
    %34 = arith.addf %29, %33 : vector<384x384xf32>
    %35 = vector.extract_strided_slice %1 {offsets = [2, 0, 0], sizes = [16, 24, 128], strides = [1, 1, 1]} : vector<18x24x128xf32> to vector<16x24x128xf32>
    %36 = vector.shape_cast %35 : vector<16x24x128xf32> to vector<384x128xf32>
    %37 = vector.extract_strided_slice %23 {offsets = [0, 768], sizes = [128, 384], strides = [1, 1]} : vector<128x1152xf32> to vector<128x384xf32>
    %cst_12 = arith.constant dense<0.000000e+00> : vector<384x384xf32>
    %38 = tpu.matmul %36, %37, %cst_12 {dimension_numbers = #tpu.dot_dimension_numbers<[1], [0], [0], [1], [0, 0, 1, 1], [], []>} : vector<384x128xf32>, vector<128x384xf32>, vector<384x384xf32> -> vector<384x384xf32>
    %39 = arith.addf %34, %38 : vector<384x384xf32>
    %40 = vector.extract_strided_slice %39 {offsets = [0, 256], sizes = [384, 128], strides = [1, 1]} : vector<384x384xf32> to vector<384x128xf32>
    %41 = vector.extract_strided_slice %39 {offsets = [0, 128], sizes = [384, 128], strides = [1, 1]} : vector<384x384xf32> to vector<384x128xf32>
    %c1_i32 = arith.constant 1 : i32
    %42 = tpu.dynamic_rotate %41 by %c1_i32 dim 0 : vector<384x128xf32>, i32 -> vector<384x128xf32>
    %43 = arith.addf %40, %42 : vector<384x128xf32>
    %44 = vector.extract_strided_slice %39 {offsets = [0, 0], sizes = [384, 128], strides = [1, 1]} : vector<384x384xf32> to vector<384x128xf32>
    %c2_i32 = arith.constant 2 : i32
    %45 = tpu.dynamic_rotate %44 by %c2_i32 dim 0 : vector<384x128xf32>, i32 -> vector<384x128xf32>
    %46 = arith.addf %43, %45 : vector<384x128xf32>
    %c0_13 = arith.constant 0 : index
    %c0_14 = arith.constant 0 : index
    %47 = vector.load %arg3[%c0_13, %c0_14] : memref<1x128xf32, #tpu.memory_space<vmem>>, vector<1x128xf32>
    %48 = vector.broadcast %47 : vector<1x128xf32> to vector<384x128xf32>
    %49 = arith.addf %46, %48 : vector<384x128xf32>
    %50 = vector.shape_cast %49 : vector<384x128xf32> to vector<16x24x128xf32>
    %cst_15 = arith.constant 0.000000e+00 : f32
    %51 = vector.broadcast %cst_15 : f32 to vector<16x24x128xf32>
    %52 = arith.cmpf ogt, %50, %51 : vector<16x24x128xf32>
    %cst_16 = arith.constant 0.00999999977 : f32
    %53 = vector.broadcast %cst_16 : f32 to vector<16x24x128xf32>
    %54 = arith.mulf %53, %50 : vector<16x24x128xf32>
    %55 = arith.select %52, %50, %54 : vector<16x24x128xi1>, vector<16x24x128xf32>
    %56 = tpu.iota {dimensions = array<i32: 1>} : vector<16x24x128xi32>
    %c2_i32_17 = arith.constant 2 : i32
    %57 = vector.broadcast %c2_i32_17 : i32 to vector<16x24x128xi32>
    %58 = arith.cmpi sge, %56, %57 : vector<16x24x128xi32>
    %c18_i32 = arith.constant 18 : i32
    %59 = vector.broadcast %c18_i32 : i32 to vector<16x24x128xi32>
    %60 = arith.cmpi slt, %56, %59 : vector<16x24x128xi32>
    %61 = arith.andi %58, %60 : vector<16x24x128xi1>
    %cst_18 = arith.constant 0.000000e+00 : f32
    %62 = vector.broadcast %cst_18 : f32 to vector<16x24x128xf32>
    %63 = arith.select %61, %55, %62 : vector<16x24x128xi1>, vector<16x24x128xf32>
    %cst_19 = arith.constant dense<0.000000e+00> : vector<128xf32>
    %64 = vector.multi_reduction <add>, %63, %cst_19 [0, 1] : vector<16x24x128xf32> to vector<128xf32>
    %65 = vector.shape_cast %64 : vector<128xf32> to vector<1x1x128xf32>
    %cst_20 = arith.constant 3.906250e-03 : f32
    %66 = vector.broadcast %cst_20 : f32 to vector<1x1x128xf32>
    %67 = arith.mulf %65, %66 : vector<1x1x128xf32>
    %68 = vector.shape_cast %67 : vector<1x1x128xf32> to vector<1x128xf32>
    %c0_21 = arith.constant 0 : index
    %c0_22 = arith.constant 0 : index
    %69 = vector.load %arg4[%c0_21, %c0_22] : memref<128x128xf32, #tpu.memory_space<vmem>>, vector<128x128xf32>
    %cst_23 = arith.constant dense<0.000000e+00> : vector<1x128xf32>
    %70 = tpu.matmul %68, %69, %cst_23 {dimension_numbers = #tpu.dot_dimension_numbers<[1], [0], [0], [1], [0, 0, 1, 1], [], []>} : vector<1x128xf32>, vector<128x128xf32>, vector<1x128xf32> -> vector<1x128xf32>
    %c0_24 = arith.constant 0 : index
    %c0_25 = arith.constant 0 : index
    %71 = vector.load %arg5[%c0_24, %c0_25] : memref<1x128xf32, #tpu.memory_space<vmem>>, vector<1x128xf32>
    %72 = arith.addf %70, %71 : vector<1x128xf32>
    %73 = arith.negf %72 : vector<1x128xf32>
    %74 = math.exp %73 : vector<1x128xf32>
    %cst_26 = arith.constant 1.000000e+00 : f32
    %75 = vector.broadcast %cst_26 : f32 to vector<1x128xf32>
    %76 = arith.addf %75, %74 : vector<1x128xf32>
    %77 = arith.divf %75, %76 : vector<1x128xf32>
    %78 = vector.shape_cast %77 : vector<1x128xf32> to vector<1x1x128xf32>
    %79 = vector.broadcast %78 : vector<1x1x128xf32> to vector<16x24x128xf32>
    %80 = arith.mulf %63, %79 : vector<16x24x128xf32>
    %c0_27 = arith.constant 0 : index
    %c0_28 = arith.constant 0 : index
    %c0_29 = arith.constant 0 : index
    %c0_30 = arith.constant 0 : index
    %81 = vector.load %arg6[%c0_27, %c0_28, %c0_29, %c0_30] : memref<1x16x24x128xf32, #tpu.memory_space<vmem>>, vector<1x16x24x128xf32>
    %82 = vector.shape_cast %81 : vector<1x16x24x128xf32> to vector<16x24x128xf32>
    %83 = vector.shape_cast %80 : vector<16x24x128xf32> to vector<1x16x24x128xf32>
    tpu.vector_store %arg6[%c0_27, %c0_28, %c0_29, %c0_30], %83 {strides = array<i32>} : memref<1x16x24x128xf32, #tpu.memory_space<vmem>>, vector<1x16x24x128xf32>,
    return
  }
  func.func @transform_0(%arg0: i32) -> (i32, i32, i32, i32) {
    %c0_i32 = arith.constant 0 : i32
    %c0_i32_0 = arith.constant 0 : i32
    %c0_i32_1 = arith.constant 0 : i32
    %c0_i32_2 = arith.constant 0 : i32
    return %arg0, %c0_i32, %c0_i32_0, %c0_i32_1 : i32, i32, i32, i32
  }
  func.func @transform_1(%arg0: i32) -> (i32, i32) {
    %c0_i32 = arith.constant 0 : i32
    %c0_i32_0 = arith.constant 0 : i32
    %c0_i32_1 = arith.constant 0 : i32
    return %c0_i32, %c0_i32_0 : i32, i32
  }
  func.func @transform_2(%arg0: i32) -> (i32, i32) {
    %c0_i32 = arith.constant 0 : i32
    %c0_i32_0 = arith.constant 0 : i32
    %c0_i32_1 = arith.constant 0 : i32
    return %c0_i32, %c0_i32_0 : i32, i32
  }
  func.func @transform_3(%arg0: i32) -> (i32, i32) {
    %c0_i32 = arith.constant 0 : i32
    %c0_i32_0 = arith.constant 0 : i32
    %c0_i32_1 = arith.constant 0 : i32
    return %c0_i32, %c0_i32_0 : i32, i32
  }
  func.func @transform_4(%arg0: i32) -> (i32, i32) {
    %c0_i32 = arith.constant 0 : i32
    %c0_i32_0 = arith.constant 0 : i32
    %c0_i32_1 = arith.constant 0 : i32
    return %c0_i32, %c0_i32_0 : i32, i32
  }
  func.func @transform_5(%arg0: i32) -> (i32, i32, i32, i32) {
    %c0_i32 = arith.constant 0 : i32
    %c0_i32_0 = arith.constant 0 : i32
    %c0_i32_1 = arith.constant 0 : i32
    %c0_i32_2 = arith.constant 0 : i32
    return %arg0, %c0_i32, %c0_i32_0, %c0_i32_1 : i32, i32, i32, i32
  }
}

</mosaic_0001>

<bundles_post_ra>
// kernel: attention_refinement_module.1
= control target key start
LH: loop header
LB: loop body
LE: loop exit
PB: predicated region body
PF: predicated region fallthrough
CT: control target
= control target key end

     0   :  { %s4441_s18 = smov 0   ;;  %s7838_s0 = inlined_call_operand.vmem [shape: f32[2,18,24,128], index: 0, kind: input, shape index: {}]   ;;  %s7839_s1 = inlined_call_operand.vmem [shape: f32[128,1152], index: 1, kind: input, shape index: {}]   ;;  %s7840_s2 = inlined_call_operand.vmem [shape: f32[1,128], index: 2, kind: input, shape index: {}]   ;;  %s7841_s3 = inlined_call_operand.vmem [shape: f32[128,128], index: 3, kind: input, shape index: {}]   ;;  %s7842_s4 = inlined_call_operand.vmem [shape: f32[1,128], index: 4, kind: input, shape index: {}]   ;;  %s7843_s5 = inlined_call_operand.vmem [shape: f32[2,16,24,128], index: 5, kind: output, shape index: {}]  }
   0x1 LB: > { %s3682_s19 = sadd.s32 4294967295, %s4407_s18   ;;  %p3686_p0 = scmp.ge.s32.totalorder %s4407_s18, 1  ;;  %s4407_s18 = sphi %s4441_s18, %s15_s18  }
   0x2   : > { %p187_p1 = scmp.lt.s32.totalorder %s4407_s18, 3 }
   0x4   : > { %p188_p2 = pnand %p3686_p0, %p187_p1 }
   0x6   : > { %191 = sbr.rel (%p188_p2) target bundleno = 1385 (0x569), region = 40 }
   0xb   : > { %p215_p3 = scmp.lt.s32.totalorder %s3682_s19, 1 }
   0xd   : > { %s8425_s19 = smov (!%p215_p3, %s3682_s19), 1 }
   0xe   : > { %s4282_s20 = smul.u32 432, %s8425_s19 }
   0xf   : > { %s4283_s13 = smul.u32 384, %s8425_s19 }
  0x10   : > { %s4455_s23 = scalar_lea.vmem %s7838_s0, %s4282_s20 }
  0x11   : > { %v225_v0 = vld [vmem:[%s4455_s23] sm:$0xff]  ;;  %v226_v1 = vld [vmem:[%s4455_s23 + $0x8] sm:$0xff]  ;;  %v227_v2 = vld [vmem:[%s4455_s23 + $0x10] sm:$0xff]  ;;  %s7689_s16 = scalar_lea.vmem %s7843_s5, %s4283_s13 }
  0x12   : > { %v279_v3 = vadd.f32 %v226_v1, %v225_v0  ;;  %v4461_v4 = vld [vmem:[%s4455_s23 + $0x18] sm:$0xff]  ;;  %v4464_v6 = vld [vmem:[%s4455_s23 + $0x20] sm:$0xff]  ;;  %v4468_v8 = vld [vmem:[%s4455_s23 + $0x28] sm:$0xff] }
  0x13   : > { %v4472_v10 = vld [vmem:[%s4455_s23 + $0x30] sm:$0xff]  ;;  %v4476_v12 = vld [vmem:[%s4455_s23 + $0x38] sm:$0xff]  ;;  %v4480_v14 = vld [vmem:[%s4455_s23 + $0x40] sm:$0xff] }
  0x14   : > { %v280_v5 = vadd.f32 %v279_v3, %v227_v2  ;;  %v4484_v16 = vld [vmem:[%s4455_s23 + $0x48] sm:$0xff]  ;;  %v4488_v18 = vld [vmem:[%s4455_s23 + $0x50] sm:$0xff]  ;;  %v4492_v20 = vld [vmem:[%s4455_s23 + $0x58] sm:$0xff] }
  0x15   : > { %v4496_v22 = vld [vmem:[%s4455_s23 + $0x60] sm:$0xff]  ;;  %v4500_v24 = vld [vmem:[%s4455_s23 + $0x68] sm:$0xff]  ;;  %v4504_v26 = vld [vmem:[%s4455_s23 + $0x70] sm:$0xff] }
  0x16   : > { %v281_v7 = vadd.f32 %v280_v5, %v4461_v4  ;;  %v4508_v28 = vld [vmem:[%s4455_s23 + $0x78] sm:$0xff]  ;;  %v241_v30 = vld [vmem:[%s4455_s23 + $0x80] sm:$0xff]  ;;  %v242_v32 = vld [vmem:[%s4455_s23 + $0x88] sm:$0xff] }
  0x17   : > { %v243_v34 = vld [vmem:[%s4455_s23 + $0x90] sm:$0xff]  ;;  %v244_v36 = vld [vmem:[%s4455_s23 + $0x98] sm:$0xff]  ;;  %v245_v38 = vld [vmem:[%s4455_s23 + $0xa0] sm:$0xff] }
  0x18   : > { %v282_v9 = vadd.f32 %v281_v7, %v4464_v6  ;;  %v246_v40 = vld [vmem:[%s4455_s23 + $0xa8] sm:$0xff]  ;;  %v247_v42 = vld [vmem:[%s4455_s23 + $0xb0] sm:$0xff]  ;;  %v248_v44 = vld [vmem:[%s4455_s23 + $0xb8] sm:$0xff] }
  0x19   : > { %v249_v46 = vld [vmem:[%s4455_s23 + $0xc0] sm:$0xff]  ;;  %v250_v48 = vld [vmem:[%s4455_s23 + $0xc8] sm:$0xff]  ;;  %v251_v50 = vld [vmem:[%s4455_s23 + $0xd0] sm:$0xff] }
  0x1a   : > { %v283_v11 = vadd.f32 %v282_v9, %v4468_v8  ;;  %v252_v52 = vld [vmem:[%s4455_s23 + $0xd8] sm:$0xff]  ;;  %v253_v54 = vld [vmem:[%s4455_s23 + $0xe0] sm:$0xff]  ;;  %v254_v56 = vld [vmem:[%s4455_s23 + $0xe8] sm:$0xff] }
  0x1b   : > { %v255_v58 = vld [vmem:[%s4455_s23 + $0xf0] sm:$0xff]  ;;  %v256_v60 = vld [vmem:[%s4455_s23 + $0xf8] sm:$0xff]  ;;  %v257_v62 = vld [vmem:[%s4455_s23 + $0x100] sm:$0xff] }
  0x1c   : > { %v284_v13 = vadd.f32 %v283_v11, %v4472_v10  ;;  %v258_v0 = vld [vmem:[%s4455_s23 + $0x108] sm:$0xff]  ;;  %v259_v2 = vld [vmem:[%s4455_s23 + $0x110] sm:$0xff]  ;;  %v260_v5 = vld [vmem:[%s4455_s23 + $0x118] sm:$0xff] }
  0x1d   : > { %v261_v9 = vld [vmem:[%s4455_s23 + $0x120] sm:$0xff] }
  0x1e   : > { %v285_v15 = vadd.f32 %v284_v13, %v4476_v12  ;;  %v262_v13 = vld [vmem:[%s4455_s23 + $0x128] sm:$0xff] }
  0x20   : > { %v286_v17 = vadd.f32 %v285_v15, %v4480_v14 }
  0x22   : > { %v287_v19 = vadd.f32 %v286_v17, %v4484_v16  ;;  %v263_v17 = vld [vmem:[%s4455_s23 + $0x130] sm:$0xff] }
  0x24   : > { %v288_v21 = vadd.f32 %v287_v19, %v4488_v18 }
  0x26   : > { %v289_v23 = vadd.f32 %v288_v21, %v4492_v20  ;;  %v264_v21 = vld [vmem:[%s4455_s23 + $0x138] sm:$0xff] }
  0x28   : > { %v290_v25 = vadd.f32 %v289_v23, %v4496_v22 }
  0x2a   : > { %v291_v27 = vadd.f32 %v290_v25, %v4500_v24  ;;  %v4537_v25 = vld [vmem:[%s4455_s23 + $0x140] sm:$0xff] }
  0x2c   : > { %v292_v29 = vadd.f32 %v291_v27, %v4504_v26 }
  0x2e   : > { %v293_v31 = vadd.f32 %v292_v29, %v4508_v28  ;;  %v4540_v29 = vld [vmem:[%s4455_s23 + $0x148] sm:$0xff] }
  0x30   : > { %v294_v33 = vadd.f32 %v293_v31, %v241_v30  ;;  %v4544_v31 = vld [vmem:[%s4455_s23 + $0x150] sm:$0xff] }
  0x32   : > { %v295_v35 = vadd.f32 %v294_v33, %v242_v32  ;;  %v4548_v33 = vld [vmem:[%s4455_s23 + $0x158] sm:$0xff] }
  0x34   : > { %v296_v37 = vadd.f32 %v295_v35, %v243_v34  ;;  %v4552_v35 = vld [vmem:[%s4455_s23 + $0x160] sm:$0xff] }
  0x36   : > { %v297_v39 = vadd.f32 %v296_v37, %v244_v36  ;;  %v4556_v37 = vld [vmem:[%s4455_s23 + $0x168] sm:$0xff] }
  0x38   : > { %v298_v41 = vadd.f32 %v297_v39, %v245_v38  ;;  %v4560_v39 = vld [vmem:[%s4455_s23 + $0x170] sm:$0xff] }
  0x3a   : > { %v299_v43 = vadd.f32 %v298_v41, %v246_v40  ;;  %v4564_v41 = vld [vmem:[%s4455_s23 + $0x178] sm:$0xff] }
  0x3c   : > { %v300_v45 = vadd.f32 %v299_v43, %v247_v42  ;;  %v4568_v43 = vld [vmem:[%s4455_s23 + $0x180] sm:$0xff] }
  0x3e   : > { %v301_v47 = vadd.f32 %v300_v45, %v248_v44  ;;  %v4572_v45 = vld [vmem:[%s4455_s23 + $0x188] sm:$0xff] }
  0x40   : > { %v302_v49 = vadd.f32 %v301_v47, %v249_v46  ;;  %v4576_v47 = vld [vmem:[%s4455_s23 + $0x190] sm:$0xff] }
  0x42   : > { %v303_v51 = vadd.f32 %v302_v49, %v250_v48  ;;  %v276_v49 = vld [vmem:[%s4455_s23 + $0x198] sm:$0xff] }
  0x44   : > { %v304_v53 = vadd.f32 %v303_v51, %v251_v50  ;;  %v277_v51 = vld [vmem:[%s4455_s23 + $0x1a0] sm:$0xff] }
  0x46   : > { %v305_v55 = vadd.f32 %v304_v53, %v252_v52  ;;  %v278_v53 = vld [vmem:[%s4455_s23 + $0x1a8] sm:$0xff] }
  0x48   : > { %v306_v57 = vadd.f32 %v305_v55, %v253_v54 }
  0x4a   : > { %v307_v59 = vadd.f32 %v306_v57, %v254_v56 }
  0x4c   : > { %v308_v61 = vadd.f32 %v307_v59, %v255_v58 }
  0x4e   : > { %v309_v63 = vadd.f32 %v308_v61, %v256_v60 }
  0x50   : > { %v310_v1 = vadd.f32 %v309_v63, %v257_v62 }
  0x52   : > { %v311_v3 = vadd.f32 %v310_v1, %v258_v0 }
  0x54   : > { %v312_v7 = vadd.f32 %v311_v3, %v259_v2  ;;  %v345_v2 = vlaneseq }
  0x56   : > { %v313_v11 = vadd.f32 %v312_v7, %v260_v5  ;;  %v4583_v3 = vshrl.u32 %v345_v2, 7  ;;  %v363_v7 = vand.u32 127, %v345_v2 }
  0x58   : > { %v314_v15 = vadd.f32 %v313_v11, %v261_v9  ;;  %7876 = vst [vmem:[#allocation2_spill] sm:$0xff] %v4583_v3  ;;  %v361_v5 = vadd.s32 120, %v4583_v3  ;;  %v359_v9 = vadd.s32 104, %v4583_v3  ;;  %v360_v11 = vadd.s32 112, %v4583_v3 }
  0x59   : > { %vm364_vm15 = vcmp.eq.s32.totalorder %v4583_v3, %v363_v7 }
  0x5a   : > { %v315_v19 = vadd.f32 %v314_v15, %v262_v13  ;;  %v358_v13 = vadd.s32 96, %v4583_v3  ;;  %vm379_vm0 = vcmp.eq.s32.totalorder %v361_v5, %v363_v7  ;;  %vm377_vm1 = vcmp.eq.s32.totalorder %v359_v9, %v363_v7  ;;  %v557_v9 = vld [vmem:[%s7839_s1 + $0x408] sm:$0xff] }
  0x5b   : > { %vm378_vm2 = vcmp.eq.s32.totalorder %v360_v11, %v363_v7 }
  0x5c   : > { %v316_v23 = vadd.f32 %v315_v19, %v263_v17  ;;  %vm376_vm3 = vcmp.eq.s32.totalorder %v358_v13, %v363_v7  ;;  %v357_v17 = vadd.s32 88, %v4583_v3  ;;  %v356_v19 = vadd.s32 80, %v4583_v3 }
  0x5e   : > { %v317_v27 = vadd.f32 %v316_v23, %v264_v21  ;;  %vm375_vm4 = vcmp.eq.s32.totalorder %v357_v17, %v363_v7  ;;  %vm374_vm5 = vcmp.eq.s32.totalorder %v356_v19, %v363_v7  ;;  %v540_v17 = vld [vmem:[%s7839_s1 + $0x380] sm:$0xff] }
  0x60   : > { %v318_v30 = vadd.f32 %v317_v27, %v4537_v25 }
  0x62   : > { %v319_v32 = vadd.f32 %v318_v30, %v4540_v29 }
  0x64   : > { %v320_v34 = vadd.f32 %v319_v32, %v4544_v31  ;;  %v355_v32 = vadd.s32 72, %v4583_v3 }
  0x66   : > { %v321_v36 = vadd.f32 %v320_v34, %v4548_v33  ;;  %v354_v34 = vadd.s32 64, %v4583_v3  ;;  %vm373_vm6 = vcmp.eq.s32.totalorder %v355_v32, %v363_v7 }
  0x68   : > { %v322_v38 = vadd.f32 %v321_v36, %v4552_v35  ;;  %vm372_vm7 = vcmp.eq.s32.totalorder %v354_v34, %v363_v7 }
  0x6a   : > { %v323_v40 = vadd.f32 %v322_v38, %v4556_v37 }
  0x6c   : > { %v324_v42 = vadd.f32 %v323_v40, %v4560_v39  ;;  %v353_v40 = vadd.s32 56, %v4583_v3 }
  0x6e   : > { %v325_v44 = vadd.f32 %v324_v42, %v4564_v41  ;;  %v352_v42 = vadd.s32 48, %v4583_v3  ;;  %vm371_vm8 = vcmp.eq.s32.totalorder %v353_v40, %v363_v7 }
  0x70   : > { %v326_v46 = vadd.f32 %v325_v44, %v4568_v43  ;;  %vm370_vm9 = vcmp.eq.s32.totalorder %v352_v42, %v363_v7 }
  0x72   : > { %v327_v48 = vadd.f32 %v326_v46, %v4572_v45 }
  0x74   : > { %v328_v50 = vadd.f32 %v327_v48, %v4576_v47  ;;  %v351_v48 = vadd.s32 40, %v4583_v3 }
  0x76   : > { %v329_v52 = vadd.f32 %v328_v50, %v276_v49  ;;  %v350_v49 = vadd.s32 32, %v4583_v3  ;;  %vm369_vm10 = vcmp.eq.s32.totalorder %v351_v48, %v363_v7 }
  0x78   : > { %v330_v54 = vadd.f32 %v329_v52, %v277_v51  ;;  %vm368_vm11 = vcmp.eq.s32.totalorder %v350_v49, %v363_v7  ;;  %v349_v52 = vadd.s32 24, %v4583_v3  ;;  %v521_v49 = vld [vmem:[%s7839_s1 + $0x2e8] sm:$0xff] }
  0x7a   : > { %v331_v55 = vadd.f32 %v330_v54, %v278_v53  ;;  %v4599_v53 = vadd.s32 16, %v4583_v3  ;;  %vm367_vm12 = vcmp.eq.s32.totalorder %v349_v52, %v363_v7 }
  0x7c   : > { %v332_v56 = vrot.slane %v331_v55, 4  ;;  %7877 = vst [vmem:[#allocation3_spill] sm:$0xff] %v4599_v53  ;;  %vm366_vm13 = vcmp.eq.s32.totalorder %v4599_v53, %v363_v7  ;;  %v4346_v53 = vld [vmem:[%s4455_s23 + $0x188] sm:$0xff] }
  0x7e   : > { %v333_v57 = vadd.f32 %v332_v56, %v331_v55  ;;  %v347_v56 = vadd.s32 8, %v4583_v3  ;;  %v4347_v3 = vld [vmem:[%s4455_s23 + $0x190] sm:$0xff] }
  0x80   : > { %v334_v58 = vrot.slane %v333_v57, 2  ;;  %vm365_vm14 = vcmp.eq.s32.totalorder %v347_v56, %v363_v7  ;;  %v558_v7 = vld [vmem:[%s7839_s1 + $0x410] sm:$0xff] }
  0x82   : > { %v335_v59 = vadd.f32 %v334_v58, %v333_v57 }
  0x84   : > { %v336_v60 = vrot.slane %v335_v59, 1 }
  0x86   : > { %v337_v61 = vadd.f32 %v336_v60, %v335_v59 }
  0x88   : > { %v3689_v62 = vmul.f32 -0.00390625, %v337_v61  ;;  %v7856_v61 = vmov 0.0  }
  0x89   : > { %780 = vmatprep.mubr.f32.mxu0 %v7856_v61  ;;  %1002 = vmatprep.mubr.f32.mxu1 %v7856_v61 }
  0x8a   : > { %v340_v63 = vmul.f32 1.442695, %v3689_v62  ;;  %v567_v62 = vld [vmem:[%s7839_s1 + $0x458] sm:$0xff] }
  0x8c   : > { %4294 = vpow2.f32 %v340_v63  ;;  %v566_v63 = vld [vmem:[%s7839_s1 + $0x450] sm:$0xff] }
  0x99   : > { %v4295_v0 = vpop.eup %4294 }
  0x9a   : > { %v342_v1 = vadd.f32 1.0, %v4295_v0 }
  0x9c   : > { %4296 = vrcp.f32 %v342_v1 }
  0xa9   : > { %v4297_v15 = vpop.eup %4296 }
  0xaa   : > { %v395_v21 = vsel %vm379_vm0, %v4297_v15, 0.0  ;;  %v393_v23 = vsel %vm377_vm1, %v4297_v15, 0.0  ;;  %v394_v27 = vsel %vm378_vm2, %v4297_v15, 0.0  ;;  %v392_v30 = vsel %vm376_vm3, %v4297_v15, 0.0 }
  0xab   : > { %426 = vadd.xlane.f32.xlu0 %v395_v21  ;;  %422 = vadd.xlane.f32.xlu1 %v393_v23  ;;  %v391_v36 = vsel %vm375_vm4, %v4297_v15, 0.0  ;;  %v390_v38 = vsel %vm374_vm5, %v4297_v15, 0.0  ;;  %v389_v44 = vsel %vm373_vm6, %v4297_v15, 0.0  ;;  %v388_v46 = vsel %vm372_vm7, %v4297_v15, 0.0  ;;  %v548_v23 = vld [vmem:[%s7839_s1 + $0x3c0] sm:$0xff] }
  0xac   : > { %v387_v50 = vsel %vm371_vm8, %v4297_v15, 0.0  ;;  %v386_v51 = vsel %vm370_vm9, %v4297_v15, 0.0  ;;  %v385_v54 = vsel %vm369_vm10, %v4297_v15, 0.0  ;;  %v384_v55 = vsel %vm368_vm11, %v4297_v15, 0.0 }
  0xad   : > { %v383_v57 = vsel %vm367_vm12, %v4297_v15, 0.0  ;;  %v382_v58 = vsel %vm366_vm13, %v4297_v15, 0.0  ;;  %v381_v59 = vsel %vm365_vm14, %v4297_v15, 0.0  ;;  %v380_v60 = vsel %vm364_vm15, %v4297_v15, 0.0  ;;  %v549_v15 = vld [vmem:[%s7839_s1 + $0x3c8] sm:$0xff] }
  0xae   : > { %vm4410_vm2 = vmmov 0  }
  0xaf   : > { %424 = vadd.xlane.f32.xlu0 %v394_v27  ;;  %420 = vadd.xlane.f32.xlu1 %v392_v30  ;;  %v539_v27 = vld [vmem:[%s7839_s1 + $0x378] sm:$0xff] }
  0xb0   : > { %v531_v30 = vld [vmem:[%s7839_s1 + $0x338] sm:$0xff] }
  0xb3   : > { %418 = vadd.xlane.f32.xlu0 %v391_v36  ;;  %416 = vadd.xlane.f32.xlu1 %v390_v38  ;;  %v530_v36 = vld [vmem:[%s7839_s1 + $0x330] sm:$0xff] }
  0xb7   : > { %414 = vadd.xlane.f32.xlu0 %v389_v44  ;;  %412 = vadd.xlane.f32.xlu1 %v388_v46  ;;  %v522_v46 = vld [vmem:[%s7839_s1 + $0x2f0] sm:$0xff] }
  0xbb   : > { %410 = vadd.xlane.f32.xlu0 %v387_v50  ;;  %408 = vadd.xlane.f32.xlu1 %v386_v51  ;;  %v513_v51 = vld [vmem:[%s7839_s1 + $0x2a8] sm:$0xff] }
  0xbf   : > { %406 = vadd.xlane.f32.xlu0 %v385_v54  ;;  %404 = vadd.xlane.f32.xlu1 %v384_v55  ;;  %v512_v54 = vld [vmem:[%s7839_s1 + $0x2a0] sm:$0xff] }
  0xc3   : > { %402 = vadd.xlane.f32.xlu0 %v383_v57  ;;  %400 = vadd.xlane.f32.xlu1 %v382_v58  ;;  %v504_v58 = vld [vmem:[%s7839_s1 + $0x260] sm:$0xff] }
  0xc7   : > { %398 = vadd.xlane.f32.xlu0 %v381_v59  ;;  %396 = vadd.xlane.f32.xlu1 %v380_v60  ;;  %v503_v60 = vld [vmem:[%s7839_s1 + $0x258] sm:$0xff] }
 0x134   : > { %v4612_v0 = vpop.xlane.xlu0 %426  ;;  %v4614_v1 = vpop.xlane.xlu1 %422 }
 0x135   : > { %v711_v2 = vmul.f32 %v567_v62, %v4612_v0  ;;  %v710_v5 = vmul.f32 %v566_v63, %v4612_v0  ;;  %v693_v32 = vmul.f32 %v549_v15, %v4614_v1  ;;  %v692_v38 = vmul.f32 %v548_v23, %v4614_v1  ;;  %v495_v63 = vld [vmem:[%s7839_s1 + $0x218] sm:$0xff] }
 0x137   : > { %716 = vmatprep.subr.mxu0 %v711_v2  ;;  %4250 = vmatprep.subr.mxu1 %v711_v2 }
 0x138   : > { %717 = vmatpush1.msra.mxu0 %v710_v5  ;;  %4266 = vmatpush1.msra.mxu1 %v710_v5  ;;  %v4624_v11 = vpop.xlane.xlu0 %424  ;;  %v4626_v13 = vpop.xlane.xlu1 %420  ;;  %v494_v5 = vld [vmem:[%s7839_s1 + $0x210] sm:$0xff] }
 0x139   : > { %v702_v19 = vmul.f32 %v558_v7, %v4624_v11  ;;  %v701_v21 = vmul.f32 %v557_v9, %v4624_v11  ;;  %v684_v34 = vmul.f32 %v540_v17, %v4626_v13  ;;  %v683_v42 = vmul.f32 %v539_v27, %v4626_v13  ;;  %v486_v17 = vld [vmem:[%s7839_s1 + $0x1d0] sm:$0xff]  ;;  %v477_v27 = vld [vmem:[%s7839_s1 + $0x188] sm:$0xff] }
 0x13b   : > { %718 = vmatprep.subr.mxu0 %v702_v19  ;;  %4251 = vmatprep.subr.mxu1 %v702_v19 }
 0x13c   : > { %719 = vmatpush1.msra.mxu0 %v701_v21  ;;  %4267 = vmatpush1.msra.mxu1 %v701_v21  ;;  %v4651_v40 = vpop.xlane.xlu0 %418  ;;  %v4654_v44 = vpop.xlane.xlu1 %416  ;;  %v485_v21 = vld [vmem:[%s7839_s1 + $0x1c8] sm:$0xff] }
 0x13d   : > { %720 = vmatprep.subr.mxu0 %v693_v32  ;;  %4252 = vmatprep.subr.mxu1 %v693_v32  ;;  %v675_v48 = vmul.f32 %v531_v30, %v4651_v40  ;;  %v674_v50 = vmul.f32 %v530_v36, %v4651_v40  ;;  %v666_v52 = vmul.f32 %v522_v46, %v4654_v44  ;;  %v476_v32 = vld [vmem:[%s7839_s1 + $0x180] sm:$0xff] }
 0x13e   : > { %721 = vmatpush1.msra.mxu0 %v692_v38  ;;  %4268 = vmatpush1.msra.mxu1 %v692_v38  ;;  %v665_v56 = vmul.f32 %v521_v49, %v4654_v44 }
 0x13f   : > { %722 = vmatprep.subr.mxu0 %v684_v34  ;;  %4253 = vmatprep.subr.mxu1 %v684_v34 }
 0x140   : > { %723 = vmatpush1.msra.mxu0 %v683_v42  ;;  %4269 = vmatpush1.msra.mxu1 %v683_v42  ;;  %v4671_v55 = vpop.xlane.xlu0 %414  ;;  %v4674_v57 = vpop.xlane.xlu1 %412  ;;  %v468_v42 = vld [vmem:[%s7839_s1 + $0x140] sm:$0xff] }
 0x141   : > { %724 = vmatprep.subr.mxu0 %v675_v48  ;;  %4254 = vmatprep.subr.mxu1 %v675_v48  ;;  %v657_v59 = vmul.f32 %v513_v51, %v4671_v55  ;;  %v656_v62 = vmul.f32 %v512_v54, %v4671_v55  ;;  %v648_v2 = vmul.f32 %v504_v58, %v4674_v57  ;;  %v467_v48 = vld [vmem:[%s7839_s1 + $0x138] sm:$0xff] }
 0x142   : > { %725 = vmatpush1.msra.mxu0 %v674_v50  ;;  %4270 = vmatpush1.msra.mxu1 %v674_v50  ;;  %v647_v9 = vmul.f32 %v503_v60, %v4674_v57  ;;  %v459_v50 = vld [vmem:[%s7839_s1 + $0xf8] sm:$0xff] }
 0x143   : > { %726 = vmatprep.subr.mxu0 %v666_v52  ;;  %4255 = vmatprep.subr.mxu1 %v666_v52  ;;  %v458_v52 = vld [vmem:[%s7839_s1 + $0xf0] sm:$0xff] }
 0x144   : > { %727 = vmatpush1.msra.mxu0 %v665_v56  ;;  %4271 = vmatpush1.msra.mxu1 %v665_v56  ;;  %v4691_v7 = vpop.xlane.xlu0 %410  ;;  %v4694_v15 = vpop.xlane.xlu1 %408 }
 0x145   : > { %728 = vmatprep.subr.mxu0 %v657_v59  ;;  %4256 = vmatprep.subr.mxu1 %v657_v59  ;;  %v639_v19 = vmul.f32 %v495_v63, %v4691_v7  ;;  %v638_v23 = vmul.f32 %v494_v5, %v4691_v7  ;;  %v630_v30 = vmul.f32 %v486_v17, %v4694_v15  ;;  %v450_v59 = vld [vmem:[%s7839_s1 + $0xb0] sm:$0xff] }
 0x146   : > { %729 = vmatpush1.msra.mxu0 %v656_v62  ;;  %4272 = vmatpush1.msra.mxu1 %v656_v62  ;;  %v629_v36 = vmul.f32 %v485_v21, %v4694_v15  ;;  %v449_v62 = vld [vmem:[%s7839_s1 + $0xa8] sm:$0xff] }
 0x147   : > { %730 = vmatprep.subr.mxu0 %v648_v2  ;;  %4257 = vmatprep.subr.mxu1 %v648_v2  ;;  %v441_v2 = vld [vmem:[%s7839_s1 + $0x68] sm:$0xff] }
 0x148   : > { %731 = vmatpush1.msra.mxu0 %v647_v9  ;;  %4273 = vmatpush1.msra.mxu1 %v647_v9  ;;  %v4711_v34 = vpop.xlane.xlu0 %406  ;;  %v4714_v38 = vpop.xlane.xlu1 %404  ;;  %v440_v9 = vld [vmem:[%s7839_s1 + $0x60] sm:$0xff] }
 0x149   : > { %732 = vmatprep.subr.mxu0 %v639_v19  ;;  %4258 = vmatprep.subr.mxu1 %v639_v19  ;;  %v621_v46 = vmul.f32 %v477_v27, %v4711_v34  ;;  %v620_v49 = vmul.f32 %v476_v32, %v4711_v34  ;;  %v612_v51 = vmul.f32 %v468_v42, %v4714_v38 }
 0x14a   : > { %733 = vmatpush1.msra.mxu0 %v638_v23  ;;  %4274 = vmatpush1.msra.mxu1 %v638_v23  ;;  %v611_v56 = vmul.f32 %v467_v48, %v4714_v38  ;;  %v432_v23 = vld [vmem:[%s7839_s1 + $0x20] sm:$0xff]  ;;  %v565_v48 = vld [vmem:[%s7839_s1 + $0x448] sm:$0xff] }
 0x14b   : > { %734 = vmatprep.subr.mxu0 %v630_v30  ;;  %4259 = vmatprep.subr.mxu1 %v630_v30  ;;  %v431_v30 = vld [vmem:[%s7839_s1 + $0x18] sm:$0xff] }
 0x14c   : > { %735 = vmatpush1.msra.mxu0 %v629_v36  ;;  %4275 = vmatpush1.msra.mxu1 %v629_v36  ;;  %v4731_v54 = vpop.xlane.xlu0 %402  ;;  %v4734_v58 = vpop.xlane.xlu1 %400 }
 0x14d   : > { %736 = vmatprep.subr.mxu0 %v621_v46  ;;  %4260 = vmatprep.subr.mxu1 %v621_v46  ;;  %v603_v60 = vmul.f32 %v459_v50, %v4731_v54  ;;  %v602_v63 = vmul.f32 %v458_v52, %v4731_v54  ;;  %v594_v5 = vmul.f32 %v450_v59, %v4734_v58  ;;  %v568_v46 = vld [vmem:[%s7839_s1 + $0x460] sm:$0xff] }
 0x14e   : > { %737 = vmatpush1.msra.mxu0 %v620_v49  ;;  %4276 = vmatpush1.msra.mxu1 %v620_v49  ;;  %v593_v19 = vmul.f32 %v449_v62, %v4734_v58  ;;  %v559_v49 = vld [vmem:[%s7839_s1 + $0x418] sm:$0xff]  ;;  %v556_v50 = vld [vmem:[%s7839_s1 + $0x400] sm:$0xff]  ;;  %v709_v52 = vmul.f32 %v565_v48, %v4612_v0  ;;  %v514_v48 = vld [vmem:[%s7839_s1 + $0x2b0] sm:$0xff] }
 0x14f   : > { %738 = vmatprep.subr.mxu0 %v612_v51  ;;  %4261 = vmatprep.subr.mxu1 %v612_v51  ;;  %v712_v51 = vmul.f32 %v568_v46, %v4612_v0  ;;  %v700_v59 = vmul.f32 %v556_v50, %v4624_v11  ;;  %v547_v62 = vld [vmem:[%s7839_s1 + $0x3b8] sm:$0xff]  ;;  %v658_v50 = vmul.f32 %v514_v48, %v4671_v55 }
 0x150   : > { %739 = vmatpush1.msra.mxu0 %v611_v56  ;;  %4277 = vmatpush1.msra.mxu1 %v611_v56  ;;  %v4751_v17 = vpop.xlane.xlu0 %398  ;;  %v4754_v21 = vpop.xlane.xlu1 %396  ;;  %v703_v56 = vmul.f32 %v559_v49, %v4624_v11  ;;  %v511_v49 = vld [vmem:[%s7839_s1 + $0x298] sm:$0xff] }
 0x151   : > { %740 = vmatprep.subr.mxu0 %v603_v60  ;;  %4262 = vmatprep.subr.mxu1 %v603_v60  ;;  %v585_v27 = vmul.f32 %v441_v2, %v4751_v17  ;;  %v584_v32 = vmul.f32 %v440_v9, %v4751_v17  ;;  %v576_v36 = vmul.f32 %v432_v23, %v4754_v21  ;;  %v550_v60 = vld [vmem:[%s7839_s1 + $0x3d0] sm:$0xff]  ;;  %v532_v23 = vld [vmem:[%s7839_s1 + $0x340] sm:$0xff] }
 0x152   : > { %741 = vmatpush1.msra.mxu0 %v602_v63  ;;  %4278 = vmatpush1.msra.mxu1 %v602_v63  ;;  %v575_v42 = vmul.f32 %v431_v30, %v4754_v21  ;;  %v538_v63 = vld [vmem:[%s7839_s1 + $0x370] sm:$0xff]  ;;  %v694_v2 = vmul.f32 %v550_v60, %v4614_v1  ;;  %v520_v30 = vld [vmem:[%s7839_s1 + $0x2e0] sm:$0xff]  ;;  %v493_v60 = vld [vmem:[%s7839_s1 + $0x208] sm:$0xff] }
 0x153   : > { %742 = vmatprep.subr.mxu0 %v594_v5  ;;  %4263 = vmatprep.subr.mxu1 %v594_v5  ;;  %v691_v5 = vmul.f32 %v547_v62, %v4614_v1  ;;  %v664_v46 = vmul.f32 %v520_v30, %v4654_v44  ;;  %v460_v30 = vld [vmem:[%s7839_s1 + $0x100] sm:$0xff] }
 0x154   : > { %743 = vmatpush1.msra.mxu0 %v593_v19  ;;  %4279 = vmatpush1.msra.mxu1 %v593_v19  ;;  %v682_v19 = vmul.f32 %v538_v63, %v4626_v13 }
 0x155   : > { %744 = vmatprep.subr.mxu0 %v585_v27  ;;  %4264 = vmatprep.subr.mxu1 %v585_v27  ;;  %v529_v27 = vld [vmem:[%s7839_s1 + $0x328] sm:$0xff] }
 0x156   : > { %745 = vmatpush1.msra.mxu0 %v584_v32  ;;  %4280 = vmatpush1.msra.mxu1 %v584_v32  ;;  %v676_v32 = vmul.f32 %v532_v23, %v4651_v40 }
 0x157   : > { %746 = vmatprep.subr.mxu0 %v576_v36  ;;  %4265 = vmatprep.subr.mxu1 %v576_v36  ;;  %v673_v36 = vmul.f32 %v529_v27, %v4651_v40 }
 0x158   : > { %747 = vmatpush1.msra.mxu0 %v575_v42  ;;  %4281 = vmatpush1.msra.mxu1 %v575_v42 }
 0x159   : > { %781 = vmatmul.mubr.f32.vlgmr.msra.gmra.mxu0 %v4461_v4  ;;  %1003 = vmatmul.mubr.f32.vlgmr.msra.gmra.mxu1 %v4537_v25  ;;  %v541_v25 = vld [vmem:[%s7839_s1 + $0x388] sm:$0xff] }
 0x15a   : > { %3903 = vmatprep.subr.mxu1 %v712_v51  ;;  %4007 = vmatprep.subr.mxu0 %v709_v52  ;;  %v685_v9 = vmul.f32 %v541_v25, %v4626_v13  ;;  %v637_v25 = vmul.f32 %v493_v60, %v4691_v7  ;;  %v545_v60 = vld [vmem:[%s7839_s1 + $0x3a8] sm:$0xff] }
 0x15b   : > { %3904 = vmatpush3.msra.mxu1 %v712_v51  ;;  %4008 = vmatpush3.msra.mxu0 %v709_v52  ;;  %v655_v51 = vmul.f32 %v511_v49, %v4671_v55  ;;  %v442_v49 = vld [vmem:[%s7839_s1 + $0x70] sm:$0xff] }
 0x15c   : > { %3905 = vmatprep.subr.mxu1 %v703_v56  ;;  %4009 = vmatprep.subr.mxu0 %v700_v59 }
 0x15d   : > { %786 = vmatprep.mubr.f32.mxu0 %v7856_v61  ;;  %1008 = vmatprep.mubr.f32.mxu1 %v7856_v61 }
 0x15e   : > { %3906 = vmatpush3.msra.mxu1 %v703_v56  ;;  %4010 = vmatpush3.msra.mxu0 %v700_v59  ;;  %v496_v59 = vld [vmem:[%s7839_s1 + $0x220] sm:$0xff] }
 0x15f   : > { %787 = vmatmul.mubr.f32.gmra.mxu0 %v4464_v6  ;;  %1009 = vmatmul.mubr.f32.gmra.mxu1 %v4540_v29  ;;  %v523_v29 = vld [vmem:[%s7839_s1 + $0x2f8] sm:$0xff]  ;;  %v640_v62 = vmul.f32 %v496_v59, %v4691_v7  ;;  %v570_v59 = vld [vmem:[%s7839_s1 + $0x470] sm:$0xff] }
 0x160   : > { %3907 = vmatprep.subr.mxu1 %v694_v2  ;;  %4011 = vmatprep.subr.mxu0 %v691_v5  ;;  %v667_v42 = vmul.f32 %v523_v29, %v4654_v44 }
 0x161   : > { %3908 = vmatpush3.msra.mxu1 %v694_v2  ;;  %4012 = vmatpush3.msra.mxu0 %v691_v5  ;;  %v478_v5 = vld [vmem:[%s7839_s1 + $0x190] sm:$0xff] }
 0x162   : > { %3909 = vmatprep.subr.mxu1 %v685_v9  ;;  %4013 = vmatprep.subr.mxu0 %v682_v19 }
 0x163   : > { %792 = vmatprep.mubr.f32.mxu0 %v7856_v61  ;;  %1014 = vmatprep.mubr.f32.mxu1 %v7856_v61 }
 0x164   : > { %3910 = vmatpush3.msra.mxu1 %v685_v9  ;;  %4014 = vmatpush3.msra.mxu0 %v682_v19  ;;  %v475_v9 = vld [vmem:[%s7839_s1 + $0x178] sm:$0xff]  ;;  %v622_v19 = vmul.f32 %v478_v5, %v4711_v34 }
 0x165   : > { %793 = vmatmul.mubr.f32.gmra.mxu0 %v4468_v8  ;;  %1015 = vmatmul.mubr.f32.gmra.mxu1 %v4544_v31  ;;  %v505_v8 = vld [vmem:[%s7839_s1 + $0x268] sm:$0xff]  ;;  %v502_v31 = vld [vmem:[%s7839_s1 + $0x250] sm:$0xff]  ;;  %v619_v23 = vmul.f32 %v475_v9, %v4711_v34  ;;  %v4994_v9 = vld [vmem:[%s4455_s23 + $0x38] sm:$0xff] }
 0x166   : > { %3911 = vmatprep.subr.mxu1 %v676_v32  ;;  %4015 = vmatprep.subr.mxu0 %v673_v36  ;;  %v649_v52 = vmul.f32 %v505_v8, %v4674_v57  ;;  %v646_v56 = vmul.f32 %v502_v31, %v4674_v57  ;;  %v439_v8 = vld [vmem:[%s7839_s1 + $0x58] sm:$0xff]  ;;  %v586_v31 = vmul.f32 %v442_v49, %v4751_v17  ;;  %v5034_v49 = vld [vmem:[%s4455_s23 + $0x88] sm:$0xff] }
 0x167   : > { %3912 = vmatpush3.msra.mxu1 %v676_v32  ;;  %4016 = vmatpush3.msra.mxu0 %v673_v36  ;;  %v457_v32 = vld [vmem:[%s7839_s1 + $0xe8] sm:$0xff]  ;;  %v604_v36 = vmul.f32 %v460_v30, %v4731_v54  ;;  %v5013_v30 = vld [vmem:[%s4455_s23 + $0x40] sm:$0xff] }
 0x168   : > { %3913 = vmatprep.subr.mxu1 %v667_v42  ;;  %4017 = vmatprep.subr.mxu0 %v664_v46 }
 0x169   : > { %798 = vmatprep.mubr.f32.mxu0 %v7856_v61  ;;  %1020 = vmatprep.mubr.f32.mxu1 %v7856_v61 }
 0x16a   : > { %3914 = vmatpush3.msra.mxu1 %v667_v42  ;;  %4018 = vmatpush3.msra.mxu0 %v664_v46  ;;  %v601_v42 = vmul.f32 %v457_v32, %v4731_v54 }
 0x16b   : > { %799 = vmatmul.mubr.f32.gmra.mxu0 %v4472_v10  ;;  %1021 = vmatmul.mubr.f32.gmra.mxu1 %v4548_v33  ;;  %v487_v10 = vld [vmem:[%s7839_s1 + $0x1d8] sm:$0xff]  ;;  %v484_v33 = vld [vmem:[%s7839_s1 + $0x1c0] sm:$0xff] }
 0x16c   : > { %3915 = vmatprep.subr.mxu1 %v658_v50  ;;  %4019 = vmatprep.subr.mxu0 %v655_v51  ;;  %v631_v63 = vmul.f32 %v487_v10, %v4694_v15  ;;  %v628_v2 = vmul.f32 %v484_v33, %v4694_v15  ;;  %v4968_v10 = vld [vmem:[%s4455_s23 + $0x28] sm:$0xff]  ;;  %v536_v33 = vld [vmem:[%s7839_s1 + $0x360] sm:$0xff] }
 0x16d   : > { %3916 = vmatpush3.msra.mxu1 %v658_v50  ;;  %4020 = vmatpush3.msra.mxu0 %v655_v51  ;;  %v583_v50 = vmul.f32 %v439_v8, %v4751_v17  ;;  %v680_v5 = vmul.f32 %v536_v33, %v4626_v13  ;;  %v5092_v33 = vld [vmem:[%s4455_s23 + $0x98] sm:$0xff] }
 0x16e   : > { %3917 = vmatprep.subr.mxu1 %v649_v52  ;;  %4021 = vmatprep.subr.mxu0 %v646_v56 }
 0x16f   : > { %804 = vmatprep.mubr.f32.mxu0 %v7856_v61  ;;  %1026 = vmatprep.mubr.f32.mxu1 %v7856_v61 }
 0x170   : > { %3918 = vmatpush3.msra.mxu1 %v649_v52  ;;  %4022 = vmatpush3.msra.mxu0 %v646_v56  ;;  %v564_v56 = vld [vmem:[%s7839_s1 + $0x440] sm:$0xff] }
 0x171   : > { %805 = vmatmul.mubr.f32.gmra.mxu0 %v4476_v12  ;;  %1027 = vmatmul.mubr.f32.gmra.mxu1 %v4552_v35  ;;  %v469_v12 = vld [vmem:[%s7839_s1 + $0x148] sm:$0xff]  ;;  %v466_v35 = vld [vmem:[%s7839_s1 + $0x130] sm:$0xff] }
 0x172   : > { %3919 = vmatprep.subr.mxu1 %v640_v62  ;;  %4023 = vmatprep.subr.mxu0 %v637_v25  ;;  %v613_v27 = vmul.f32 %v469_v12, %v4714_v38  ;;  %v610_v29 = vmul.f32 %v466_v35, %v4714_v38  ;;  %v519_v12 = vld [vmem:[%s7839_s1 + $0x2d8] sm:$0xff] }
 0x173   : > { %3920 = vmatpush3.msra.mxu1 %v640_v62  ;;  %4024 = vmatpush3.msra.mxu0 %v637_v25  ;;  %v689_v62 = vmul.f32 %v545_v60, %v4614_v1  ;;  %v528_v25 = vld [vmem:[%s7839_s1 + $0x320] sm:$0xff]  ;;  %v663_v32 = vmul.f32 %v519_v12, %v4654_v44  ;;  %v5084_v60 = vld [vmem:[%s4455_s23 + $0x68] sm:$0xff] }
 0x174   : > { %3921 = vmatprep.subr.mxu1 %v631_v63  ;;  %4025 = vmatprep.subr.mxu0 %v628_v2  ;;  %v672_v35 = vmul.f32 %v528_v25, %v4651_v40  ;;  %v456_v25 = vld [vmem:[%s7839_s1 + $0xe0] sm:$0xff] }
 0x175   : > { %810 = vmatprep.mubr.f32.mxu0 %v7856_v61  ;;  %1032 = vmatprep.mubr.f32.mxu1 %v7856_v61 }
 0x176   : > { %3922 = vmatpush3.msra.mxu1 %v631_v63  ;;  %4026 = vmatpush3.msra.mxu0 %v628_v2  ;;  %v4984_v63 = vld [vmem:[%s4455_s23 + $0x30] sm:$0xff] }
 0x177   : > { %811 = vmatmul.mubr.f32.gmra.mxu0 %v4480_v14  ;;  %1033 = vmatmul.mubr.f32.gmra.mxu1 %v4556_v37  ;;  %v451_v14 = vld [vmem:[%s7839_s1 + $0xb8] sm:$0xff]  ;;  %v448_v37 = vld [vmem:[%s7839_s1 + $0xa0] sm:$0xff] }
 0x178   : > { %3923 = vmatprep.subr.mxu1 %v622_v19  ;;  %4027 = vmatprep.subr.mxu0 %v619_v23  ;;  %v595_v46 = vmul.f32 %v451_v14, %v4734_v58  ;;  %v592_v48 = vmul.f32 %v448_v37, %v4734_v58  ;;  %v509_v14 = vld [vmem:[%s7839_s1 + $0x288] sm:$0xff] }
 0x179   : > { %3924 = vmatpush3.msra.mxu1 %v622_v19  ;;  %4028 = vmatpush3.msra.mxu0 %v619_v23  ;;  %v518_v19 = vld [vmem:[%s7839_s1 + $0x2d0] sm:$0xff]  ;;  %v5005_v23 = vld [vmem:[%s4455_s23 + $0x80] sm:$0xff]  ;;  %v653_v8 = vmul.f32 %v509_v14, %v4671_v55 }
 0x17a   : > { %3925 = vmatprep.subr.mxu1 %v613_v27  ;;  %4029 = vmatprep.subr.mxu0 %v610_v29  ;;  %v662_v37 = vmul.f32 %v518_v19, %v4654_v44  ;;  %v5113_v19 = vld [vmem:[%s4455_s23 + $0x78] sm:$0xff] }
 0x17b   : > { %816 = vmatprep.mubr.f32.mxu0 %v7856_v61  ;;  %1038 = vmatprep.mubr.f32.mxu1 %v7856_v61 }
 0x17c   : > { %3926 = vmatpush3.msra.mxu1 %v613_v27  ;;  %4030 = vmatpush3.msra.mxu0 %v610_v29  ;;  %v510_v29 = vld [vmem:[%s7839_s1 + $0x290] sm:$0xff] }
 0x17d   : > { %817 = vmatmul.mubr.f32.gmra.mxu0 %v4484_v16  ;;  %1039 = vmatmul.mubr.f32.gmra.mxu1 %v4560_v39  ;;  %v433_v16 = vld [vmem:[%s7839_s1 + $0x28] sm:$0xff]  ;;  %v430_v39 = vld [vmem:[%s7839_s1 + $0x10] sm:$0xff] }
 0x17e   : > { %3927 = vmatprep.subr.mxu1 %v604_v36  ;;  %4031 = vmatprep.subr.mxu0 %v601_v42  ;;  %v577_v51 = vmul.f32 %v433_v16, %v4754_v21  ;;  %v574_v52 = vmul.f32 %v430_v39, %v4754_v21  ;;  %v492_v16 = vld [vmem:[%s7839_s1 + $0x200] sm:$0xff]  ;;  %v5042_v39 = vld [vmem:[%s4455_s23 + $0x50] sm:$0xff] }
 0x17f   : > { %3928 = vmatpush3.msra.mxu1 %v604_v36  ;;  %4032 = vmatpush3.msra.mxu0 %v601_v42  ;;  %v501_v36 = vld [vmem:[%s7839_s1 + $0x248] sm:$0xff] }
 0x180   : > { %3929 = vmatprep.subr.mxu1 %v595_v46  ;;  %4033 = vmatprep.subr.mxu0 %v592_v48  ;;  %v5026_v42 = vld [vmem:[%s4455_s23 + $0x48] sm:$0xff] }
 0x181   : > { %822 = vmatprep.mubr.f32.mxu0 %v7856_v61  ;;  %1044 = vmatprep.mubr.f32.mxu1 %v7856_v61 }
 0x182   : > { %3930 = vmatpush3.msra.mxu1 %v595_v46  ;;  %4034 = vmatpush3.msra.mxu0 %v592_v48  ;;  %v654_v46 = vmul.f32 %v510_v29, %v4671_v55  ;;  %v500_v48 = vld [vmem:[%s7839_s1 + $0x240] sm:$0xff]  ;;  %v446_v29 = vld [vmem:[%s7839_s1 + $0x90] sm:$0xff] }
 0x183   : > { %823 = vmatmul.mubr.f32.gmra.mxu0 %v4488_v18  ;;  %1045 = vmatmul.mubr.f32.gmra.mxu1 %v4564_v41  ;;  %v708_v18 = vmul.f32 %v564_v56, %v4612_v0  ;;  %v714_v41 = vmul.f32 %v570_v59, %v4612_v0  ;;  %v5055_v56 = vld [vmem:[%s4455_s23 + $0x58] sm:$0xff]  ;;  %v636_v59 = vmul.f32 %v492_v16, %v4691_v7 }
 0x184   : > { %3931 = vmatprep.subr.mxu1 %v586_v31  ;;  %4035 = vmatprep.subr.mxu0 %v583_v50 }
 0x185   : > { %3932 = vmatpush3.msra.mxu1 %v586_v31  ;;  %4036 = vmatpush3.msra.mxu0 %v583_v50  ;;  %v645_v31 = vmul.f32 %v501_v36, %v4674_v57  ;;  %v491_v50 = vld [vmem:[%s7839_s1 + $0x1f8] sm:$0xff] }
 0x186   : > { %3933 = vmatprep.subr.mxu1 %v577_v51  ;;  %4037 = vmatprep.subr.mxu0 %v574_v52 }
 0x187   : > { %828 = vmatprep.mubr.f32.mxu0 %v7856_v61  ;;  %1050 = vmatprep.mubr.f32.mxu1 %v7856_v61 }
 0x188   : > { %3934 = vmatpush3.msra.mxu1 %v577_v51  ;;  %4038 = vmatpush3.msra.mxu0 %v574_v52  ;;  %v644_v51 = vmul.f32 %v500_v48, %v4674_v57  ;;  %v483_v52 = vld [vmem:[%s7839_s1 + $0x1b8] sm:$0xff]  ;;  %v590_v48 = vmul.f32 %v446_v29, %v4734_v58  ;;  %v5236_v29 = vld [vmem:[%s4455_s23 + $0x120] sm:$0xff] }
 0x189   : > { %829 = vmatmul.mubr.f32.gmra.mxu0 %v4492_v20  ;;  %1051 = vmatmul.mubr.f32.gmra.mxu1 %v4568_v43  ;;  %v563_v20 = vld [vmem:[%s7839_s1 + $0x438] sm:$0xff]  ;;  %v554_v43 = vld [vmem:[%s7839_s1 + $0x3f0] sm:$0xff] }
 0x18a   : > { %1374 = vmatprep.subr.mxu1 %v708_v18  ;;  %2032 = vmatprep.subr.mxu0 %v714_v41  ;;  %v482_v18 = vld [vmem:[%s7839_s1 + $0x1b0] sm:$0xff] }
 0x18b   : > { %834 = vmatprep.mubr.f32.mxu0 %v7856_v61  ;;  %1056 = vmatprep.mubr.f32.mxu1 %v7856_v61  ;;  %v5063_v41 = vld [vmem:[%s4455_s23 + $0x90] sm:$0xff] }
 0x18d   : > { %835 = vmatmul.mubr.f32.gmra.mxu0 %v4496_v22  ;;  %1057 = vmatmul.mubr.f32.gmra.mxu1 %v4572_v45  ;;  %v555_v22 = vld [vmem:[%s7839_s1 + $0x3f8] sm:$0xff]  ;;  %v546_v45 = vld [vmem:[%s7839_s1 + $0x3b0] sm:$0xff] }
 0x18e   : > { %840 = vmatprep.mubr.f32.mxu0 %v7856_v61  ;;  %1062 = vmatprep.mubr.f32.mxu1 %v7856_v61 }
 0x191   : > { %841 = vmatmul.mubr.f32.gmra.mxu0 %v4500_v24  ;;  %1063 = vmatmul.mubr.f32.gmra.mxu1 %v4576_v47  ;;  %v707_v24 = vmul.f32 %v563_v20, %v4612_v0  ;;  %v698_v47 = vmul.f32 %v554_v43, %v4624_v11  ;;  %v635_v20 = vmul.f32 %v491_v50, %v4691_v7  ;;  %v5071_v43 = vld [vmem:[%s4455_s23 + $0x60] sm:$0xff]  ;;  %v5144_v50 = vld [vmem:[%s4455_s23 + $0xa8] sm:$0xff] }
 0x192   : > { %846 = vmatprep.mubr.f32.mxu0 %v7856_v61  ;;  %3935 = vmatprep.mubr.f32.mxu1 %v4461_v4  ;;  %v699_v4 = vmul.f32 %v555_v22, %v4624_v11  ;;  %v474_v22 = vld [vmem:[%s7839_s1 + $0x170] sm:$0xff] }
 0x195   : > { %847 = vmatmul.mubr.f32.gmra.mxu0 %v4504_v26  ;;  %3936 = vmatmul.mubr.f32.vlgmr.msra.gmra.mxu1 %v4464_v6  ;;  %v690_v6 = vmul.f32 %v546_v45, %v4614_v1  ;;  %v537_v26 = vld [vmem:[%s7839_s1 + $0x368] sm:$0xff] }
 0x196   : > { %1375 = vmatpush1.msra.mxu1 %v707_v24  ;;  %852 = vmatprep.mubr.f32.mxu0 %v7856_v61  ;;  %v681_v2 = vmul.f32 %v537_v26, %v4626_v13  ;;  %v627_v24 = vmul.f32 %v483_v52, %v4694_v15  ;;  %v473_v45 = vld [vmem:[%s7839_s1 + $0x168] sm:$0xff]  ;;  %v464_v26 = vld [vmem:[%s7839_s1 + $0x120] sm:$0xff]  ;;  %v571_v52 = vld [vmem:[%s7839_s1 + $0x478] sm:$0xff] }
 0x197   : > { %1376 = vmatprep.subr.mxu1 %v699_v4  ;;  %3938 = vmatprep.mubr.f32.mxu1 %v4968_v10  ;;  %v626_v4 = vmul.f32 %v482_v18, %v4694_v15  ;;  %v608_v12 = vmul.f32 %v464_v26, %v4714_v38  ;;  %v5196_v26 = vld [vmem:[%s4455_s23 + $0xe0] sm:$0xff] }
 0x198   : > { %1377 = vmatpush1.msra.mxu1 %v698_v47  ;;  %v465_v47 = vld [vmem:[%s7839_s1 + $0x128] sm:$0xff] }
 0x199   : > { %1378 = vmatprep.subr.mxu1 %v690_v6  ;;  %853 = vmatmul.mubr.f32.gmra.mxu0 %v4508_v28  ;;  %v527_v28 = vld [vmem:[%s7839_s1 + $0x318] sm:$0xff]  ;;  %v618_v6 = vmul.f32 %v474_v22, %v4711_v34  ;;  %v5160_v22 = vld [vmem:[%s4455_s23 + $0xb0] sm:$0xff] }
 0x19a   : > { %3939 = vmatmul.mubr.f32.gmra.mxu1 %v4984_v63  ;;  %858 = vmatprep.mubr.f32.mxu0 %v7856_v61  ;;  %v671_v27 = vmul.f32 %v527_v28, %v4651_v40  ;;  %v609_v28 = vmul.f32 %v465_v47, %v4714_v38  ;;  %v5186_v47 = vld [vmem:[%s4455_s23 + $0xd0] sm:$0xff] }
 0x19b   : > { %1379 = vmatpush1.msra.mxu1 %v689_v62  ;;  %3941 = vmatprep.mubr.f32.mxu1 %v4994_v9  ;;  %v617_v62 = vmul.f32 %v473_v45, %v4711_v34  ;;  %v5175_v45 = vld [vmem:[%s4455_s23 + $0xc0] sm:$0xff] }
 0x19c   : > { %1380 = vmatprep.subr.mxu1 %v681_v2  ;;  %v5100_v2 = vld [vmem:[%s4455_s23 + $0x70] sm:$0xff] }
 0x19d   : > { %1381 = vmatpush1.msra.mxu1 %v680_v5  ;;  %859 = vmatmul.mubr.f32.gmra.mxu0 %v5005_v23  ;;  %v455_v5 = vld [vmem:[%s7839_s1 + $0xd8] sm:$0xff] }
 0x19e   : > { %1382 = vmatprep.subr.mxu1 %v672_v35  ;;  %3942 = vmatmul.mubr.f32.gmra.mxu1 %v5013_v30  ;;  %v447_v35 = vld [vmem:[%s7839_s1 + $0x98] sm:$0xff]  ;;  %v599_v14 = vmul.f32 %v455_v5, %v4731_v54  ;;  %v5216_v5 = vld [vmem:[%s4455_s23 + $0x100] sm:$0xff] }
 0x19f   : > { %1383 = vmatpush1.msra.mxu1 %v671_v27  ;;  %864 = vmatprep.mubr.f32.mxu0 %v7856_v61  ;;  %v600_v27 = vmul.f32 %v456_v25, %v4731_v54  ;;  %v591_v36 = vmul.f32 %v447_v35, %v4734_v58  ;;  %v5206_v25 = vld [vmem:[%s4455_s23 + $0xf0] sm:$0xff] }
 0x1a0   : > { %1384 = vmatprep.subr.mxu1 %v663_v32  ;;  %3944 = vmatprep.mubr.f32.mxu1 %v5026_v42  ;;  %v5121_v32 = vld [vmem:[%s4455_s23 + $0xa0] sm:$0xff]  ;;  %v5226_v35 = vld [vmem:[%s4455_s23 + $0x110] sm:$0xff] }
 0x1a1   : > { %1385 = vmatpush1.msra.mxu1 %v662_v37  ;;  %865 = vmatmul.mubr.f32.gmra.mxu0 %v5034_v49  ;;  %v438_v37 = vld [vmem:[%s7839_s1 + $0x50] sm:$0xff] }
 0x1a2   : > { %1386 = vmatprep.subr.mxu1 %v654_v46  ;;  %3945 = vmatmul.mubr.f32.gmra.mxu1 %v5042_v39  ;;  %v437_v46 = vld [vmem:[%s7839_s1 + $0x48] sm:$0xff]  ;;  %v582_v16 = vmul.f32 %v438_v37, %v4751_v17  ;;  %v5246_v37 = vld [vmem:[%s4455_s23 + $0x130] sm:$0xff] }
 0x1a3   : > { %1387 = vmatpush1.msra.mxu1 %v653_v8  ;;  %870 = vmatprep.mubr.f32.mxu0 %v7856_v61  ;;  %v429_v8 = vld [vmem:[%s7839_s1 + $0x8] sm:$0xff] }
 0x1a4   : > { %1388 = vmatprep.subr.mxu1 %v645_v31  ;;  %3947 = vmatprep.mubr.f32.mxu1 %v5055_v56  ;;  %v428_v31 = vld [vmem:[%s7839_s1] sm:$0xff] }
 0x1a5   : > { %1389 = vmatpush1.msra.mxu1 %v644_v51  ;;  %871 = vmatmul.mubr.f32.gmra.mxu0 %v5063_v41  ;;  %v581_v51 = vmul.f32 %v437_v46, %v4751_v17  ;;  %v572_v18 = vmul.f32 %v428_v31, %v4754_v21  ;;  %v5256_v46 = vld [vmem:[%s4455_s23 + $0x140] sm:$0xff] }
 0x1a6   : > { %1390 = vmatprep.subr.mxu1 %v636_v59  ;;  %3948 = vmatmul.mubr.f32.gmra.mxu1 %v5071_v43  ;;  %v573_v59 = vmul.f32 %v429_v8, %v4754_v21  ;;  %7879 = vst [vmem:[#allocation5_spill] sm:$0xff] %v5256_v46  ;;  %v5266_v8 = vld [vmem:[%s4455_s23 + $0x150] sm:$0xff]  ;;  %v5276_v31 = vld [vmem:[%s4455_s23 + $0x160] sm:$0xff] }
 0x1a7   : > { %1391 = vmatpush1.msra.mxu1 %v635_v20  ;;  %876 = vmatprep.mubr.f32.mxu0 %v7856_v61  ;;  %v5157_v20 = vmul.f32 %v571_v52, %v4612_v0  ;;  %7881 = vst [vmem:[#allocation7_spill] sm:$0xff] %v5266_v8  ;;  %7883 = vst [vmem:[#allocation9_spill] sm:$0xff] %v5276_v31  ;;  %v5286_v52 = vld [vmem:[%s4455_s23 + $0x170] sm:$0xff] }
 0x1a8   : > { %1392 = vmatprep.subr.mxu1 %v627_v24  ;;  %3950 = vmatprep.mubr.f32.mxu1 %v5084_v60  ;;  %v5168_v24 = vld [vmem:[%s4455_s23 + $0xb8] sm:$0xff]  ;;  %7885 = vst [vmem:[#allocation11_spill] sm:$0xff] %v5286_v52 }
 0x1a9   : > { %1393 = vmatpush1.msra.mxu1 %v626_v4  ;;  %877 = vmatmul.mubr.f32.gmra.mxu0 %v5092_v33  ;;  %v5181_v4 = vld [vmem:[%s4455_s23 + $0xc8] sm:$0xff] }
 0x1aa   : > { %1394 = vmatprep.subr.mxu1 %v618_v6  ;;  %3951 = vmatmul.mubr.f32.gmra.mxu1 %v5100_v2  ;;  %v5191_v6 = vld [vmem:[%s4455_s23 + $0xd8] sm:$0xff] }
 0x1ab   : > { %1395 = vmatpush1.msra.mxu1 %v617_v62  ;;  %882 = vmatprep.mubr.f32.mxu0 %v7856_v61  ;;  %v5201_v62 = vld [vmem:[%s4455_s23 + $0xe8] sm:$0xff] }
 0x1ac   : > { %1396 = vmatprep.subr.mxu1 %v609_v28  ;;  %3953 = vmatprep.mubr.f32.mxu1 %v5113_v19  ;;  %v5211_v28 = vld [vmem:[%s4455_s23 + $0xf8] sm:$0xff] }
 0x1ad   : > { %1397 = vmatpush1.msra.mxu1 %v608_v12  ;;  %883 = vmatmul.mubr.f32.gmra.mxu0 %v5121_v32  ;;  %v5221_v12 = vld [vmem:[%s4455_s23 + $0x108] sm:$0xff] }
 0x1ae   : > { %1398 = vmatprep.subr.mxu1 %v600_v27  ;;  %3954 = vmatmul.mubr.f32.gmra.mxu1 %v5005_v23  ;;  %v5231_v27 = vld [vmem:[%s4455_s23 + $0x118] sm:$0xff] }
 0x1af   : > { %1399 = vmatpush1.msra.mxu1 %v599_v14  ;;  %888 = vmatprep.mubr.f32.mxu0 %v7856_v61  ;;  %v5241_v14 = vld [vmem:[%s4455_s23 + $0x128] sm:$0xff] }
 0x1b0   : > { %1400 = vmatprep.subr.mxu1 %v591_v36  ;;  %3956 = vmatprep.mubr.f32.mxu1 %v5034_v49  ;;  %v5251_v36 = vld [vmem:[%s4455_s23 + $0x138] sm:$0xff] }
 0x1b1   : > { %1401 = vmatpush1.msra.mxu1 %v590_v48  ;;  %889 = vmatmul.mubr.f32.gmra.mxu0 %v5144_v50  ;;  %7878 = vst [vmem:[#allocation4_spill] sm:$0xff] %v5251_v36  ;;  %v5261_v48 = vld [vmem:[%s4455_s23 + $0x148] sm:$0xff] }
 0x1b2   : > { %1402 = vmatprep.subr.mxu1 %v582_v16  ;;  %3957 = vmatmul.mubr.f32.gmra.mxu1 %v5063_v41  ;;  %7880 = vst [vmem:[#allocation6_spill] sm:$0xff] %v5261_v48  ;;  %v5271_v16 = vld [vmem:[%s4455_s23 + $0x158] sm:$0xff] }
 0x1b3   : > { %1403 = vmatpush1.msra.mxu1 %v581_v51  ;;  %894 = vmatprep.mubr.f32.mxu0 %v7856_v61  ;;  %7882 = vst [vmem:[#allocation8_spill] sm:$0xff] %v5271_v16  ;;  %v5281_v51 = vld [vmem:[%s4455_s23 + $0x168] sm:$0xff] }
 0x1b4   : > { %1404 = vmatprep.subr.mxu1 %v573_v59  ;;  %3959 = vmatprep.mubr.f32.mxu1 %v5092_v33  ;;  %7884 = vst [vmem:[#allocation10_spill] sm:$0xff] %v5281_v51  ;;  %v5291_v59 = vld [vmem:[%s4455_s23 + $0x178] sm:$0xff] }
 0x1b5   : > { %1405 = vmatpush1.msra.mxu1 %v572_v18  ;;  %895 = vmatmul.mubr.f32.gmra.mxu0 %v5160_v22  ;;  %7886 = vst [vmem:[#allocation12_spill] sm:$0xff] %v5291_v59  ;;  %v4345_v18 = vld [vmem:[%s4455_s23 + $0x180] sm:$0xff] }
 0x1b6   : > { %4111 = vmatprep.subr.mxu1 %v5157_v20  ;;  %3960 = vmatmul.mubr.f32.gmra.mxu1 %v5121_v32 }
 0x1b7   : > { %900 = vmatprep.mubr.f32.mxu0 %v7856_v61  ;;  %3962 = vmatprep.mubr.f32.mxu1 %v5144_v50 }
 0x1b9   : > { %901 = vmatmul.mubr.f32.gmra.mxu0 %v5168_v24 }
 0x1ba   : > { %3963 = vmatmul.mubr.f32.gmra.mxu1 %v5160_v22  ;;  %906 = vmatprep.mubr.f32.mxu0 %v7856_v61 }
 0x1bb   : > { %3965 = vmatprep.mubr.f32.mxu1 %v5168_v24 }
 0x1bd   : > { %907 = vmatmul.mubr.f32.gmra.mxu0 %v5175_v45 }
 0x1be   : > { %3966 = vmatmul.mubr.f32.gmra.mxu1 %v5175_v45  ;;  %912 = vmatprep.mubr.f32.mxu0 %v7856_v61 }
 0x1bf   : > { %3968 = vmatprep.mubr.f32.mxu1 %v5181_v4 }
 0x1c1   : > { %913 = vmatmul.mubr.f32.gmra.mxu0 %v5181_v4 }
 0x1c2   : > { %3969 = vmatmul.mubr.f32.gmra.mxu1 %v5186_v47  ;;  %918 = vmatprep.mubr.f32.mxu0 %v7856_v61 }
 0x1c3   : > { %3971 = vmatprep.mubr.f32.mxu1 %v5191_v6 }
 0x1c5   : > { %919 = vmatmul.mubr.f32.gmra.mxu0 %v5186_v47 }
 0x1c6   : > { %3972 = vmatmul.mubr.f32.gmra.mxu1 %v5196_v26  ;;  %924 = vmatprep.mubr.f32.mxu0 %v7856_v61 }
 0x1c7   : > { %3974 = vmatprep.mubr.f32.mxu1 %v5201_v62 }
 0x1c9   : > { %925 = vmatmul.mubr.f32.gmra.mxu0 %v5191_v6 }
 0x1ca   : > { %3975 = vmatmul.mubr.f32.gmra.mxu1 %v5206_v25  ;;  %930 = vmatprep.mubr.f32.mxu0 %v7856_v61 }
 0x1cb   : > { %3977 = vmatprep.mubr.f32.mxu1 %v5211_v28 }
 0x1cd   : > { %931 = vmatmul.mubr.f32.gmra.mxu0 %v5196_v26 }
 0x1ce   : > { %3978 = vmatmul.mubr.f32.gmra.mxu1 %v5216_v5  ;;  %936 = vmatprep.mubr.f32.mxu0 %v7856_v61 }
 0x1cf   : > { %3980 = vmatprep.mubr.f32.mxu1 %v5221_v12 }
 0x1d1   : > { %937 = vmatmul.mubr.f32.gmra.mxu0 %v5201_v62 }
 0x1d2   : > { %3981 = vmatmul.mubr.f32.gmra.mxu1 %v5226_v35  ;;  %942 = vmatprep.mubr.f32.mxu0 %v7856_v61 }
 0x1d3   : > { %3983 = vmatprep.mubr.f32.mxu1 %v5231_v27 }
 0x1d5   : > { %943 = vmatmul.mubr.f32.gmra.mxu0 %v5206_v25 }
 0x1d6   : > { %3984 = vmatmul.mubr.f32.gmra.mxu1 %v5236_v29  ;;  %948 = vmatprep.mubr.f32.mxu0 %v7856_v61 }
 0x1d7   : > { %3986 = vmatprep.mubr.f32.mxu1 %v5241_v14 }
 0x1d9   : > { %949 = vmatmul.mubr.f32.gmra.mxu0 %v5211_v28 }
 0x1da   : > { %3987 = vmatmul.mubr.f32.gmra.mxu1 %v5246_v37  ;;  %954 = vmatprep.mubr.f32.mxu0 %v7856_v61 }
 0x1db   : > { %3989 = vmatprep.mubr.f32.mxu1 %v5251_v36 }
 0x1dd   : > { %955 = vmatmul.mubr.f32.gmra.mxu0 %v5216_v5 }
 0x1de   : > { %3990 = vmatmul.mubr.f32.gmra.mxu1 %v5256_v46  ;;  %960 = vmatprep.mubr.f32.mxu0 %v7856_v61 }
 0x1df   : > { %3992 = vmatprep.mubr.f32.mxu1 %v5261_v48  ;;  %v4350_v48 = vld [vmem:[%s4455_s23 + $0x10] sm:$0xff] }
 0x1e1   : > { %961 = vmatmul.mubr.f32.gmra.mxu0 %v5221_v12 }
 0x1e2   : > { %3993 = vmatmul.mubr.f32.gmra.mxu1 %v5266_v8  ;;  %966 = vmatprep.mubr.f32.mxu0 %v7856_v61 }
 0x1e3   : > { %3995 = vmatprep.mubr.f32.mxu1 %v5271_v16  ;;  %v7887_v16 = vmov 0.0  }
 0x1e5   : > { %967 = vmatmul.mubr.f32.gmra.mxu0 %v5226_v35 }
 0x1e6   : > { %3996 = vmatmul.mubr.f32.gmra.mxu1 %v5276_v31  ;;  %972 = vmatprep.mubr.f32.mxu0 %v7856_v61  ;;  %v4349_v31 = vld [vmem:[%s4455_s23 + $0x8] sm:$0xff] }
 0x1e7   : > { %3998 = vmatprep.mubr.f32.mxu1 %v5281_v51 }
 0x1e9   : > { %973 = vmatmul.mubr.f32.gmra.mxu0 %v5231_v27 }
 0x1ea   : > { %3999 = vmatmul.mubr.f32.gmra.mxu1 %v5286_v52  ;;  %978 = vmatprep.mubr.f32.mxu0 %v7856_v61 }
 0x1eb   : > { %4001 = vmatprep.mubr.f32.mxu1 %v5291_v59  ;;  %v562_v59 = vld [vmem:[%s7839_s1 + $0x430] sm:$0xff] }
 0x1ec   : > { %v706_v52 = vmul.f32 %v562_v59, %v4624_v11  ;;  %v535_v59 = vld [vmem:[%s7839_s1 + $0x358] sm:$0xff] }
 0x1ed   : > { %979 = vmatmul.mubr.f32.gmra.mxu0 %v5236_v29  ;;  %v679_v8 = vmul.f32 %v535_v59, %v4651_v40  ;;  %v517_v59 = vld [vmem:[%s7839_s1 + $0x2c8] sm:$0xff] }
 0x1ee   : > { %4002 = vmatmul.mubr.f32.gmra.mxu1 %v4345_v18  ;;  %984 = vmatprep.mubr.f32.mxu0 %v7856_v61  ;;  %v553_v18 = vld [vmem:[%s7839_s1 + $0x3e8] sm:$0xff] }
 0x1ef   : > { %4004 = vmatprep.mubr.f32.mxu1 %v4346_v53  ;;  %v4348_v53 = vld [vmem:[%s4455_s23] sm:$0xff]  ;;  %v697_v51 = vmul.f32 %v553_v18, %v4614_v1  ;;  %v526_v18 = vld [vmem:[%s7839_s1 + $0x310] sm:$0xff] }
 0x1f1   : > { %985 = vmatmul.mubr.f32.gmra.mxu0 %v5241_v14 }
 0x1f2   : > { %4005 = vmatmul.mubr.f32.gmra.mxu1 %v4347_v3  ;;  %990 = vmatprep.mubr.f32.mxu0 %v7856_v61  ;;  %v544_v3 = vld [vmem:[%s7839_s1 + $0x3a0] sm:$0xff] }
 0x1f3   : > { %1438 = vmatprep.mubr.f32.mxu1 %v7856_v61 }
 0x1f5   : > { %991 = vmatmul.mubr.f32.gmra.mxu0 %v5246_v37 }
 0x1f6   : > { %1439 = vmatmul.mubr.f32.vlgmr.msra.gmra.mxu1 %v4348_v53  ;;  %996 = vmatprep.mubr.f32.mxu0 %v7856_v61 }
 0x1f7   : > { %4112 = vmatpush3.msra.mxu1 %v5157_v20  ;;  %1444 = vmatprep.mubr.f32.mxu1 %v7856_v61  ;;  %v688_v20 = vmul.f32 %v544_v3, %v4626_v13  ;;  %v569_v61 = vld [vmem:[%s7839_s1 + $0x468] sm:$0xff]  ;;  %v560_v3 = vld [vmem:[%s7839_s1 + $0x420] sm:$0xff] }
 0x1f8   : > { %4113 = vmatprep.subr.mxu1 %v706_v52 }
 0x1f9   : > { %4114 = vmatpush3.msra.mxu1 %v706_v52  ;;  %997 = vmatmul.mubr.f32.gmra.mxu0 %v5251_v36  ;;  %v561_v52 = vld [vmem:[%s7839_s1 + $0x428] sm:$0xff]  ;;  %v670_v36 = vmul.f32 %v526_v18, %v4654_v44 }
 0x1fa   : > { %4115 = vmatprep.subr.mxu1 %v697_v51  ;;  %1445 = vmatmul.mubr.f32.gmra.mxu1 %v4349_v31  ;;  %v705_v46 = vmul.f32 %v561_v52, %v4624_v11  ;;  %v543_v52 = vld [vmem:[%s7839_s1 + $0x398] sm:$0xff] }
 0x1fb   : > { %4116 = vmatpush3.msra.mxu1 %v697_v51  ;;  %1450 = vmatprep.mubr.f32.mxu1 %v7887_v16  ;;  %v713_v51 = vmul.f32 %v569_v61, %v4612_v0  ;;  %v551_v61 = vld [vmem:[%s7839_s1 + $0x3d8] sm:$0xff]  ;;  %v687_v18 = vmul.f32 %v543_v52, %v4626_v13 }
 0x1fc   : > { %4117 = vmatprep.subr.mxu1 %v688_v20  ;;  %4039 = vmatprep.mubr.f32.mxu0 %v4348_v53  ;;  %v552_v53 = vld [vmem:[%s7839_s1 + $0x3e0] sm:$0xff] }
 0x1fd   : > { %4118 = vmatpush3.msra.mxu1 %v688_v20  ;;  %4040 = vmatmul.mubr.f32.vlgmr.msra.gmra.mxu0 %v4349_v31  ;;  %v704_v31 = vmul.f32 %v560_v3, %v4624_v11  ;;  %v696_v0 = vmul.f32 %v552_v53, %v4614_v1  ;;  %v661_v20 = vmul.f32 %v517_v59, %v4671_v55  ;;  %v508_v11 = vld [vmem:[%s7839_s1 + $0x280] sm:$0xff]  ;;  %v533_v53 = vld [vmem:[%s7839_s1 + $0x348] sm:$0xff] }
 0x1fe   : > { %4119 = vmatprep.subr.mxu1 %v679_v8  ;;  %1451 = vmatmul.mubr.f32.gmra.mxu1 %v4350_v48  ;;  %v652_v3 = vmul.f32 %v508_v11, %v4674_v57  ;;  %v677_v52 = vmul.f32 %v533_v53, %v4651_v40 }
 0x1ff   : > { %2033 = vmatpush1.msra.mxu0 %v713_v51  ;;  %4120 = vmatpush3.msra.mxu1 %v679_v8  ;;  %v4351_v8 = vld [vmem:[%s4455_s23 + $0x18] sm:$0xff] }
 0x200   : > { %2034 = vmatprep.subr.mxu0 %v705_v46  ;;  %4121 = vmatprep.subr.mxu1 %v670_v36  ;;  %v542_v46 = vld [vmem:[%s7839_s1 + $0x390] sm:$0xff]  ;;  %v499_v51 = vld [vmem:[%s7839_s1 + $0x238] sm:$0xff] }
 0x201   : > { %2035 = vmatpush1.msra.mxu0 %v704_v31  ;;  %4122 = vmatpush3.msra.mxu1 %v670_v36  ;;  %v695_v36 = vmul.f32 %v551_v61, %v4614_v1  ;;  %v686_v1 = vmul.f32 %v542_v46, %v4626_v13  ;;  %v643_v31 = vmul.f32 %v499_v51, %v4691_v7  ;;  %v525_v61 = vld [vmem:[%s7839_s1 + $0x308] sm:$0xff]  ;;  %v490_v13 = vld [vmem:[%s7839_s1 + $0x1f0] sm:$0xff]  ;;  %v507_v51 = vld [vmem:[%s7839_s1 + $0x278] sm:$0xff] }
 0x202   : > { %1456 = vmatprep.mubr.f32.mxu1 %v7887_v16  ;;  %4042 = vmatprep.mubr.f32.mxu0 %v4350_v48  ;;  %v534_v48 = vld [vmem:[%s7839_s1 + $0x350] sm:$0xff]  ;;  %v669_v11 = vmul.f32 %v525_v61, %v4654_v44  ;;  %v634_v46 = vmul.f32 %v490_v13, %v4694_v15  ;;  %v463_v13 = vld [vmem:[%s7839_s1 + $0x118] sm:$0xff] }
 0x203   : > { %2036 = vmatprep.subr.mxu0 %v696_v0  ;;  %4123 = vmatprep.subr.mxu1 %v661_v20  ;;  %v678_v59 = vmul.f32 %v534_v48, %v4651_v40  ;;  %v4352_v0 = vld [vmem:[%s4455_s23 + $0x20] sm:$0xff]  ;;  %v515_v40 = vld [vmem:[%s7839_s1 + $0x2b8] sm:$0xff]  ;;  %v498_v61 = vld [vmem:[%s7839_s1 + $0x230] sm:$0xff] }
 0x204   : > { %1457 = vmatmul.mubr.f32.gmra.mxu1 %v4351_v8  ;;  %4043 = vmatmul.mubr.f32.gmra.mxu0 %v4351_v8  ;;  %v481_v8 = vld [vmem:[%s7839_s1 + $0x1a8] sm:$0xff]  ;;  %v659_v53 = vmul.f32 %v515_v40, %v4671_v55 }
 0x205   : > { %2037 = vmatpush1.msra.mxu0 %v695_v36  ;;  %4124 = vmatpush3.msra.mxu1 %v661_v20  ;;  %v524_v20 = vld [vmem:[%s7839_s1 + $0x300] sm:$0xff]  ;;  %v625_v48 = vmul.f32 %v481_v8, %v4711_v34  ;;  %v445_v40 = vld [vmem:[%s7839_s1 + $0x88] sm:$0xff] }
 0x206   : > { %2038 = vmatprep.subr.mxu0 %v687_v18  ;;  %4125 = vmatprep.subr.mxu1 %v652_v3  ;;  %v516_v36 = vld [vmem:[%s7839_s1 + $0x2c0] sm:$0xff]  ;;  %v668_v18 = vmul.f32 %v524_v20, %v4654_v44  ;;  %v607_v20 = vmul.f32 %v463_v13, %v4731_v54 }
 0x207   : > { %2039 = vmatpush1.msra.mxu0 %v686_v1  ;;  %4126 = vmatpush3.msra.mxu1 %v652_v3  ;;  %v660_v3 = vmul.f32 %v516_v36, %v4671_v55  ;;  %v472_v44 = vld [vmem:[%s7839_s1 + $0x160] sm:$0xff]  ;;  %v506_v1 = vld [vmem:[%s7839_s1 + $0x270] sm:$0xff] }
 0x208   : > { %1462 = vmatprep.mubr.f32.mxu1 %v7887_v16  ;;  %4045 = vmatprep.mubr.f32.mxu0 %v4352_v0  ;;  %v650_v55 = vmul.f32 %v506_v1, %v4674_v57 }
 0x209   : > { %2040 = vmatprep.subr.mxu0 %v678_v59  ;;  %4127 = vmatprep.subr.mxu1 %v643_v31  ;;  %v651_v59 = vmul.f32 %v507_v51, %v4674_v57  ;;  %v454_v57 = vld [vmem:[%s7839_s1 + $0xd0] sm:$0xff]  ;;  %v589_v51 = vmul.f32 %v445_v40, %v4751_v17 }
 0x20a   : > { %1463 = vmatmul.mubr.f32.gmra.mxu1 %v4352_v0  ;;  %4046 = vmatmul.mubr.f32.gmra.mxu0 %v4968_v10  ;;  %v642_v0 = vmul.f32 %v498_v61, %v4691_v7  ;;  %v598_v8 = vmul.f32 %v454_v57, %v4734_v58  ;;  %v453_v57 = vld [vmem:[%s7839_s1 + $0xc8] sm:$0xff] }
 0x20b   : > { %2041 = vmatpush1.msra.mxu0 %v677_v52  ;;  %4128 = vmatpush3.msra.mxu1 %v643_v31  ;;  %v616_v31 = vmul.f32 %v472_v44, %v4714_v38  ;;  %v489_v52 = vld [vmem:[%s7839_s1 + $0x1e8] sm:$0xff]  ;;  %v471_v44 = vld [vmem:[%s7839_s1 + $0x158] sm:$0xff] }
 0x20c   : > { %2042 = vmatprep.subr.mxu0 %v669_v11  ;;  %4129 = vmatprep.subr.mxu1 %v634_v46  ;;  %v488_v11 = vld [vmem:[%s7839_s1 + $0x1e0] sm:$0xff]  ;;  %v633_v36 = vmul.f32 %v489_v52, %v4694_v15 }
 0x20d   : > { %2043 = vmatpush1.msra.mxu0 %v668_v18  ;;  %4130 = vmatpush3.msra.mxu1 %v634_v46  ;;  %v480_v18 = vld [vmem:[%s7839_s1 + $0x1a0] sm:$0xff] }
 0x20e   : > { %1468 = vmatprep.mubr.f32.mxu1 %v7887_v16  ;;  %4048 = vmatprep.mubr.f32.mxu0 %v4984_v63 }
 0x20f   : > { %2044 = vmatprep.subr.mxu0 %v660_v3  ;;  %4131 = vmatprep.subr.mxu1 %v625_v48  ;;  %v479_v3 = vld [vmem:[%s7839_s1 + $0x198] sm:$0xff] }
 0x210   : > { %1469 = vmatmul.mubr.f32.gmra.mxu1 %v4968_v10  ;;  %4049 = vmatmul.mubr.f32.gmra.mxu0 %v4994_v9  ;;  %v497_v10 = vld [vmem:[%s7839_s1 + $0x228] sm:$0xff] }
 0x211   : > { %2045 = vmatpush1.msra.mxu0 %v659_v53  ;;  %4132 = vmatpush3.msra.mxu1 %v625_v48  ;;  %v641_v46 = vmul.f32 %v497_v10, %v4691_v7  ;;  %v632_v7 = vmul.f32 %v488_v11, %v4694_v15  ;;  %v624_v48 = vmul.f32 %v480_v18, %v4711_v34  ;;  %v436_v15 = vld [vmem:[%s7839_s1 + $0x40] sm:$0xff] }
 0x212   : > { %2046 = vmatprep.subr.mxu0 %v651_v59  ;;  %4133 = vmatprep.subr.mxu1 %v616_v31  ;;  %v470_v59 = vld [vmem:[%s7839_s1 + $0x150] sm:$0xff]  ;;  %v580_v10 = vmul.f32 %v436_v15, %v4754_v21 }
 0x213   : > { %2047 = vmatpush1.msra.mxu0 %v650_v55  ;;  %4134 = vmatpush3.msra.mxu1 %v616_v31  ;;  %v623_v31 = vmul.f32 %v479_v3, %v4711_v34  ;;  %v615_v55 = vmul.f32 %v471_v44, %v4714_v38  ;;  %v614_v34 = vmul.f32 %v470_v59, %v4714_v38  ;;  %v452_v38 = vld [vmem:[%s7839_s1 + $0xc0] sm:$0xff]  ;;  %v443_v3 = vld [vmem:[%s7839_s1 + $0x78] sm:$0xff]  ;;  %v434_v44 = vld [vmem:[%s7839_s1 + $0x30] sm:$0xff] }
 0x214   : > { %1474 = vmatprep.mubr.f32.mxu1 %v7887_v16  ;;  %4051 = vmatprep.mubr.f32.mxu0 %v5013_v30 }
 0x215   : > { %2048 = vmatprep.subr.mxu0 %v642_v0  ;;  %4135 = vmatprep.subr.mxu1 %v607_v20  ;;  %v462_v0 = vld [vmem:[%s7839_s1 + $0x110] sm:$0xff] }
 0x216   : > { %1475 = vmatmul.mubr.f32.gmra.mxu1 %v4984_v63  ;;  %4052 = vmatmul.mubr.f32.gmra.mxu0 %v5026_v42  ;;  %v606_v52 = vmul.f32 %v462_v0, %v4731_v54 }
 0x217   : > { %2049 = vmatpush1.msra.mxu0 %v641_v46  ;;  %4136 = vmatpush3.msra.mxu1 %v607_v20  ;;  %v461_v20 = vld [vmem:[%s7839_s1 + $0x108] sm:$0xff] }
 0x218   : > { %2050 = vmatprep.subr.mxu0 %v633_v36  ;;  %4137 = vmatprep.subr.mxu1 %v598_v8  ;;  %v605_v36 = vmul.f32 %v461_v20, %v4731_v54  ;;  %v596_v54 = vmul.f32 %v452_v38, %v4734_v58 }
 0x219   : > { %2051 = vmatpush1.msra.mxu0 %v632_v7  ;;  %4138 = vmatpush3.msra.mxu1 %v598_v8  ;;  %v5469_v1 = vpop.f32.mrf.mxu0  ;;  %v5471_v53 = vpop.f32.mrf.mxu1  ;;  %v444_v8 = vld [vmem:[%s7839_s1 + $0x80] sm:$0xff]  ;;  %v597_v7 = vmul.f32 %v453_v57, %v4734_v58  ;;  %v587_v58 = vmul.f32 %v443_v3, %v4751_v17 }
 0x21a   : > { %7888 = vst [vmem:[#allocation13_spill] sm:$0xff] %v5471_v53  ;;  %1480 = vmatprep.mubr.f32.mxu1 %v7887_v16  ;;  %4054 = vmatprep.mubr.f32.mxu0 %v5042_v39  ;;  %v7923_v53 = vld [vmem:[#allocation9_spill] sm:$0xff] }
 0x21b   : > { %2052 = vmatprep.subr.mxu0 %v624_v48  ;;  %4139 = vmatprep.subr.mxu1 %v589_v51  ;;  %v5479_v61 = vpop.f32.mrf.mxu0  ;;  %v5481_v13 = vpop.f32.mrf.mxu1  ;;  %v435_v48 = vld [vmem:[%s7839_s1 + $0x38] sm:$0xff] }
 0x21c   : > { %7889 = vst [vmem:[#allocation14_spill] sm:$0xff] %v5481_v13  ;;  %1481 = vmatmul.mubr.f32.gmra.mxu1 %v4994_v9  ;;  %4055 = vmatmul.mubr.f32.gmra.mxu0 %v5055_v56 }
 0x21d   : > { %2053 = vmatpush1.msra.mxu0 %v623_v31  ;;  %4140 = vmatpush3.msra.mxu1 %v589_v51  ;;  %v588_v51 = vmul.f32 %v444_v8, %v4751_v17  ;;  %v579_v31 = vmul.f32 %v435_v48, %v4754_v21 }
 0x21e   : > { %2054 = vmatprep.subr.mxu0 %v615_v55  ;;  %4141 = vmatprep.subr.mxu1 %v580_v10  ;;  %v578_v55 = vmul.f32 %v434_v44, %v4754_v21 }
 0x21f   : > { %2055 = vmatpush1.msra.mxu0 %v614_v34  ;;  %4142 = vmatpush3.msra.mxu1 %v580_v10  ;;  %v5498_v11 = vpop.f32.mrf.mxu0  ;;  %v5500_v46 = vpop.f32.mrf.mxu1 }
 0x220   : > { %7890 = vst [vmem:[#allocation15_spill] sm:$0xff] %v5500_v46  ;;  %1486 = vmatprep.mubr.f32.mxu1 %v7887_v16  ;;  %4057 = vmatprep.mubr.f32.mxu0 %v5071_v43 }
 0x221   : > { %2056 = vmatprep.subr.mxu0 %v606_v52  ;;  %1487 = vmatmul.mubr.f32.gmra.mxu1 %v5013_v30  ;;  %v5512_v18 = vpop.f32.mrf.mxu0  ;;  %v5514_v40 = vpop.f32.mrf.mxu1 }
 0x222   : > { %7891 = vst [vmem:[#allocation16_spill] sm:$0xff] %v5514_v40  ;;  %4058 = vmatmul.mubr.f32.gmra.mxu0 %v5084_v60  ;;  %1492 = vmatprep.mubr.f32.mxu1 %v7887_v16 }
 0x223   : > { %2057 = vmatpush1.msra.mxu0 %v605_v36  ;;  %4060 = vmatprep.mubr.f32.mxu0 %v5100_v2 }
 0x224   : > { %2058 = vmatprep.subr.mxu0 %v597_v7  ;;  %4215 = vmatprep.subr.mxu1 %v7887_v16 }
 0x225   : > { %2059 = vmatpush1.msra.mxu0 %v596_v54  ;;  %1493 = vmatmul.mubr.f32.gmra.mxu1 %v5026_v42  ;;  %v5534_v15 = vpop.f32.mrf.mxu0  ;;  %v5536_v59 = vpop.f32.mrf.mxu1 }
 0x226   : > { %7892 = vst [vmem:[#allocation17_spill] sm:$0xff] %v5536_v59  ;;  %2060 = vmatprep.subr.mxu0 %v588_v51  ;;  %4061 = vmatmul.mubr.f32.gmra.mxu0 %v5113_v19  ;;  %v7917_v59 = vld [vmem:[#allocation7_spill] sm:$0xff] }
 0x227   : > { %2061 = vmatpush1.msra.mxu0 %v587_v58  ;;  %1498 = vmatprep.mubr.f32.mxu1 %v7887_v16  ;;  %v5542_v10 = vpop.f32.mrf.mxu0  ;;  %v5544_v0 = vpop.f32.mrf.mxu1 }
 0x228   : > { %7893 = vst [vmem:[#allocation18_spill] sm:$0xff] %v5544_v0  ;;  %2062 = vmatprep.subr.mxu0 %v579_v31  ;;  %4063 = vmatprep.mubr.f32.mxu0 %v5005_v23 }
 0x229   : > { %2063 = vmatpush1.msra.mxu0 %v578_v55  ;;  %1499 = vmatmul.mubr.f32.gmra.mxu1 %v5042_v39 }
 0x22a   : > { %4064 = vmatmul.mubr.f32.gmra.mxu0 %v5034_v49  ;;  %1504 = vmatprep.mubr.f32.mxu1 %v7887_v16 }
 0x22b   : > { %4066 = vmatprep.mubr.f32.mxu0 %v5063_v41  ;;  %v5551_v17 = vpop.f32.mrf.mxu0  ;;  %v5553_v21 = vpop.f32.mrf.mxu1 }
 0x22c   : > { %7894 = vst [vmem:[#allocation19_spill] sm:$0xff] %v5553_v21 }
 0x22d   : > { %1505 = vmatmul.mubr.f32.gmra.mxu1 %v5055_v56  ;;  %v5556_v34 = vpop.f32.mrf.mxu0  ;;  %v5558_v20 = vpop.f32.mrf.mxu1 }
 0x22e   : > { %7895 = vst [vmem:[#allocation20_spill] sm:$0xff] %v5558_v20  ;;  %4067 = vmatmul.mubr.f32.gmra.mxu0 %v5092_v33  ;;  %1510 = vmatprep.mubr.f32.mxu1 %v7887_v16 }
 0x22f   : > { %4069 = vmatprep.mubr.f32.mxu0 %v5121_v32 }
 0x231   : > { %1511 = vmatmul.mubr.f32.gmra.mxu1 %v5071_v43  ;;  %v5564_v52 = vpop.f32.mrf.mxu0  ;;  %v5566_v57 = vpop.f32.mrf.mxu1 }
 0x232   : > { %7896 = vst [vmem:[#allocation21_spill] sm:$0xff] %v5566_v57  ;;  %4070 = vmatmul.mubr.f32.gmra.mxu0 %v5144_v50  ;;  %1516 = vmatprep.mubr.f32.mxu1 %v7887_v16 }
 0x233   : > { %4072 = vmatprep.mubr.f32.mxu0 %v5160_v22  ;;  %v5571_v38 = vpop.f32.mrf.mxu0  ;;  %v5573_v36 = vpop.f32.mrf.mxu1 }
 0x234   : > { %7897 = vst [vmem:[#allocation22_spill] sm:$0xff] %v5573_v36 }
 0x235   : > { %1517 = vmatmul.mubr.f32.gmra.mxu1 %v5084_v60 }
 0x236   : > { %4073 = vmatmul.mubr.f32.gmra.mxu0 %v5168_v24  ;;  %1522 = vmatprep.mubr.f32.mxu1 %v7887_v16 }
 0x237   : > { %4075 = vmatprep.mubr.f32.mxu0 %v5175_v45  ;;  %v5579_v8 = vpop.f32.mrf.mxu0  ;;  %v5581_v7 = vpop.f32.mrf.mxu1 }
 0x238   : > { %7898 = vst [vmem:[#allocation23_spill] sm:$0xff] %v5581_v7 }
 0x239   : > { %1523 = vmatmul.mubr.f32.gmra.mxu1 %v5100_v2  ;;  %v5584_v3 = vpop.f32.mrf.mxu0  ;;  %v5586_v54 = vpop.f32.mrf.mxu1 }
 0x23a   : > { %7899 = vst [vmem:[#allocation24_spill] sm:$0xff] %v5586_v54  ;;  %4076 = vmatmul.mubr.f32.gmra.mxu0 %v5181_v4  ;;  %1528 = vmatprep.mubr.f32.mxu1 %v7887_v16 }
 0x23b   : > { %4078 = vmatprep.mubr.f32.mxu0 %v5186_v47 }
 0x23d   : > { %1529 = vmatmul.mubr.f32.gmra.mxu1 %v5113_v19  ;;  %v5592_v48 = vpop.f32.mrf.mxu0  ;;  %v5594_v51 = vpop.f32.mrf.mxu1 }
 0x23e   : > { %7900 = vst [vmem:[#allocation25_spill] sm:$0xff] %v5594_v51  ;;  %4079 = vmatmul.mubr.f32.gmra.mxu0 %v5191_v6  ;;  %1534 = vmatprep.mubr.f32.mxu1 %v7887_v16 }
 0x23f   : > { %4081 = vmatprep.mubr.f32.mxu0 %v5196_v26  ;;  %v5599_v44 = vpop.f32.mrf.mxu0  ;;  %v5601_v58 = vpop.f32.mrf.mxu1 }
 0x240   : > { %7901 = vst [vmem:[#allocation26_spill] sm:$0xff] %v5601_v58 }
 0x241   : > { %1535 = vmatmul.mubr.f32.gmra.mxu1 %v5005_v23 }
 0x242   : > { %4082 = vmatmul.mubr.f32.gmra.mxu0 %v5201_v62  ;;  %1540 = vmatprep.mubr.f32.mxu1 %v7887_v16 }
 0x243   : > { %4084 = vmatprep.mubr.f32.mxu0 %v5206_v25  ;;  %v5607_v31 = vpop.f32.mrf.mxu0  ;;  %v5609_v55 = vpop.f32.mrf.mxu1 }
 0x244   : > { %7902 = vst [vmem:[#allocation27_spill] sm:$0xff] %v5609_v55 }
 0x245   : > { %1541 = vmatmul.mubr.f32.gmra.mxu1 %v5034_v49  ;;  %v5612_v51 = vpop.f32.mrf.mxu0  ;;  %v5614_v54 = vpop.f32.mrf.mxu1 }
 0x246   : > { %7903 = vst [vmem:[#allocation28_spill] sm:$0xff] %v5614_v54  ;;  %4085 = vmatmul.mubr.f32.gmra.mxu0 %v5211_v28  ;;  %1546 = vmatprep.mubr.f32.mxu1 %v7887_v16 }
 0x247   : > { %4087 = vmatprep.mubr.f32.mxu0 %v5216_v5 }
 0x249   : > { %1547 = vmatmul.mubr.f32.gmra.mxu1 %v5063_v41  ;;  %v5620_v23 = vpop.f32.mrf.mxu0  ;;  %v5622_v58 = vpop.f32.mrf.mxu1 }
 0x24a   : > { %7904 = vst [vmem:[#allocation29_spill] sm:$0xff] %v5622_v58  ;;  %4088 = vmatmul.mubr.f32.gmra.mxu0 %v5221_v12  ;;  %1552 = vmatprep.mubr.f32.mxu1 %v7887_v16 }
 0x24b   : > { %4090 = vmatprep.mubr.f32.mxu0 %v5226_v35  ;;  %v5627_v49 = vpop.f32.mrf.mxu0  ;;  %v5629_v54 = vpop.f32.mrf.mxu1 }
 0x24c   : > { %7905 = vst [vmem:[#allocation30_spill] sm:$0xff] %v5629_v54 }
 0x24d   : > { %1553 = vmatmul.mubr.f32.gmra.mxu1 %v5092_v33  ;;  %v5632_v55 = vpop.f32.mrf.mxu0  ;;  %v5634_v7 = vpop.f32.mrf.mxu1 }
 0x24e   : > { %7906 = vst [vmem:[#allocation31_spill] sm:$0xff] %v5634_v7  ;;  %4091 = vmatmul.mubr.f32.gmra.mxu0 %v5231_v27  ;;  %1558 = vmatprep.mubr.f32.mxu1 %v7887_v16 }
 0x24f   : > { %4093 = vmatprep.mubr.f32.mxu0 %v5236_v29  ;;  %v5639_v41 = vpop.f32.mrf.mxu0  ;;  %v5641_v58 = vpop.f32.mrf.mxu1 }
 0x250   : > { %7907 = vst [vmem:[#allocation32_spill] sm:$0xff] %v5641_v58 }
 0x251   : > { %1559 = vmatmul.mubr.f32.gmra.mxu1 %v5121_v32  ;;  %v5644_v36 = vpop.f32.mrf.mxu0  ;;  %v5646_v54 = vpop.f32.mrf.mxu1  ;;  %v7911_v32 = vld [vmem:[#allocation4_spill] sm:$0xff] }
 0x252   : > { %7908 = vst [vmem:[#allocation33_spill] sm:$0xff] %v5646_v54  ;;  %4094 = vmatmul.mubr.f32.gmra.mxu0 %v5241_v14  ;;  %1564 = vmatprep.mubr.f32.mxu1 %v7887_v16  ;;  %v7912_v54 = vld [vmem:[#allocation5_spill] sm:$0xff] }
 0x253   : > { %4096 = vmatprep.mubr.f32.mxu0 %v5246_v37  ;;  %v5651_v33 = vpop.f32.mrf.mxu0  ;;  %v5653_v7 = vpop.f32.mrf.mxu1 }
 0x254   : > { %7909 = vst [vmem:[#allocation34_spill] sm:$0xff] %v5653_v7  ;;  %v7915_v7 = vld [vmem:[#allocation6_spill] sm:$0xff] }
 0x255   : > { %1565 = vmatmul.mubr.f32.gmra.mxu1 %v5144_v50  ;;  %v5656_v57 = vpop.f32.mrf.mxu0  ;;  %v5658_v58 = vpop.f32.mrf.mxu1 }
 0x256   : > { %7910 = vst [vmem:[#allocation35_spill] sm:$0xff] %v5658_v58  ;;  %4097 = vmatmul.mubr.f32.gmra.mxu0 %v7911_v32  ;;  %1570 = vmatprep.mubr.f32.mxu1 %v7887_v16 }
 0x257   : > { %4099 = vmatprep.mubr.f32.mxu0 %v7912_v54  ;;  %v5663_v20 = vpop.f32.mrf.mxu0  ;;  %v5665_v21 = vpop.f32.mrf.mxu1 }
 0x258   : > { %7913 = vst [vmem:[#allocation4_spill] sm:$0xff] %v5665_v21  ;;  %v7921_v21 = vld [vmem:[#allocation8_spill] sm:$0xff] }
 0x259   : > { %1571 = vmatmul.mubr.f32.gmra.mxu1 %v5160_v22  ;;  %v5668_v0 = vpop.f32.mrf.mxu0 }
 0x25a   : > { %7914 = vst [vmem:[#allocation5_spill] sm:$0xff] %v5668_v0  ;;  %4100 = vmatmul.mubr.f32.gmra.mxu0 %v7915_v7  ;;  %1576 = vmatprep.mubr.f32.mxu1 %v7887_v16  ;;  %v5672_v50 = vpop.f32.mrf.mxu1 }
 0x25b   : > { %7916 = vst [vmem:[#allocation6_spill] sm:$0xff] %v5672_v50  ;;  %4102 = vmatprep.mubr.f32.mxu0 %v7917_v59  ;;  %v5675_v40 = vpop.f32.mrf.mxu0 }
 0x25c   : > { %7918 = vst [vmem:[#allocation7_spill] sm:$0xff] %v5675_v40  ;;  %v5677_v46 = vpop.f32.mrf.mxu1 }
 0x25d   : > { %7919 = vst [vmem:[#allocation36_spill] sm:$0xff] %v5677_v46  ;;  %1577 = vmatmul.mubr.f32.gmra.mxu1 %v5168_v24  ;;  %v5680_v13 = vpop.f32.mrf.mxu0  ;;  %v7927_v46 = vld [vmem:[#allocation10_spill] sm:$0xff] }
 0x25e   : > { %7920 = vst [vmem:[#allocation37_spill] sm:$0xff] %v5680_v13  ;;  %4103 = vmatmul.mubr.f32.gmra.mxu0 %v7921_v21  ;;  %1582 = vmatprep.mubr.f32.mxu1 %v7887_v16  ;;  %v5684_v22 = vpop.f32.mrf.mxu1  ;;  %v7929_v13 = vld [vmem:[#allocation11_spill] sm:$0xff] }
 0x25f   : > { %7922 = vst [vmem:[#allocation8_spill] sm:$0xff] %v5684_v22  ;;  %4105 = vmatprep.mubr.f32.mxu0 %v7923_v53  ;;  %v5687_v58 = vpop.f32.mrf.mxu0 }
 0x260   : > { %7924 = vst [vmem:[#allocation9_spill] sm:$0xff] %v5687_v58  ;;  %v5689_v50 = vpop.f32.mrf.mxu1 }
 0x261   : > { %7925 = vst [vmem:[#allocation38_spill] sm:$0xff] %v5689_v50  ;;  %1583 = vmatmul.mubr.f32.gmra.mxu1 %v5175_v45  ;;  %v5692_v40 = vpop.f32.mrf.mxu0  ;;  %v7933_v50 = vld [vmem:[#allocation12_spill] sm:$0xff] }
 0x262   : > { %7926 = vst [vmem:[#allocation39_spill] sm:$0xff] %v5692_v40  ;;  %4106 = vmatmul.mubr.f32.gmra.mxu0 %v7927_v46  ;;  %1588 = vmatprep.mubr.f32.mxu1 %v7887_v16  ;;  %v5696_v24 = vpop.f32.mrf.mxu1 }
 0x263   : > { %7928 = vst [vmem:[#allocation10_spill] sm:$0xff] %v5696_v24  ;;  %4108 = vmatprep.mubr.f32.mxu0 %v7929_v13  ;;  %v5699_v0 = vpop.f32.mrf.mxu0 }
 0x264   : > { %7930 = vst [vmem:[#allocation11_spill] sm:$0xff] %v5699_v0  ;;  %v5701_v22 = vpop.f32.mrf.mxu1 }
 0x265   : > { %7931 = vst [vmem:[#allocation40_spill] sm:$0xff] %v5701_v22  ;;  %1589 = vmatmul.mubr.f32.gmra.mxu1 %v5181_v4  ;;  %v5704_v58 = vpop.f32.mrf.mxu0 }
 0x266   : > { %7932 = vst [vmem:[#allocation41_spill] sm:$0xff] %v5704_v58  ;;  %4109 = vmatmul.mubr.f32.gmra.mxu0 %v7933_v50  ;;  %1594 = vmatprep.mubr.f32.mxu1 %v7887_v16  ;;  %v5708_v45 = vpop.f32.mrf.mxu1 }
 0x267   : > { %7934 = vst [vmem:[#allocation12_spill] sm:$0xff] %v5708_v45  ;;  %2096 = vmatprep.mubr.f32.mxu0 %v7887_v16  ;;  %v5711_v40 = vpop.f32.mrf.mxu0 }
 0x268   : > { %7935 = vst [vmem:[#allocation42_spill] sm:$0xff] %v5711_v40  ;;  %v5713_v24 = vpop.f32.mrf.mxu1 }
 0x269   : > { %7936 = vst [vmem:[#allocation43_spill] sm:$0xff] %v5713_v24  ;;  %1595 = vmatmul.mubr.f32.gmra.mxu1 %v5186_v47  ;;  %v5716_v0 = vpop.f32.mrf.mxu0 }
 0x26a   : > { %7937 = vst [vmem:[#allocation44_spill] sm:$0xff] %v5716_v0  ;;  %2097 = vmatmul.mubr.f32.vlgmr.msra.gmra.mxu0 %v4984_v63  ;;  %1600 = vmatprep.mubr.f32.mxu1 %v7887_v16  ;;  %v5720_v4 = vpop.f32.mrf.mxu1 }
 0x26b   : > { %7938 = vst [vmem:[#allocation45_spill] sm:$0xff] %v5720_v4  ;;  %2102 = vmatprep.mubr.f32.mxu0 %v7887_v16  ;;  %v5723_v22 = vpop.f32.mrf.mxu0 }
 0x26c   : > { %7939 = vst [vmem:[#allocation46_spill] sm:$0xff] %v5723_v22  ;;  %v5725_v45 = vpop.f32.mrf.mxu1 }
 0x26d   : > { %7940 = vst [vmem:[#allocation47_spill] sm:$0xff] %v5725_v45  ;;  %1601 = vmatmul.mubr.f32.gmra.mxu1 %v5191_v6  ;;  %v5728_v40 = vpop.f32.mrf.mxu0 }
 0x26e   : > { %7941 = vst [vmem:[#allocation48_spill] sm:$0xff] %v5728_v40  ;;  %2103 = vmatmul.mubr.f32.gmra.mxu0 %v4994_v9  ;;  %1606 = vmatprep.mubr.f32.mxu1 %v7887_v16  ;;  %v5732_v47 = vpop.f32.mrf.mxu1 }
 0x26f   : > { %7942 = vst [vmem:[#allocation49_spill] sm:$0xff] %v5732_v47  ;;  %2108 = vmatprep.mubr.f32.mxu0 %v7887_v16  ;;  %v5735_v63 = vpop.f32.mrf.mxu0 }
 0x270   : > { %7943 = vst [vmem:[#allocation50_spill] sm:$0xff] %v5735_v63  ;;  %v5737_v4 = vpop.f32.mrf.mxu1 }
 0x271   : > { %7944 = vst [vmem:[#allocation51_spill] sm:$0xff] %v5737_v4  ;;  %1607 = vmatmul.mubr.f32.gmra.mxu1 %v5196_v26  ;;  %v5740_v24 = vpop.f32.mrf.mxu0 }
 0x272   : > { %7945 = vst [vmem:[#allocation52_spill] sm:$0xff] %v5740_v24  ;;  %2109 = vmatmul.mubr.f32.gmra.mxu0 %v5013_v30  ;;  %1612 = vmatprep.mubr.f32.mxu1 %v7887_v16  ;;  %v5744_v6 = vpop.f32.mrf.mxu1 }
 0x273   : > { %7946 = vst [vmem:[#allocation53_spill] sm:$0xff] %v5744_v6  ;;  %2114 = vmatprep.mubr.f32.mxu0 %v7887_v16  ;;  %v5747_v9 = vpop.f32.mrf.mxu0 }
 0x274   : > { %7947 = vst [vmem:[#allocation54_spill] sm:$0xff] %v5747_v9  ;;  %v5749_v47 = vpop.f32.mrf.mxu1  ;;  %v6065_v9 = vld [vmem:[%s4455_s23 + $0x100] sm:$0xff] }
 0x275   : > { %7948 = vst [vmem:[#allocation55_spill] sm:$0xff] %v5749_v47  ;;  %1613 = vmatmul.mubr.f32.gmra.mxu1 %v5201_v62  ;;  %v5752_v45 = vpop.f32.mrf.mxu0 }
 0x276   : > { %7949 = vst [vmem:[#allocation56_spill] sm:$0xff] %v5752_v45  ;;  %2115 = vmatmul.mubr.f32.gmra.mxu0 %v5026_v42  ;;  %1618 = vmatprep.mubr.f32.mxu1 %v7887_v16  ;;  %v5756_v26 = vpop.f32.mrf.mxu1  ;;  %v4378_v45 = vld [vmem:[%s4455_s23 + $0x78] sm:$0xff] }
 0x277   : > { %7950 = vst [vmem:[#allocation57_spill] sm:$0xff] %v5756_v26  ;;  %2120 = vmatprep.mubr.f32.mxu0 %v7887_v16  ;;  %v5759_v30 = vpop.f32.mrf.mxu0 }
 0x278   : > { %7951 = vst [vmem:[#allocation58_spill] sm:$0xff] %v5759_v30  ;;  %v5761_v6 = vpop.f32.mrf.mxu1  ;;  %v4377_v30 = vld [vmem:[%s4455_s23 + $0x70] sm:$0xff] }
 0x279   : > { %7952 = vst [vmem:[#allocation59_spill] sm:$0xff] %v5761_v6  ;;  %1619 = vmatmul.mubr.f32.gmra.mxu1 %v5206_v25  ;;  %v5764_v4 = vpop.f32.mrf.mxu0 }
 0x27a   : > { %7953 = vst [vmem:[#allocation60_spill] sm:$0xff] %v5764_v4  ;;  %2121 = vmatmul.mubr.f32.gmra.mxu0 %v5042_v39  ;;  %1624 = vmatprep.mubr.f32.mxu1 %v7887_v16  ;;  %v5768_v62 = vpop.f32.mrf.mxu1  ;;  %v4375_v4 = vld [vmem:[%s4455_s23 + $0x68] sm:$0xff] }
 0x27b   : > { %7954 = vst [vmem:[#allocation61_spill] sm:$0xff] %v5768_v62  ;;  %2126 = vmatprep.mubr.f32.mxu0 %v7887_v16  ;;  %v5771_v42 = vpop.f32.mrf.mxu0 }
 0x27c   : > { %7955 = vst [vmem:[#allocation62_spill] sm:$0xff] %v5771_v42  ;;  %v5773_v26 = vpop.f32.mrf.mxu1 }
 0x27d   : > { %7956 = vst [vmem:[#allocation63_spill] sm:$0xff] %v5773_v26  ;;  %1625 = vmatmul.mubr.f32.gmra.mxu1 %v5211_v28  ;;  %v5776_v47 = vpop.f32.mrf.mxu0 }
 0x27e   : > { %7957 = vst [vmem:[#allocation64_spill] sm:$0xff] %v5776_v47  ;;  %2127 = vmatmul.mubr.f32.gmra.mxu0 %v5055_v56  ;;  %1630 = vmatprep.mubr.f32.mxu1 %v7887_v16  ;;  %v5780_v25 = vpop.f32.mrf.mxu1 }
 0x27f   : > { %7958 = vst [vmem:[#allocation65_spill] sm:$0xff] %v5780_v25  ;;  %2132 = vmatprep.mubr.f32.mxu0 %v7887_v16  ;;  %v5783_v39 = vpop.f32.mrf.mxu0 }
 0x280   : > { %7959 = vst [vmem:[#allocation66_spill] sm:$0xff] %v5783_v39  ;;  %v5785_v62 = vpop.f32.mrf.mxu1  ;;  %v4372_v39 = vld [vmem:[%s4455_s23 + $0x58] sm:$0xff] }
 0x281   : > { %7960 = vst [vmem:[#allocation67_spill] sm:$0xff] %v5785_v62  ;;  %1631 = vmatmul.mubr.f32.gmra.mxu1 %v5216_v5  ;;  %v5788_v6 = vpop.f32.mrf.mxu0 }
 0x282   : > { %7961 = vst [vmem:[#allocation68_spill] sm:$0xff] %v5788_v6  ;;  %2133 = vmatmul.mubr.f32.gmra.mxu0 %v5071_v43  ;;  %1636 = vmatprep.mubr.f32.mxu1 %v7887_v16  ;;  %v5792_v28 = vpop.f32.mrf.mxu1  ;;  %v4369_v6 = vld [vmem:[%s4455_s23 + $0x48] sm:$0xff] }
 0x283   : > { %7962 = vst [vmem:[#allocation69_spill] sm:$0xff] %v5792_v28  ;;  %2138 = vmatprep.mubr.f32.mxu0 %v7887_v16  ;;  %v5795_v56 = vpop.f32.mrf.mxu0 }
 0x284   : > { %7963 = vst [vmem:[#allocation70_spill] sm:$0xff] %v5795_v56  ;;  %v5797_v25 = vpop.f32.mrf.mxu1 }
 0x285   : > { %7964 = vst [vmem:[#allocation71_spill] sm:$0xff] %v5797_v25  ;;  %1637 = vmatmul.mubr.f32.gmra.mxu1 %v5221_v12  ;;  %v5800_v26 = vpop.f32.mrf.mxu0 }
 0x286   : > { %7965 = vst [vmem:[#allocation72_spill] sm:$0xff] %v5800_v26  ;;  %2139 = vmatmul.mubr.f32.gmra.mxu0 %v5084_v60  ;;  %1642 = vmatprep.mubr.f32.mxu1 %v7887_v16  ;;  %v5804_v5 = vpop.f32.mrf.mxu1  ;;  %v4368_v26 = vld [vmem:[%s4455_s23 + $0x40] sm:$0xff] }
 0x287   : > { %7966 = vst [vmem:[#allocation73_spill] sm:$0xff] %v5804_v5  ;;  %2144 = vmatprep.mubr.f32.mxu0 %v7887_v16  ;;  %v5807_v43 = vpop.f32.mrf.mxu0 }
 0x288   : > { %7967 = vst [vmem:[#allocation74_spill] sm:$0xff] %v5807_v43  ;;  %v5809_v28 = vpop.f32.mrf.mxu1  ;;  %v6017_v43 = vld [vmem:[%s4455_s23 + $0xe0] sm:$0xff] }
 0x289   : > { %7968 = vst [vmem:[#allocation75_spill] sm:$0xff] %v5809_v28  ;;  %1643 = vmatmul.mubr.f32.gmra.mxu1 %v5226_v35  ;;  %v5812_v62 = vpop.f32.mrf.mxu0 }
 0x28a   : > { %7969 = vst [vmem:[#allocation76_spill] sm:$0xff] %v5812_v62  ;;  %2145 = vmatmul.mubr.f32.gmra.mxu0 %v5100_v2  ;;  %1648 = vmatprep.mubr.f32.mxu1 %v7887_v16  ;;  %v5816_v60 = vpop.f32.mrf.mxu1 }
 0x28b   : > { %7970 = vst [vmem:[#allocation77_spill] sm:$0xff] %v5816_v60  ;;  %2150 = vmatprep.mubr.f32.mxu0 %v7887_v16  ;;  %v5819_v12 = vpop.f32.mrf.mxu0 }
 0x28c   : > { %7971 = vst [vmem:[#allocation78_spill] sm:$0xff] %v5819_v12  ;;  %v5821_v5 = vpop.f32.mrf.mxu1 }
 0x28d   : > { %7972 = vst [vmem:[#allocation79_spill] sm:$0xff] %v5821_v5  ;;  %1649 = vmatmul.mubr.f32.gmra.mxu1 %v5231_v27  ;;  %v5824_v28 = vpop.f32.mrf.mxu0  ;;  %v5839_v27 = vld [vmem:[%s4455_s23 + $0x80] sm:$0xff] }
 0x28e   : > { %7973 = vst [vmem:[#allocation80_spill] sm:$0xff] %v5824_v28  ;;  %2151 = vmatmul.mubr.f32.gmra.mxu0 %v5113_v19  ;;  %1654 = vmatprep.mubr.f32.mxu1 %v7887_v16  ;;  %v5828_v2 = vpop.f32.mrf.mxu1  ;;  %v4365_v28 = vld [vmem:[%s4455_s23 + $0x30] sm:$0xff] }
 0x28f   : > { %7974 = vst [vmem:[#allocation81_spill] sm:$0xff] %v5828_v2  ;;  %2156 = vmatprep.mubr.f32.mxu0 %v7887_v16  ;;  %v5831_v35 = vpop.f32.mrf.mxu0 }
 0x290   : > { %7975 = vst [vmem:[#allocation82_spill] sm:$0xff] %v5831_v35  ;;  %v5833_v60 = vpop.f32.mrf.mxu1 }
 0x291   : > { %7976 = vst [vmem:[#allocation83_spill] sm:$0xff] %v5833_v60  ;;  %1655 = vmatmul.mubr.f32.gmra.mxu1 %v5236_v29  ;;  %v5836_v5 = vpop.f32.mrf.mxu0  ;;  %v5854_v60 = vld [vmem:[%s4455_s23 + $0x88] sm:$0xff] }
 0x292   : > { %7977 = vst [vmem:[#allocation84_spill] sm:$0xff] %v5836_v5  ;;  %2157 = vmatmul.mubr.f32.gmra.mxu0 %v5839_v27  ;;  %1660 = vmatprep.mubr.f32.mxu1 %v7887_v16  ;;  %v5843_v19 = vpop.f32.mrf.mxu1 }
 0x293   : > { %7978 = vst [vmem:[#allocation85_spill] sm:$0xff] %v5843_v19  ;;  %2162 = vmatprep.mubr.f32.mxu0 %v7887_v16  ;;  %v5846_v2 = vpop.f32.mrf.mxu0 }
 0x294   : > { %7979 = vst [vmem:[#allocation86_spill] sm:$0xff] %v5846_v2  ;;  %v5848_v25 = vpop.f32.mrf.mxu1 }
 0x295   : > { %7980 = vst [vmem:[#allocation87_spill] sm:$0xff] %v5848_v25  ;;  %1661 = vmatmul.mubr.f32.gmra.mxu1 %v5241_v14  ;;  %v5851_v29 = vpop.f32.mrf.mxu0  ;;  %v5869_v25 = vld [vmem:[%s4455_s23 + $0x90] sm:$0xff] }
 0x296   : > { %7981 = vst [vmem:[#allocation88_spill] sm:$0xff] %v5851_v29  ;;  %2163 = vmatmul.mubr.f32.gmra.mxu0 %v5854_v60  ;;  %1666 = vmatprep.mubr.f32.mxu1 %v7887_v16  ;;  %v5858_v5 = vpop.f32.mrf.mxu1 }
 0x297   : > { %7982 = vst [vmem:[#allocation89_spill] sm:$0xff] %v5858_v5  ;;  %2168 = vmatprep.mubr.f32.mxu0 %v7887_v16  ;;  %v5861_v19 = vpop.f32.mrf.mxu0 }
 0x298   : > { %7983 = vst [vmem:[#allocation90_spill] sm:$0xff] %v5861_v19  ;;  %v5863_v2 = vpop.f32.mrf.mxu1 }
 0x299   : > { %7984 = vst [vmem:[#allocation91_spill] sm:$0xff] %v5863_v2  ;;  %1667 = vmatmul.mubr.f32.gmra.mxu1 %v5246_v37  ;;  %v5866_v14 = vpop.f32.mrf.mxu0  ;;  %v5884_v2 = vld [vmem:[%s4455_s23 + $0x98] sm:$0xff] }
 0x29a   : > { %7985 = vst [vmem:[#allocation92_spill] sm:$0xff] %v5866_v14  ;;  %2169 = vmatmul.mubr.f32.gmra.mxu0 %v5869_v25  ;;  %1672 = vmatprep.mubr.f32.mxu1 %v7887_v16  ;;  %v5873_v29 = vpop.f32.mrf.mxu1 }
 0x29b   : > { %7986 = vst [vmem:[#allocation93_spill] sm:$0xff] %v5873_v29  ;;  %2174 = vmatprep.mubr.f32.mxu0 %v7887_v16  ;;  %v5876_v5 = vpop.f32.mrf.mxu0 }
 0x29c   : > { %7987 = vst [vmem:[#allocation94_spill] sm:$0xff] %v5876_v5  ;;  %v5878_v19 = vpop.f32.mrf.mxu1 }
 0x29d   : > { %7988 = vst [vmem:[#allocation95_spill] sm:$0xff] %v5878_v19  ;;  %1673 = vmatmul.mubr.f32.gmra.mxu1 %v7911_v32  ;;  %v5881_v37 = vpop.f32.mrf.mxu0  ;;  %v5899_v19 = vld [vmem:[%s4455_s23 + $0xa0] sm:$0xff] }
 0x29e   : > { %7989 = vst [vmem:[#allocation96_spill] sm:$0xff] %v5881_v37  ;;  %2175 = vmatmul.mubr.f32.gmra.mxu0 %v5884_v2  ;;  %1678 = vmatprep.mubr.f32.mxu1 %v7887_v16  ;;  %v5888_v14 = vpop.f32.mrf.mxu1 }
 0x29f   : > { %7990 = vst [vmem:[#allocation97_spill] sm:$0xff] %v5888_v14  ;;  %2180 = vmatprep.mubr.f32.mxu0 %v7887_v16  ;;  %v5891_v29 = vpop.f32.mrf.mxu0 }
 0x2a0   : > { %7991 = vst [vmem:[#allocation98_spill] sm:$0xff] %v5891_v29  ;;  %v5893_v5 = vpop.f32.mrf.mxu1 }
 0x2a1   : > { %7992 = vst [vmem:[#allocation99_spill] sm:$0xff] %v5893_v5  ;;  %1679 = vmatmul.mubr.f32.gmra.mxu1 %v7912_v54  ;;  %v5896_v32 = vpop.f32.mrf.mxu0  ;;  %v5914_v5 = vld [vmem:[%s4455_s23 + $0xa8] sm:$0xff] }
 0x2a2   : > { %7993 = vst [vmem:[#allocation100_spill] sm:$0xff] %v5896_v32  ;;  %2181 = vmatmul.mubr.f32.gmra.mxu0 %v5899_v19  ;;  %1684 = vmatprep.mubr.f32.mxu1 %v7887_v16  ;;  %v5903_v37 = vpop.f32.mrf.mxu1 }
 0x2a3   : > { %7994 = vst [vmem:[#allocation101_spill] sm:$0xff] %v5903_v37  ;;  %2186 = vmatprep.mubr.f32.mxu0 %v7887_v16  ;;  %v5906_v14 = vpop.f32.mrf.mxu0 }
 0x2a4   : > { %7995 = vst [vmem:[#allocation102_spill] sm:$0xff] %v5906_v14  ;;  %v5908_v29 = vpop.f32.mrf.mxu1 }
 0x2a5   : > { %7996 = vst [vmem:[#allocation103_spill] sm:$0xff] %v5908_v29  ;;  %1685 = vmatmul.mubr.f32.gmra.mxu1 %v7915_v7  ;;  %v5911_v54 = vpop.f32.mrf.mxu0  ;;  %v5929_v29 = vld [vmem:[%s4455_s23 + $0xb0] sm:$0xff] }
 0x2a6   : > { %7997 = vst [vmem:[#allocation104_spill] sm:$0xff] %v5911_v54  ;;  %2187 = vmatmul.mubr.f32.gmra.mxu0 %v5914_v5  ;;  %1690 = vmatprep.mubr.f32.mxu1 %v7887_v16  ;;  %v5918_v32 = vpop.f32.mrf.mxu1 }
 0x2a7   : > { %7998 = vst [vmem:[#allocation105_spill] sm:$0xff] %v5918_v32  ;;  %2192 = vmatprep.mubr.f32.mxu0 %v7887_v16  ;;  %v5921_v37 = vpop.f32.mrf.mxu0 }
 0x2a8   : > { %7999 = vst [vmem:[#allocation106_spill] sm:$0xff] %v5921_v37  ;;  %v5923_v14 = vpop.f32.mrf.mxu1 }
 0x2a9   : > { %8000 = vst [vmem:[#allocation107_spill] sm:$0xff] %v5923_v14  ;;  %1691 = vmatmul.mubr.f32.gmra.mxu1 %v7917_v59  ;;  %v5926_v7 = vpop.f32.mrf.mxu0  ;;  %v5944_v14 = vld [vmem:[%s4455_s23 + $0xb8] sm:$0xff] }
 0x2aa   : > { %8001 = vst [vmem:[#allocation108_spill] sm:$0xff] %v5926_v7  ;;  %2193 = vmatmul.mubr.f32.gmra.mxu0 %v5929_v29  ;;  %1696 = vmatprep.mubr.f32.mxu1 %v7887_v16  ;;  %v5933_v54 = vpop.f32.mrf.mxu1 }
 0x2ab   : > { %8002 = vst [vmem:[#allocation109_spill] sm:$0xff] %v5933_v54  ;;  %2198 = vmatprep.mubr.f32.mxu0 %v7887_v16  ;;  %v5936_v32 = vpop.f32.mrf.mxu0 }
 0x2ac   : > { %8003 = vst [vmem:[#allocation110_spill] sm:$0xff] %v5936_v32  ;;  %v5938_v37 = vpop.f32.mrf.mxu1 }
 0x2ad   : > { %8004 = vst [vmem:[#allocation111_spill] sm:$0xff] %v5938_v37  ;;  %1697 = vmatmul.mubr.f32.gmra.mxu1 %v7921_v21  ;;  %v5941_v59 = vpop.f32.mrf.mxu0  ;;  %v5959_v37 = vld [vmem:[%s4455_s23 + $0xc0] sm:$0xff] }
 0x2ae   : > { %8005 = vst [vmem:[#allocation112_spill] sm:$0xff] %v5941_v59  ;;  %2199 = vmatmul.mubr.f32.gmra.mxu0 %v5944_v14  ;;  %1702 = vmatprep.mubr.f32.mxu1 %v7887_v16  ;;  %v5948_v7 = vpop.f32.mrf.mxu1 }
 0x2af   : > { %8006 = vst [vmem:[#allocation113_spill] sm:$0xff] %v5948_v7  ;;  %2204 = vmatprep.mubr.f32.mxu0 %v7887_v16  ;;  %v5951_v54 = vpop.f32.mrf.mxu0 }
 0x2b0   : > { %8007 = vst [vmem:[#allocation114_spill] sm:$0xff] %v5951_v54  ;;  %v5953_v32 = vpop.f32.mrf.mxu1 }
 0x2b1   : > { %8008 = vst [vmem:[#allocation115_spill] sm:$0xff] %v5953_v32  ;;  %1703 = vmatmul.mubr.f32.gmra.mxu1 %v7923_v53  ;;  %v5956_v21 = vpop.f32.mrf.mxu0  ;;  %v5974_v32 = vld [vmem:[%s4455_s23 + $0xc8] sm:$0xff] }
 0x2b2   : > { %8009 = vst [vmem:[#allocation116_spill] sm:$0xff] %v5956_v21  ;;  %2205 = vmatmul.mubr.f32.gmra.mxu0 %v5959_v37  ;;  %1708 = vmatprep.mubr.f32.mxu1 %v7887_v16  ;;  %v5963_v59 = vpop.f32.mrf.mxu1 }
 0x2b3   : > { %8010 = vst [vmem:[#allocation117_spill] sm:$0xff] %v5963_v59  ;;  %2210 = vmatprep.mubr.f32.mxu0 %v7887_v16  ;;  %v5966_v7 = vpop.f32.mrf.mxu0 }
 0x2b4   : > { %8011 = vst [vmem:[#allocation118_spill] sm:$0xff] %v5966_v7  ;;  %v5968_v54 = vpop.f32.mrf.mxu1 }
 0x2b5   : > { %8012 = vst [vmem:[#allocation119_spill] sm:$0xff] %v5968_v54  ;;  %1709 = vmatmul.mubr.f32.gmra.mxu1 %v7927_v46  ;;  %v5971_v53 = vpop.f32.mrf.mxu0  ;;  %v5989_v54 = vld [vmem:[%s4455_s23 + $0xd0] sm:$0xff] }
 0x2b6   : > { %8013 = vst [vmem:[#allocation120_spill] sm:$0xff] %v5971_v53  ;;  %2211 = vmatmul.mubr.f32.gmra.mxu0 %v5974_v32  ;;  %1714 = vmatprep.mubr.f32.mxu1 %v7887_v16  ;;  %v5978_v21 = vpop.f32.mrf.mxu1 }
 0x2b7   : > { %2216 = vmatprep.mubr.f32.mxu0 %v7887_v16  ;;  %v5981_v59 = vpop.f32.mrf.mxu0 }
 0x2b8   : > { %8014 = vst [vmem:[#allocation121_spill] sm:$0xff] %v5981_v59  ;;  %v5983_v7 = vpop.f32.mrf.mxu1 }
 0x2b9   : > { %1715 = vmatmul.mubr.f32.gmra.mxu1 %v7929_v13  ;;  %v5986_v46 = vpop.f32.mrf.mxu0 }
 0x2ba   : > { %8015 = vst [vmem:[#allocation122_spill] sm:$0xff] %v5986_v46  ;;  %2217 = vmatmul.mubr.f32.gmra.mxu0 %v5989_v54  ;;  %1720 = vmatprep.mubr.f32.mxu1 %v7887_v16  ;;  %v5993_v53 = vpop.f32.mrf.mxu1  ;;  %v6004_v46 = vld [vmem:[%s4455_s23 + $0xd8] sm:$0xff] }
 0x2bb   : > { %2222 = vmatprep.mubr.f32.mxu0 %v7887_v16  ;;  %v5996_v35 = vpop.f32.mrf.mxu0 }
 0x2bc   : > { %8016 = vst [vmem:[#allocation123_spill] sm:$0xff] %v5996_v35  ;;  %v5998_v59 = vpop.f32.mrf.mxu1 }
 0x2bd   : > { %1721 = vmatmul.mubr.f32.gmra.mxu1 %v7933_v50  ;;  %v6001_v13 = vpop.f32.mrf.mxu0  ;;  %v4366_v50 = vld [vmem:[%s4455_s23 + $0x38] sm:$0xff] }
 0x2be   : > { %8017 = vst [vmem:[#allocation124_spill] sm:$0xff] %v6001_v13  ;;  %2223 = vmatmul.mubr.f32.gmra.mxu0 %v6004_v46  ;;  %4143 = vmatprep.mubr.f32.mxu1 %v4365_v28  ;;  %v6008_v12 = vpop.f32.mrf.mxu1 }
 0x2bf   : > { %2228 = vmatprep.mubr.f32.mxu0 %v7887_v16  ;;  %v6013_v62 = vpop.f32.mrf.mxu0 }
 0x2c0   : > { %v6011_v35 = vpop.f32.mrf.mxu1  ;;  %8018 = vst [vmem:[#allocation125_spill] sm:$0xff] %v6013_v62  ;;  %v6028_v62 = vld [vmem:[%s4455_s23 + $0xe8] sm:$0xff] }
 0x2c1   : > { %4144 = vmatmul.mubr.f32.vlgmr.msra.gmra.mxu1 %v4366_v50  ;;  %v4371_v50 = vld [vmem:[%s4455_s23 + $0x50] sm:$0xff] }
 0x2c2   : > { %2229 = vmatmul.mubr.f32.gmra.mxu0 %v6017_v43  ;;  %4146 = vmatprep.mubr.f32.mxu1 %v4368_v26 }
 0x2c3   : > { %2234 = vmatprep.mubr.f32.mxu0 %v7887_v16 }
 0x2c4   : > { %v6022_v28 = vpop.f32.mrf.mxu1  ;;  %v6024_v56 = vpop.f32.mrf.mxu0 }
 0x2c5   : > { %8019 = vst [vmem:[#allocation126_spill] sm:$0xff] %v6024_v56  ;;  %4147 = vmatmul.mubr.f32.gmra.mxu1 %v4369_v6  ;;  %v6039_v56 = vld [vmem:[%s4455_s23 + $0xf0] sm:$0xff]  ;;  %v4374_v6 = vld [vmem:[%s4455_s23 + $0x60] sm:$0xff] }
 0x2c6   : > { %2235 = vmatmul.mubr.f32.gmra.mxu0 %v6028_v62  ;;  %4149 = vmatprep.mubr.f32.mxu1 %v4371_v50  ;;  %v6032_v13 = vpop.f32.mrf.mxu1  ;;  %v6034_v26 = vpop.f32.mrf.mxu0 }
 0x2c7   : > { %8020 = vst [vmem:[#allocation127_spill] sm:$0xff] %v6034_v26  ;;  %2240 = vmatprep.mubr.f32.mxu0 %v7887_v16 }
 0x2c9   : > { %4150 = vmatmul.mubr.f32.gmra.mxu1 %v4372_v39  ;;  %v6054_v39 = vld [vmem:[%s4455_s23 + $0xf8] sm:$0xff] }
 0x2ca   : > { %2241 = vmatmul.mubr.f32.gmra.mxu0 %v6039_v56  ;;  %4152 = vmatprep.mubr.f32.mxu1 %v4374_v6  ;;  %v6043_v47 = vpop.f32.mrf.mxu1  ;;  %v6045_v50 = vpop.f32.mrf.mxu0 }
 0x2cb   : > { %8021 = vst [vmem:[#allocation128_spill] sm:$0xff] %v6045_v50  ;;  %2246 = vmatprep.mubr.f32.mxu0 %v7887_v16 }
 0x2cc   : > { %v6048_v26 = vpop.f32.mrf.mxu1  ;;  %v6050_v42 = vpop.f32.mrf.mxu0 }
 0x2cd   : > { %8022 = vst [vmem:[#allocation129_spill] sm:$0xff] %v6050_v42  ;;  %4153 = vmatmul.mubr.f32.gmra.mxu1 %v4375_v4 }
 0x2ce   : > { %2247 = vmatmul.mubr.f32.gmra.mxu0 %v6054_v39  ;;  %4155 = vmatprep.mubr.f32.mxu1 %v4377_v30  ;;  %v6076_v30 = vld [vmem:[%s4455_s23 + $0x108] sm:$0xff] }
 0x2cf   : > { %2252 = vmatprep.mubr.f32.mxu0 %v7887_v16 }
 0x2d0   : > { %v6059_v6 = vpop.f32.mrf.mxu1  ;;  %v6061_v50 = vpop.f32.mrf.mxu0 }
 0x2d1   : > { %8023 = vst [vmem:[#allocation130_spill] sm:$0xff] %v6061_v50  ;;  %4156 = vmatmul.mubr.f32.gmra.mxu1 %v4378_v45 }
 0x2d2   : > { %2253 = vmatmul.mubr.f32.gmra.mxu0 %v6065_v9  ;;  %4158 = vmatprep.mubr.f32.mxu1 %v5839_v27  ;;  %v6069_v4 = vpop.f32.mrf.mxu1  ;;  %v6071_v42 = vpop.f32.mrf.mxu0 }
 0x2d3   : > { %8024 = vst [vmem:[#allocation131_spill] sm:$0xff] %v6071_v42  ;;  %2258 = vmatprep.mubr.f32.mxu0 %v7887_v16 }
 0x2d5   : > { %4159 = vmatmul.mubr.f32.gmra.mxu1 %v5854_v60  ;;  %v4381_v60 = vld [vmem:[%s4455_s23 + $0x110] sm:$0xff] }
 0x2d6   : > { %2259 = vmatmul.mubr.f32.gmra.mxu0 %v6076_v30  ;;  %4161 = vmatprep.mubr.f32.mxu1 %v5869_v25  ;;  %v6080_v45 = vpop.f32.mrf.mxu1  ;;  %v6082_v50 = vpop.f32.mrf.mxu0 }
 0x2d7   : > { %8025 = vst [vmem:[#allocation132_spill] sm:$0xff] %v6082_v50  ;;  %2264 = vmatprep.mubr.f32.mxu0 %v7887_v16  ;;  %v4382_v50 = vld [vmem:[%s4455_s23 + $0x118] sm:$0xff] }
 0x2d8   : > { %v6085_v27 = vpop.f32.mrf.mxu1  ;;  %v6087_v42 = vpop.f32.mrf.mxu0 }
 0x2d9   : > { %8026 = vst [vmem:[#allocation133_spill] sm:$0xff] %v6087_v42  ;;  %4162 = vmatmul.mubr.f32.gmra.mxu1 %v5884_v2 }
 0x2da   : > { %2265 = vmatmul.mubr.f32.gmra.mxu0 %v4381_v60  ;;  %4164 = vmatprep.mubr.f32.mxu1 %v5899_v19 }
 0x2db   : > { %2270 = vmatprep.mubr.f32.mxu0 %v7887_v16 }
 0x2dc   : > { %v6093_v25 = vpop.f32.mrf.mxu1  ;;  %v6095_v24 = vpop.f32.mrf.mxu0 }
 0x2dd   : > { %8027 = vst [vmem:[#allocation134_spill] sm:$0xff] %v6095_v24  ;;  %4165 = vmatmul.mubr.f32.gmra.mxu1 %v5914_v5  ;;  %v4383_v24 = vld [vmem:[%s4455_s23 + $0x120] sm:$0xff] }
 0x2de   : > { %2271 = vmatmul.mubr.f32.gmra.mxu0 %v4382_v50  ;;  %v6099_v63 = vpop.f32.mrf.mxu1  ;;  %v6101_v42 = vpop.f32.mrf.mxu0  ;;  %4167 = vmatprep.mubr.f32.mxu1 %v5929_v29 }
 0x2df   : > { %8028 = vst [vmem:[#allocation135_spill] sm:$0xff] %v6101_v42  ;;  %2276 = vmatprep.mubr.f32.mxu0 %v7887_v16 }
 0x2e1   : > { %v6105_v2 = vpop.f32.mrf.mxu1  ;;  %4168 = vmatmul.mubr.f32.gmra.mxu1 %v5944_v14  ;;  %v4384_v14 = vld [vmem:[%s4455_s23 + $0x128] sm:$0xff] }
 0x2e2   : > { %v6108_v19 = vpop.f32.mrf.mxu0  ;;  %2277 = vmatmul.mubr.f32.gmra.mxu0 %v4383_v24  ;;  %4170 = vmatprep.mubr.f32.mxu1 %v5959_v37 }
 0x2e3   : > { %8029 = vst [vmem:[#allocation136_spill] sm:$0xff] %v6108_v19  ;;  %v6112_v5 = vpop.f32.mrf.mxu1  ;;  %2282 = vmatprep.mubr.f32.mxu0 %v7887_v16 }
 0x2e4   : > { %v6115_v42 = vpop.f32.mrf.mxu0 }
 0x2e5   : > { %8030 = vst [vmem:[#allocation137_spill] sm:$0xff] %v6115_v42  ;;  %v6117_v29 = vpop.f32.mrf.mxu1  ;;  %4171 = vmatmul.mubr.f32.gmra.mxu1 %v5974_v32  ;;  %v4385_v32 = vld [vmem:[%s4455_s23 + $0x130] sm:$0xff] }
 0x2e6   : > { %v6120_v40 = vpop.f32.mrf.mxu0  ;;  %2283 = vmatmul.mubr.f32.gmra.mxu0 %v4384_v14  ;;  %4173 = vmatprep.mubr.f32.mxu1 %v5989_v54 }
 0x2e7   : > { %8031 = vst [vmem:[#allocation138_spill] sm:$0xff] %v6120_v40  ;;  %v6124_v19 = vpop.f32.mrf.mxu1  ;;  %2288 = vmatprep.mubr.f32.mxu0 %v7887_v16 }
 0x2e8   : > { %v6127_v37 = vpop.f32.mrf.mxu0 }
 0x2e9   : > { %8032 = vst [vmem:[#allocation139_spill] sm:$0xff] %v6127_v37  ;;  %v6129_v22 = vpop.f32.mrf.mxu1  ;;  %4174 = vmatmul.mubr.f32.gmra.mxu1 %v6004_v46  ;;  %v4386_v46 = vld [vmem:[%s4455_s23 + $0x138] sm:$0xff] }
 0x2ea   : > { %v6132_v42 = vpop.f32.mrf.mxu0  ;;  %2289 = vmatmul.mubr.f32.gmra.mxu0 %v4385_v32  ;;  %4176 = vmatprep.mubr.f32.mxu1 %v6017_v43 }
 0x2eb   : > { %8033 = vst [vmem:[#allocation140_spill] sm:$0xff] %v6132_v42  ;;  %v6136_v40 = vpop.f32.mrf.mxu1  ;;  %2294 = vmatprep.mubr.f32.mxu0 %v7887_v16 }
 0x2ec   : > { %v6139_v54 = vpop.f32.mrf.mxu0 }
 0x2ed   : > { %8034 = vst [vmem:[#allocation141_spill] sm:$0xff] %v6139_v54  ;;  %v6141_v0 = vpop.f32.mrf.mxu1  ;;  %4177 = vmatmul.mubr.f32.gmra.mxu1 %v6028_v62  ;;  %v4387_v62 = vld [vmem:[%s4455_s23 + $0x140] sm:$0xff] }
 0x2ee   : > { %v6144_v37 = vpop.f32.mrf.mxu0  ;;  %2295 = vmatmul.mubr.f32.gmra.mxu0 %v4386_v46  ;;  %4179 = vmatprep.mubr.f32.mxu1 %v6039_v56 }
 0x2ef   : > { %8035 = vst [vmem:[#allocation142_spill] sm:$0xff] %v6144_v37  ;;  %v6148_v42 = vpop.f32.mrf.mxu1  ;;  %2300 = vmatprep.mubr.f32.mxu0 %v7887_v16 }
 0x2f0   : > { %8036 = vst [vmem:[#allocation143_spill] sm:$0xff] %v6148_v42  ;;  %v6151_v43 = vpop.f32.mrf.mxu0 }
 0x2f1   : > { %8037 = vst [vmem:[#allocation144_spill] sm:$0xff] %v6151_v43  ;;  %v6153_v58 = vpop.f32.mrf.mxu1  ;;  %4180 = vmatmul.mubr.f32.gmra.mxu1 %v6054_v39  ;;  %v4388_v39 = vld [vmem:[%s4455_s23 + $0x148] sm:$0xff] }
 0x2f2   : > { %v6156_v54 = vpop.f32.mrf.mxu0  ;;  %2301 = vmatmul.mubr.f32.gmra.mxu0 %v4387_v62  ;;  %4182 = vmatprep.mubr.f32.mxu1 %v6065_v9 }
 0x2f3   : > { %8038 = vst [vmem:[#allocation145_spill] sm:$0xff] %v6156_v54  ;;  %v6160_v37 = vpop.f32.mrf.mxu1  ;;  %2306 = vmatprep.mubr.f32.mxu0 %v7887_v16 }
 0x2f4   : > { %8039 = vst [vmem:[#allocation146_spill] sm:$0xff] %v6160_v37  ;;  %v6163_v56 = vpop.f32.mrf.mxu0 }
 0x2f5   : > { %8040 = vst [vmem:[#allocation147_spill] sm:$0xff] %v6163_v56  ;;  %v6165_v42 = vpop.f32.mrf.mxu1  ;;  %4183 = vmatmul.mubr.f32.gmra.mxu1 %v6076_v30 }
 0x2f6   : > { %8041 = vst [vmem:[#allocation148_spill] sm:$0xff] %v6165_v42  ;;  %v6168_v43 = vpop.f32.mrf.mxu0  ;;  %2307 = vmatmul.mubr.f32.gmra.mxu0 %v4388_v39  ;;  %4185 = vmatprep.mubr.f32.mxu1 %v4381_v60  ;;  %v4389_v42 = vld [vmem:[%s4455_s23 + $0x150] sm:$0xff] }
 0x2f7   : > { %8042 = vst [vmem:[#allocation149_spill] sm:$0xff] %v6168_v43  ;;  %v6171_v54 = vpop.f32.mrf.mxu1  ;;  %2312 = vmatprep.mubr.f32.mxu0 %v7887_v16 }
 0x2f8   : > { %8043 = vst [vmem:[#allocation150_spill] sm:$0xff] %v6171_v54  ;;  %v6174_v9 = vpop.f32.mrf.mxu0 }
 0x2f9   : > { %8044 = vst [vmem:[#allocation151_spill] sm:$0xff] %v6174_v9  ;;  %v6176_v37 = vpop.f32.mrf.mxu1  ;;  %4186 = vmatmul.mubr.f32.gmra.mxu1 %v4382_v50  ;;  %v4390_v9 = vld [vmem:[%s4455_s23 + $0x158] sm:$0xff] }
 0x2fa   : > { %v6178_v56 = vpop.f32.mrf.mxu0  ;;  %2313 = vmatmul.mubr.f32.gmra.mxu0 %v4389_v42  ;;  %4188 = vmatprep.mubr.f32.mxu1 %v4383_v24 }
 0x2fb   : > { %8045 = vst [vmem:[#allocation152_spill] sm:$0xff] %v6178_v56  ;;  %v6181_v30 = vpop.f32.mrf.mxu1  ;;  %2318 = vmatprep.mubr.f32.mxu0 %v7887_v16 }
 0x2fc   : > { %8046 = vst [vmem:[#allocation153_spill] sm:$0xff] %v6181_v30  ;;  %v6184_v60 = vpop.f32.mrf.mxu0 }
 0x2fd   : > { %8047 = vst [vmem:[#allocation154_spill] sm:$0xff] %v6184_v60  ;;  %v6186_v43 = vpop.f32.mrf.mxu1  ;;  %4189 = vmatmul.mubr.f32.gmra.mxu1 %v4384_v14  ;;  %v4391_v60 = vld [vmem:[%s4455_s23 + $0x160] sm:$0xff] }
 0x2fe   : > { %v6188_v54 = vpop.f32.mrf.mxu0  ;;  %2319 = vmatmul.mubr.f32.gmra.mxu0 %v4390_v9  ;;  %4191 = vmatprep.mubr.f32.mxu1 %v4385_v32 }
 0x2ff   : > { %8048 = vst [vmem:[#allocation155_spill] sm:$0xff] %v6188_v54  ;;  %v6191_v50 = vpop.f32.mrf.mxu1  ;;  %2324 = vmatprep.mubr.f32.mxu0 %v7887_v16 }
 0x300   : > { %8049 = vst [vmem:[#allocation156_spill] sm:$0xff] %v6191_v50  ;;  %v6194_v24 = vpop.f32.mrf.mxu0 }
 0x301   : > { %8050 = vst [vmem:[#allocation157_spill] sm:$0xff] %v6194_v24  ;;  %v6196_v56 = vpop.f32.mrf.mxu1  ;;  %4192 = vmatmul.mubr.f32.gmra.mxu1 %v4386_v46  ;;  %v4392_v24 = vld [vmem:[%s4455_s23 + $0x168] sm:$0xff] }
 0x302   : > { %v6198_v30 = vpop.f32.mrf.mxu0  ;;  %2325 = vmatmul.mubr.f32.gmra.mxu0 %v4391_v60  ;;  %4194 = vmatprep.mubr.f32.mxu1 %v4387_v62 }
 0x303   : > { %8051 = vst [vmem:[#allocation158_spill] sm:$0xff] %v6198_v30  ;;  %v6201_v14 = vpop.f32.mrf.mxu1  ;;  %2330 = vmatprep.mubr.f32.mxu0 %v7887_v16 }
 0x304   : > { %8052 = vst [vmem:[#allocation159_spill] sm:$0xff] %v6201_v14  ;;  %v6204_v32 = vpop.f32.mrf.mxu0 }
 0x305   : > { %8053 = vst [vmem:[#allocation160_spill] sm:$0xff] %v6204_v32  ;;  %v6206_v54 = vpop.f32.mrf.mxu1  ;;  %4195 = vmatmul.mubr.f32.gmra.mxu1 %v4388_v39  ;;  %v4393_v32 = vld [vmem:[%s4455_s23 + $0x170] sm:$0xff] }
 0x306   : > { %v6208_v50 = vpop.f32.mrf.mxu0  ;;  %2331 = vmatmul.mubr.f32.gmra.mxu0 %v4392_v24  ;;  %4197 = vmatprep.mubr.f32.mxu1 %v4389_v42 }
 0x307   : > { %8054 = vst [vmem:[#allocation161_spill] sm:$0xff] %v6208_v50  ;;  %v6211_v46 = vpop.f32.mrf.mxu1  ;;  %2336 = vmatprep.mubr.f32.mxu0 %v7887_v16 }
 0x308   : > { %8055 = vst [vmem:[#allocation162_spill] sm:$0xff] %v6211_v46  ;;  %v6214_v62 = vpop.f32.mrf.mxu0 }
 0x309   : > { %8056 = vst [vmem:[#allocation163_spill] sm:$0xff] %v6214_v62  ;;  %v6216_v30 = vpop.f32.mrf.mxu1  ;;  %4198 = vmatmul.mubr.f32.gmra.mxu1 %v4390_v9  ;;  %v4394_v62 = vld [vmem:[%s4455_s23 + $0x178] sm:$0xff] }
 0x30a   : > { %8057 = vst [vmem:[#allocation164_spill] sm:$0xff] %v6216_v30  ;;  %v6218_v14 = vpop.f32.mrf.mxu0  ;;  %2337 = vmatmul.mubr.f32.gmra.mxu0 %v4393_v32  ;;  %4200 = vmatprep.mubr.f32.mxu1 %v4391_v60 }
 0x30b   : > { %8058 = vst [vmem:[#allocation165_spill] sm:$0xff] %v6218_v14  ;;  %v6221_v39 = vpop.f32.mrf.mxu1  ;;  %2342 = vmatprep.mubr.f32.mxu0 %v7887_v16 }
 0x30c   : > { %8059 = vst [vmem:[#allocation166_spill] sm:$0xff] %v6221_v39  ;;  %v6224_v42 = vpop.f32.mrf.mxu0  ;;  %v4400_v39 = vld [vmem:[%s4455_s23 + $0x1a8] sm:$0xff] }
 0x30d   : > { %8060 = vst [vmem:[#allocation167_spill] sm:$0xff] %v6224_v42  ;;  %v6226_v50 = vpop.f32.mrf.mxu1  ;;  %4201 = vmatmul.mubr.f32.gmra.mxu1 %v4392_v24 }
 0x30e   : > { %8061 = vst [vmem:[#allocation168_spill] sm:$0xff] %v6226_v50  ;;  %v6228_v46 = vpop.f32.mrf.mxu0  ;;  %2343 = vmatmul.mubr.f32.gmra.mxu0 %v4394_v62  ;;  %4203 = vmatprep.mubr.f32.mxu1 %v4393_v32  ;;  %v4395_v50 = vld [vmem:[%s4455_s23 + $0x180] sm:$0xff] }
 0x30f   : > { %8062 = vst [vmem:[#allocation169_spill] sm:$0xff] %v6228_v46  ;;  %v6231_v9 = vpop.f32.mrf.mxu1  ;;  %2348 = vmatprep.mubr.f32.mxu0 %v7887_v16 }
 0x310   : > { %8063 = vst [vmem:[#allocation170_spill] sm:$0xff] %v6231_v9  ;;  %v6234_v60 = vpop.f32.mrf.mxu0  ;;  %v4396_v9 = vld [vmem:[%s4455_s23 + $0x188] sm:$0xff] }
 0x311   : > { %8064 = vst [vmem:[#allocation171_spill] sm:$0xff] %v6234_v60  ;;  %v6236_v14 = vpop.f32.mrf.mxu1  ;;  %4204 = vmatmul.mubr.f32.gmra.mxu1 %v4394_v62  ;;  %v4397_v62 = vld [vmem:[%s4455_s23 + $0x190] sm:$0xff] }
 0x312   : > { %8065 = vst [vmem:[#allocation172_spill] sm:$0xff] %v6236_v14  ;;  %v6238_v42 = vpop.f32.mrf.mxu0  ;;  %2349 = vmatmul.mubr.f32.gmra.mxu0 %v4395_v50  ;;  %4206 = vmatprep.mubr.f32.mxu1 %v4395_v50 }
 0x313   : > { %8066 = vst [vmem:[#allocation173_spill] sm:$0xff] %v6238_v42  ;;  %v6241_v24 = vpop.f32.mrf.mxu1  ;;  %2354 = vmatprep.mubr.f32.mxu0 %v7887_v16 }
 0x314   : > { %8067 = vst [vmem:[#allocation174_spill] sm:$0xff] %v6241_v24  ;;  %v6244_v32 = vpop.f32.mrf.mxu0 }
 0x315   : > { %8068 = vst [vmem:[#allocation175_spill] sm:$0xff] %v6244_v32  ;;  %v6246_v46 = vpop.f32.mrf.mxu1  ;;  %4207 = vmatmul.mubr.f32.gmra.mxu1 %v4396_v9  ;;  %v4398_v32 = vld [vmem:[%s4455_s23 + $0x198] sm:$0xff] }
 0x316   : > { %8069 = vst [vmem:[#allocation176_spill] sm:$0xff] %v6246_v46  ;;  %v6249_v60 = vpop.f32.mrf.mxu0  ;;  %2355 = vmatmul.mubr.f32.gmra.mxu0 %v4396_v9  ;;  %4209 = vmatprep.mubr.f32.mxu1 %v4397_v62  ;;  %v4399_v46 = vld [vmem:[%s4455_s23 + $0x1a0] sm:$0xff] }
 0x317   : > { %8070 = vst [vmem:[#allocation177_spill] sm:$0xff] %v6249_v60  ;;  %v6252_v42 = vpop.f32.mrf.mxu1  ;;  %2360 = vmatprep.mubr.f32.mxu0 %v7887_v16 }
 0x318   : > { %8071 = vst [vmem:[#allocation178_spill] sm:$0xff] %v6252_v42  ;;  %v6255_v50 = vpop.f32.mrf.mxu0 }
 0x319   : > { %8072 = vst [vmem:[#allocation179_spill] sm:$0xff] %v6255_v50  ;;  %v6257_v24 = vpop.f32.mrf.mxu1  ;;  %4210 = vmatmul.mubr.f32.gmra.mxu1 %v4398_v32 }
 0x31a   : > { %8073 = vst [vmem:[#allocation180_spill] sm:$0xff] %v6257_v24  ;;  %v6260_v14 = vpop.f32.mrf.mxu0  ;;  %2361 = vmatmul.mubr.f32.gmra.mxu0 %v4397_v62  ;;  %4212 = vmatprep.mubr.f32.mxu1 %v4399_v46 }
 0x31b   : > { %8074 = vst [vmem:[#allocation181_spill] sm:$0xff] %v6260_v14  ;;  %v6263_v60 = vpop.f32.mrf.mxu1  ;;  %2366 = vmatprep.mubr.f32.mxu0 %v7887_v16 }
 0x31c   : > { %8075 = vst [vmem:[#allocation182_spill] sm:$0xff] %v6263_v60  ;;  %v6266_v9 = vpop.f32.mrf.mxu0 }
 0x31d   : > { %8076 = vst [vmem:[#allocation183_spill] sm:$0xff] %v6266_v9  ;;  %v6268_v42 = vpop.f32.mrf.mxu1  ;;  %4213 = vmatmul.mubr.f32.gmra.mxu1 %v4400_v39 }
 0x31e   : > { %8077 = vst [vmem:[#allocation184_spill] sm:$0xff] %v6268_v42  ;;  %v6271_v50 = vpop.f32.mrf.mxu0  ;;  %2367 = vmatmul.mubr.f32.gmra.mxu0 %v4398_v32 }
 0x31f   : > { %8078 = vst [vmem:[#allocation185_spill] sm:$0xff] %v6271_v50  ;;  %v6273_v24 = vpop.f32.mrf.mxu1  ;;  %2372 = vmatprep.mubr.f32.mxu0 %v7887_v16 }
 0x320   : > { %8079 = vst [vmem:[#allocation186_spill] sm:$0xff] %v6273_v24  ;;  %v6276_v62 = vpop.f32.mrf.mxu0 }
 0x321   : > { %8080 = vst [vmem:[#allocation187_spill] sm:$0xff] %v6276_v62  ;;  %v6278_v14 = vpop.f32.mrf.mxu1  ;;  %v1441_v62 = vadd.f32 %v5978_v21, %v5469_v1  ;;  %v1449_v1 = vadd.f32 %v5998_v59, %v5512_v18 }
 0x322   : > { %v6280_v60 = vpop.f32.mrf.mxu0  ;;  %2373 = vmatmul.mubr.f32.gmra.mxu0 %v4399_v46 }
 0x323   : > { %8081 = vst [vmem:[#allocation188_spill] sm:$0xff] %v6280_v60  ;;  %v6282_v30 = vpop.f32.mrf.mxu1  ;;  %2378 = vmatprep.mubr.f32.mxu0 %v7887_v16  ;;  %v1443_v16 = vadd.f32 %v5983_v7, %v5479_v61  ;;  %v8092_v7 = vld [vmem:[#allocation2_spill] sm:$0xff] }
 0x324   : > { %8082 = vst [vmem:[#allocation189_spill] sm:$0xff] %v6282_v30  ;;  %v6285_v9 = vpop.f32.mrf.mxu0  ;;  %vm3027_vm0 = vcmp.lt.s32.totalorder %v8092_v7, 2  ;;  %vm2882_vm1 = vcmp.lt.s32.totalorder %v8092_v7, 1  ;;  %vm3323_vm8 = vcmp.ge.s32.totalorder %v8092_v7, 2 }
 0x325   : > { %8083 = vst [vmem:[#allocation190_spill] sm:$0xff] %v6285_v9  ;;  %v6287_v42 = vpop.f32.mrf.mxu1 }
 0x326   : > { %8084 = vst [vmem:[#allocation191_spill] sm:$0xff] %v6287_v42  ;;  %v6289_v32 = vpop.f32.mrf.mxu0  ;;  %2379 = vmatmul.mubr.f32.gmra.mxu0 %v4400_v39  ;;  %v1447_v39 = vadd.f32 %v5993_v53, %v5498_v11 }
 0x327   : > { %8085 = vst [vmem:[#allocation192_spill] sm:$0xff] %v6289_v32  ;;  %v6291_v50 = vpop.f32.mrf.mxu1 }
 0x328   : > { %8086 = vst [vmem:[#allocation193_spill] sm:$0xff] %v6291_v50  ;;  %v6293_v24 = vpop.f32.mrf.mxu0 }
 0x329   : > { %8087 = vst [vmem:[#allocation194_spill] sm:$0xff] %v6293_v24  ;;  %v6297_v60 = vpop.f32.mrf.mxu1 }
 0x32a   : > { %8088 = vst [vmem:[#allocation195_spill] sm:$0xff] %v6297_v60  ;;  %v2098_v46 = vpop.f32.mrf.mxu0 }
 0x32b   : > { %v6301_v30 = vadd.f32 %v2098_v46, %v1441_v62  ;;  %v6303_v9 = vpop.f32.mrf.mxu1  ;;  %v1453_v62 = vadd.f32 %v6008_v12, %v5534_v15 }
 0x32c   : > { %v2100_v42 = vpop.f32.mrf.mxu0 }
 0x32d   : > { %8089 = vst [vmem:[#allocation196_spill] sm:$0xff] %v6301_v30  ;;  %v6307_v32 = vadd.f32 %v2100_v42, %v1443_v16  ;;  %v6309_v24 = vpop.f32.mrf.mxu1  ;;  %v7869_v46 = vrot.slane %v6301_v30, 6  ;;  %v1455_v42 = vadd.f32 %v6011_v35, %v5542_v10 }
 0x32e   : > { %8091 = vst [vmem:[#allocation198_spill] sm:$0xff] %v6309_v24  ;;  %v2104_v50 = vpop.f32.mrf.mxu0 }
 0x32f   : > { %8090 = vst [vmem:[#allocation197_spill] sm:$0xff] %v6307_v32  ;;  %v2693_v21 = vadd.f32 %v2104_v50, %v1447_v39  ;;  %v6313_v60 = vpop.f32.mrf.mxu1  ;;  %v7871_v18 = vrot.slane %v6307_v32, 7 }
 0x330   : > { %v2106_v61 = vpop.f32.mrf.mxu0 }
 0x331   : > { %v2980_v11 = vrot.slane %v2693_v21, 6  ;;  %v2694_v16 = vadd.f32 %v2106_v61, %v1449_v1  ;;  %v6319_v53 = vpop.f32.mrf.mxu1  ;;  %v1459_v1 = vadd.f32 %v6022_v28, %v5551_v17 }
 0x332   : > { %v2110_v24 = vpop.f32.mrf.mxu0 }
 0x333   : > { %v2835_v59 = vrot.slane %v2694_v16, 7  ;;  %v2696_v50 = vadd.f32 %v2110_v24, %v1453_v62  ;;  %v6325_v39 = vpop.f32.mrf.mxu1  ;;  %v6331_v15 = vsel %vm3027_vm0, %v7869_v46, %v2980_v11  ;;  %v1461_v62 = vadd.f32 %v6032_v13, %v5556_v34 }
 0x334   : > { %v2112_v12 = vpop.f32.mrf.mxu0  ;;  %v1467_v13 = vadd.f32 %v6048_v26, %v5571_v38  ;;  %v1473_v26 = vadd.f32 %v6069_v4, %v5584_v3  ;;  %v1479_v4 = vadd.f32 %v6085_v27, %v5599_v44  ;;  %v1485_v27 = vadd.f32 %v6099_v63, %v5612_v51 }
 0x335   : > { %v2981_v10 = vrot.slane %v2696_v50, 6  ;;  %v2697_v35 = vadd.f32 %v2112_v12, %v1455_v42  ;;  %v6335_v21 = vpop.f32.mrf.mxu1  ;;  %v6341_v24 = vsel %vm2882_vm1, %v7871_v18, %v2835_v59  ;;  %v1465_v42 = vadd.f32 %v6043_v47, %v5564_v52 }
 0x336   : > { %v2116_v61 = vpop.f32.mrf.mxu0  ;;  %v1471_v47 = vadd.f32 %v6059_v6, %v5579_v8  ;;  %v1477_v6 = vadd.f32 %v6080_v45, %v5592_v48  ;;  %v1483_v45 = vadd.f32 %v6093_v25, %v5607_v31  ;;  %v1489_v25 = vadd.f32 %v6105_v2, %v5620_v23 }
 0x337   : > { %v2836_v16 = vrot.slane %v2697_v35, 7  ;;  %v2699_v46 = vadd.f32 %v2116_v61, %v1459_v1  ;;  %v6345_v30 = vpop.f32.mrf.mxu1  ;;  %v6349_v17 = vsel %vm3027_vm0, %v2980_v11, %v2981_v10  ;;  %v1491_v63 = vadd.f32 %v6112_v5, %v5627_v49 }
 0x338   : > { %v2118_v28 = vpop.f32.mrf.mxu0  ;;  %v1495_v2 = vadd.f32 %v6117_v29, %v5632_v55  ;;  %v1497_v5 = vadd.f32 %v6124_v19, %v5639_v41  ;;  %v1501_v29 = vadd.f32 %v6129_v22, %v5644_v36  ;;  %v1503_v19 = vadd.f32 %v6136_v40, %v5651_v33  ;;  %v8105_v33 = vld [vmem:[#allocation143_spill] sm:$0xff] }
 0x339   : > { %v2982_v50 = vrot.slane %v2699_v46, 6  ;;  %v2700_v12 = vadd.f32 %v2118_v28, %v1461_v62  ;;  %v6353_v18 = vpop.f32.mrf.mxu1  ;;  %v6357_v32 = vsel %vm2882_vm1, %v2835_v59, %v2836_v16  ;;  %v1507_v22 = vadd.f32 %v6141_v0, %v5656_v57  ;;  %v8107_v57 = vld [vmem:[#allocation5_spill] sm:$0xff] }
 0x33a   : > { %v2122_v34 = vpop.f32.mrf.mxu0 }
 0x33b   : > { %v2837_v1 = vrot.slane %v2700_v12, 7  ;;  %v2702_v35 = vadd.f32 %v2122_v34, %v1465_v42  ;;  %v6361_v11 = vpop.f32.mrf.mxu1  ;;  %v6365_v61 = vsel %vm3027_vm0, %v2981_v10, %v2982_v50 }
 0x33c   : > { %v2124_v52 = vpop.f32.mrf.mxu0 }
 0x33d   : > { %v2983_v46 = vrot.slane %v2702_v35, 6  ;;  %v2703_v62 = vadd.f32 %v2124_v52, %v1467_v13  ;;  %v6369_v59 = vpop.f32.mrf.mxu1  ;;  %v6373_v28 = vsel %vm2882_vm1, %v2836_v16, %v2837_v1 }
 0x33e   : > { %v2128_v38 = vpop.f32.mrf.mxu0 }
 0x33f   : > { %v2838_v42 = vrot.slane %v2703_v62, 7  ;;  %v2705_v12 = vadd.f32 %v2128_v38, %v1471_v47  ;;  %v6377_v10 = vpop.f32.mrf.mxu1  ;;  %v6381_v34 = vsel %vm3027_vm0, %v2982_v50, %v2983_v46 }
 0x340   : > { %8093 = vst [vmem:[#allocation2_spill] sm:$0xff] %v6377_v10  ;;  %v2130_v8 = vpop.f32.mrf.mxu0 }
 0x341   : > { %v2984_v13 = vrot.slane %v2705_v12, 6  ;;  %v2706_v35 = vadd.f32 %v2130_v8, %v1473_v26  ;;  %v6385_v16 = vpop.f32.mrf.mxu1  ;;  %v6389_v52 = vsel %vm2882_vm1, %v2837_v1, %v2838_v42 }
 0x342   : > { %8094 = vst [vmem:[#allocation199_spill] sm:$0xff] %v6385_v16  ;;  %v2134_v3 = vpop.f32.mrf.mxu0 }
 0x343   : > { %v2839_v47 = vrot.slane %v2706_v35, 7  ;;  %v2708_v62 = vadd.f32 %v2134_v3, %v1477_v6  ;;  %v6393_v50 = vpop.f32.mrf.mxu1  ;;  %v6397_v38 = vsel %vm3027_vm0, %v2983_v46, %v2984_v13 }
 0x344   : > { %8095 = vst [vmem:[#allocation200_spill] sm:$0xff] %v6393_v50  ;;  %v2136_v48 = vpop.f32.mrf.mxu0 }
 0x345   : > { %v2985_v26 = vrot.slane %v2708_v62, 6  ;;  %v2709_v12 = vadd.f32 %v2136_v48, %v1479_v4  ;;  %v6401_v1 = vpop.f32.mrf.mxu1  ;;  %v6405_v8 = vsel %vm2882_vm1, %v2838_v42, %v2839_v47 }
 0x346   : > { %8096 = vst [vmem:[#allocation201_spill] sm:$0xff] %v6401_v1  ;;  %v2140_v44 = vpop.f32.mrf.mxu0 }
 0x347   : > { %v2840_v6 = vrot.slane %v2709_v12, 7  ;;  %v2711_v35 = vadd.f32 %v2140_v44, %v1483_v45  ;;  %v6409_v46 = vpop.f32.mrf.mxu1  ;;  %v6413_v3 = vsel %vm3027_vm0, %v2984_v13, %v2985_v26 }
 0x348   : > { %8097 = vst [vmem:[#allocation202_spill] sm:$0xff] %v6409_v46  ;;  %v2142_v31 = vpop.f32.mrf.mxu0 }
 0x349   : > { %v2986_v4 = vrot.slane %v2711_v35, 6  ;;  %v2712_v62 = vadd.f32 %v2142_v31, %v1485_v27  ;;  %v6417_v42 = vpop.f32.mrf.mxu1  ;;  %v6421_v48 = vsel %vm2882_vm1, %v2839_v47, %v2840_v6 }
 0x34a   : > { %8098 = vst [vmem:[#allocation203_spill] sm:$0xff] %v6417_v42  ;;  %v2146_v51 = vpop.f32.mrf.mxu0 }
 0x34b   : > { %v2841_v45 = vrot.slane %v2712_v62, 7  ;;  %v2714_v12 = vadd.f32 %v2146_v51, %v1489_v25  ;;  %v6425_v13 = vpop.f32.mrf.mxu1  ;;  %v6429_v44 = vsel %vm3027_vm0, %v2985_v26, %v2986_v4 }
 0x34c   : > { %8099 = vst [vmem:[#allocation204_spill] sm:$0xff] %v6425_v13  ;;  %v2148_v23 = vpop.f32.mrf.mxu0 }
 0x34d   : > { %v2987_v27 = vrot.slane %v2714_v12, 6  ;;  %v2715_v35 = vadd.f32 %v2148_v23, %v1491_v63  ;;  %v6433_v47 = vpop.f32.mrf.mxu1  ;;  %v6437_v31 = vsel %vm2882_vm1, %v2840_v6, %v2841_v45 }
 0x34e   : > { %8100 = vst [vmem:[#allocation205_spill] sm:$0xff] %v6433_v47  ;;  %v2152_v49 = vpop.f32.mrf.mxu0 }
 0x34f   : > { %v2842_v25 = vrot.slane %v2715_v35, 7  ;;  %v2717_v62 = vadd.f32 %v2152_v49, %v1495_v2  ;;  %v6441_v26 = vpop.f32.mrf.mxu1  ;;  %v6445_v51 = vsel %vm3027_vm0, %v2986_v4, %v2987_v27 }
 0x350   : > { %8101 = vst [vmem:[#allocation206_spill] sm:$0xff] %v6441_v26  ;;  %v2154_v55 = vpop.f32.mrf.mxu0 }
 0x351   : > { %v2988_v63 = vrot.slane %v2717_v62, 6  ;;  %v2718_v12 = vadd.f32 %v2154_v55, %v1497_v5  ;;  %v6449_v6 = vpop.f32.mrf.mxu1  ;;  %v6453_v23 = vsel %vm2882_vm1, %v2841_v45, %v2842_v25 }
 0x352   : > { %8102 = vst [vmem:[#allocation207_spill] sm:$0xff] %v6449_v6  ;;  %v2158_v41 = vpop.f32.mrf.mxu0 }
 0x353   : > { %v2843_v2 = vrot.slane %v2718_v12, 7  ;;  %v2720_v35 = vadd.f32 %v2158_v41, %v1501_v29  ;;  %v6457_v4 = vpop.f32.mrf.mxu1  ;;  %v6461_v49 = vsel %vm3027_vm0, %v2987_v27, %v2988_v63  ;;  %v1509_v29 = vadd.f32 %v8105_v33, %v5663_v20 }
 0x354   : > { %8103 = vst [vmem:[#allocation208_spill] sm:$0xff] %v6457_v4  ;;  %v2160_v36 = vpop.f32.mrf.mxu0 }
 0x355   : > { %v2989_v5 = vrot.slane %v2720_v35, 6  ;;  %v2721_v62 = vadd.f32 %v2160_v36, %v1503_v19  ;;  %v6465_v45 = vpop.f32.mrf.mxu1  ;;  %v6469_v55 = vsel %vm2882_vm1, %v2842_v25, %v2843_v2  ;;  %v1513_v19 = vadd.f32 %v6153_v58, %v8107_v57 }
 0x356   : > { %8104 = vst [vmem:[#allocation209_spill] sm:$0xff] %v6465_v45  ;;  %v2164_v40 = vpop.f32.mrf.mxu0 }
 0x357   : > { %v2844_v12 = vrot.slane %v2721_v62, 7  ;;  %v2723_v41 = vadd.f32 %v2164_v40, %v1507_v22  ;;  %v6473_v27 = vpop.f32.mrf.mxu1  ;;  %v6477_v4 = vsel %vm3027_vm0, %v2988_v63, %v2989_v5  ;;  %v8109_v22 = vld [vmem:[#allocation7_spill] sm:$0xff]  ;;  %v8110_v62 = vld [vmem:[#allocation146_spill] sm:$0xff] }
 0x358   : > { %8106 = vst [vmem:[#allocation143_spill] sm:$0xff] %v6473_v27  ;;  %v2166_v0 = vpop.f32.mrf.mxu0  ;;  %v1515_v40 = vadd.f32 %v8110_v62, %v8109_v22 }
 0x359   : > { %v2990_v35 = vrot.slane %v2723_v41, 6  ;;  %v2724_v36 = vadd.f32 %v2166_v0, %v1509_v29  ;;  %v6481_v25 = vpop.f32.mrf.mxu1  ;;  %v6485_v45 = vsel %vm2882_vm1, %v2843_v2, %v2844_v12  ;;  %v8112_v29 = vld [vmem:[#allocation37_spill] sm:$0xff]  ;;  %v8113_v41 = vld [vmem:[#allocation148_spill] sm:$0xff] }
 0x35a   : > { %8108 = vst [vmem:[#allocation5_spill] sm:$0xff] %v6481_v25  ;;  %v2170_v20 = vpop.f32.mrf.mxu0  ;;  %v1519_v0 = vadd.f32 %v8113_v41, %v8112_v29 }
 0x35b   : > { %v2845_v33 = vrot.slane %v2724_v36, 7  ;;  %v2726_v27 = vadd.f32 %v2170_v20, %v1513_v19  ;;  %v6489_v63 = vpop.f32.mrf.mxu1  ;;  %v6493_v6 = vsel %vm3027_vm0, %v2989_v5, %v2990_v35  ;;  %v8115_v19 = vld [vmem:[#allocation9_spill] sm:$0xff]  ;;  %v8116_v20 = vld [vmem:[#allocation150_spill] sm:$0xff] }
 0x35c   : > { %8111 = vst [vmem:[#allocation7_spill] sm:$0xff] %v6489_v63  ;;  %v2172_v58 = vpop.f32.mrf.mxu0  ;;  %v1521_v22 = vadd.f32 %v8116_v20, %v8115_v19 }
 0x35d   : > { %v2991_v57 = vrot.slane %v2726_v27, 6  ;;  %v2727_v25 = vadd.f32 %v2172_v58, %v1515_v40  ;;  %v6497_v2 = vpop.f32.mrf.mxu1  ;;  %v6501_v26 = vsel %vm2882_vm1, %v2844_v12, %v2845_v33  ;;  %v8118_v40 = vld [vmem:[#allocation39_spill] sm:$0xff] }
 0x35e   : > { %8114 = vst [vmem:[#allocation146_spill] sm:$0xff] %v6497_v2  ;;  %v2176_v36 = vpop.f32.mrf.mxu0  ;;  %v1525_v58 = vadd.f32 %v6176_v37, %v8118_v40 }
 0x35f   : > { %v2846_v62 = vrot.slane %v2727_v25, 7  ;;  %v2729_v63 = vadd.f32 %v2176_v36, %v1519_v0  ;;  %v6505_v5 = vpop.f32.mrf.mxu1  ;;  %v6509_v47 = vsel %vm3027_vm0, %v2990_v35, %v2991_v57  ;;  %v8120_v0 = vld [vmem:[#allocation11_spill] sm:$0xff]  ;;  %v8121_v36 = vld [vmem:[#allocation153_spill] sm:$0xff] }
 0x360   : > { %8117 = vst [vmem:[#allocation37_spill] sm:$0xff] %v6505_v5  ;;  %v2178_v27 = vpop.f32.mrf.mxu0  ;;  %v1527_v19 = vadd.f32 %v8121_v36, %v8120_v0 }
 0x361   : > { %v2992_v29 = vrot.slane %v2729_v63, 6  ;;  %v2730_v41 = vadd.f32 %v2178_v27, %v1521_v22  ;;  %v6513_v12 = vpop.f32.mrf.mxu1  ;;  %v6517_v2 = vsel %vm2882_vm1, %v2845_v33, %v2846_v62  ;;  %v8123_v63 = vld [vmem:[#allocation41_spill] sm:$0xff] }
 0x362   : > { %8119 = vst [vmem:[#allocation148_spill] sm:$0xff] %v6513_v12  ;;  %v2182_v25 = vpop.f32.mrf.mxu0  ;;  %v1531_v22 = vadd.f32 %v6186_v43, %v8123_v63 }
 0x363   : > { %v2847_v20 = vrot.slane %v2730_v41, 7  ;;  %v2732_v5 = vadd.f32 %v2182_v25, %v1525_v58  ;;  %v6521_v35 = vpop.f32.mrf.mxu1  ;;  %v6525_v13 = vsel %vm3027_vm0, %v2991_v57, %v2992_v29  ;;  %v8125_v58 = vld [vmem:[#allocation42_spill] sm:$0xff]  ;;  %v8126_v25 = vld [vmem:[#allocation156_spill] sm:$0xff] }
 0x364   : > { %8122 = vst [vmem:[#allocation9_spill] sm:$0xff] %v6521_v35  ;;  %v2184_v37 = vpop.f32.mrf.mxu0  ;;  %v1533_v0 = vadd.f32 %v8126_v25, %v8125_v58 }
 0x365   : > { %v2993_v27 = vrot.slane %v2732_v5, 6  ;;  %v2733_v40 = vadd.f32 %v2184_v37, %v1527_v19  ;;  %v6529_v33 = vpop.f32.mrf.mxu1  ;;  %v6533_v12 = vsel %vm2882_vm1, %v2846_v62, %v2847_v20  ;;  %v8129_v5 = vld [vmem:[#allocation44_spill] sm:$0xff] }
 0x366   : > { %8124 = vst [vmem:[#allocation150_spill] sm:$0xff] %v6529_v33  ;;  %v2188_v41 = vpop.f32.mrf.mxu0  ;;  %v1537_v19 = vadd.f32 %v6196_v56, %v8129_v5 }
 0x367   : > { %v2848_v36 = vrot.slane %v2733_v40, 7  ;;  %v2735_v35 = vadd.f32 %v2188_v41, %v1531_v22  ;;  %v6537_v57 = vpop.f32.mrf.mxu1  ;;  %v6541_v42 = vsel %vm3027_vm0, %v2992_v29, %v2993_v27  ;;  %v8131_v22 = vld [vmem:[#allocation46_spill] sm:$0xff]  ;;  %v8132_v41 = vld [vmem:[#allocation159_spill] sm:$0xff] }
 0x368   : > { %8127 = vst [vmem:[#allocation39_spill] sm:$0xff] %v6537_v57  ;;  %8128 = vst [vmem:[#allocation11_spill] sm:$0xff] %v6541_v42  ;;  %v2190_v43 = vpop.f32.mrf.mxu0  ;;  %v1539_v58 = vadd.f32 %v8132_v41, %v8131_v22 }
 0x369   : > { %v2994_v37 = vrot.slane %v2735_v35, 6  ;;  %v2736_v63 = vadd.f32 %v2190_v43, %v1533_v0  ;;  %v6545_v62 = vpop.f32.mrf.mxu1  ;;  %v6549_v33 = vsel %vm2882_vm1, %v2847_v20, %v2848_v36  ;;  %v8134_v35 = vld [vmem:[#allocation48_spill] sm:$0xff] }
 0x36a   : > { %8130 = vst [vmem:[#allocation153_spill] sm:$0xff] %v6545_v62  ;;  %v2194_v40 = vpop.f32.mrf.mxu0  ;;  %v1543_v0 = vadd.f32 %v6206_v54, %v8134_v35 }
 0x36b   : > { %v2849_v25 = vrot.slane %v2736_v63, 7  ;;  %v2738_v57 = vadd.f32 %v2194_v40, %v1537_v19  ;;  %v6553_v29 = vpop.f32.mrf.mxu1  ;;  %v6557_v46 = vsel %vm3027_vm0, %v2993_v27, %v2994_v37  ;;  %v8136_v19 = vld [vmem:[#allocation50_spill] sm:$0xff] }
 0x36c   : > { %8133 = vst [vmem:[#allocation41_spill] sm:$0xff] %v6553_v29  ;;  %v2196_v56 = vpop.f32.mrf.mxu0  ;;  %v8137_v40 = vld [vmem:[#allocation162_spill] sm:$0xff] }
 0x36d   : > { %v2995_v43 = vrot.slane %v2738_v57, 6  ;;  %v2739_v5 = vadd.f32 %v2196_v56, %v1539_v58  ;;  %v6561_v20 = vpop.f32.mrf.mxu1  ;;  %v6565_v62 = vsel %vm2882_vm1, %v2848_v36, %v2849_v25  ;;  %v1545_v22 = vadd.f32 %v8137_v40, %v8136_v19  ;;  %v8140_v57 = vld [vmem:[#allocation52_spill] sm:$0xff] }
 0x36e   : > { %8135 = vst [vmem:[#allocation42_spill] sm:$0xff] %v6561_v20  ;;  %v2200_v63 = vpop.f32.mrf.mxu0  ;;  %v8141_v58 = vld [vmem:[#allocation164_spill] sm:$0xff] }
 0x36f   : > { %v2850_v41 = vrot.slane %v2739_v5, 7  ;;  %v2741_v29 = vadd.f32 %v2200_v63, %v1543_v0  ;;  %v6569_v27 = vpop.f32.mrf.mxu1  ;;  %v6573_v1 = vsel %vm3027_vm0, %v2994_v37, %v2995_v43  ;;  %v1549_v56 = vadd.f32 %v8141_v58, %v8140_v57  ;;  %v8144_v0 = vld [vmem:[#allocation54_spill] sm:$0xff] }
 0x370   : > { %8138 = vst [vmem:[#allocation156_spill] sm:$0xff] %v6569_v27  ;;  %8139 = vst [vmem:[#allocation44_spill] sm:$0xff] %v6573_v1  ;;  %v2202_v54 = vpop.f32.mrf.mxu0  ;;  %v8145_v63 = vld [vmem:[#allocation166_spill] sm:$0xff] }
 0x371   : > { %v2996_v35 = vrot.slane %v2741_v29, 6  ;;  %v2742_v20 = vadd.f32 %v2202_v54, %v1545_v22  ;;  %v6577_v36 = vpop.f32.mrf.mxu1  ;;  %v6581_v50 = vsel %vm2882_vm1, %v2849_v25, %v2850_v41  ;;  %v1551_v19 = vadd.f32 %v8145_v63, %v8144_v0  ;;  %v8148_v22 = vld [vmem:[#allocation56_spill] sm:$0xff] }
 0x372   : > { %8142 = vst [vmem:[#allocation46_spill] sm:$0xff] %v6577_v36  ;;  %8143 = vst [vmem:[#allocation159_spill] sm:$0xff] %v6581_v50  ;;  %v2206_v5 = vpop.f32.mrf.mxu0  ;;  %v8149_v54 = vld [vmem:[#allocation168_spill] sm:$0xff] }
 0x373   : > { %v2851_v40 = vrot.slane %v2742_v20, 7  ;;  %v2744_v27 = vadd.f32 %v2206_v5, %v1549_v56  ;;  %v6585_v37 = vpop.f32.mrf.mxu1  ;;  %v6589_v1 = vsel %vm3027_vm0, %v2995_v43, %v2996_v35  ;;  %v1555_v57 = vadd.f32 %v8149_v54, %v8148_v22  ;;  %v8152_v56 = vld [vmem:[#allocation58_spill] sm:$0xff] }
 0x374   : > { %8146 = vst [vmem:[#allocation48_spill] sm:$0xff] %v6585_v37  ;;  %8147 = vst [vmem:[#allocation50_spill] sm:$0xff] %v6589_v1  ;;  %v2208_v29 = vpop.f32.mrf.mxu0  ;;  %v8153_v5 = vld [vmem:[#allocation170_spill] sm:$0xff] }
 0x375   : > { %v2997_v58 = vrot.slane %v2744_v27, 6  ;;  %v2745_v36 = vadd.f32 %v2208_v29, %v1551_v19  ;;  %v6593_v25 = vpop.f32.mrf.mxu1  ;;  %v6597_v16 = vsel %vm2882_vm1, %v2850_v41, %v2851_v40  ;;  %v1557_v0 = vadd.f32 %v8153_v5, %v8152_v56  ;;  %v8156_v19 = vld [vmem:[#allocation60_spill] sm:$0xff] }
 0x376   : > { %8150 = vst [vmem:[#allocation162_spill] sm:$0xff] %v6593_v25  ;;  %8151 = vst [vmem:[#allocation52_spill] sm:$0xff] %v6597_v16  ;;  %v2212_v20 = vpop.f32.mrf.mxu0  ;;  %v8157_v29 = vld [vmem:[#allocation172_spill] sm:$0xff] }
 0x377   : > { %v2852_v63 = vrot.slane %v2745_v36, 7  ;;  %v2747_v37 = vadd.f32 %v2212_v20, %v1555_v57  ;;  %v6601_v43 = vpop.f32.mrf.mxu1  ;;  %v6605_v50 = vsel %vm3027_vm0, %v2996_v35, %v2997_v58  ;;  %v1561_v22 = vadd.f32 %v8157_v29, %v8156_v19  ;;  %v8160_v57 = vld [vmem:[#allocation62_spill] sm:$0xff] }
 0x378   : > { %8154 = vst [vmem:[#allocation164_spill] sm:$0xff] %v6601_v43  ;;  %8155 = vst [vmem:[#allocation54_spill] sm:$0xff] %v6605_v50  ;;  %v2214_v27 = vpop.f32.mrf.mxu0  ;;  %v8161_v20 = vld [vmem:[#allocation174_spill] sm:$0xff] }
 0x379   : > { %v2998_v54 = vrot.slane %v2747_v37, 6  ;;  %v2748_v25 = vadd.f32 %v2214_v27, %v1557_v0  ;;  %v6609_v41 = vpop.f32.mrf.mxu1  ;;  %v6613_v1 = vsel %vm2882_vm1, %v2851_v40, %v2852_v63  ;;  %v1563_v56 = vadd.f32 %v8161_v20, %v8160_v57  ;;  %v8164_v0 = vld [vmem:[#allocation64_spill] sm:$0xff] }
 0x37a   : > { %8158 = vst [vmem:[#allocation166_spill] sm:$0xff] %v6609_v41  ;;  %8159 = vst [vmem:[#allocation56_spill] sm:$0xff] %v6613_v1  ;;  %v2218_v36 = vpop.f32.mrf.mxu0  ;;  %v8165_v27 = vld [vmem:[#allocation176_spill] sm:$0xff] }
 0x37b   : > { %v2853_v5 = vrot.slane %v2748_v25, 7  ;;  %v2750_v43 = vadd.f32 %v2218_v36, %v1561_v22  ;;  %v6617_v35 = vpop.f32.mrf.mxu1  ;;  %v6621_v50 = vsel %vm3027_vm0, %v2997_v58, %v2998_v54  ;;  %v1567_v19 = vadd.f32 %v8165_v27, %v8164_v0  ;;  %v8168_v22 = vld [vmem:[#allocation66_spill] sm:$0xff]  ;;  %v8174_v27 = vld [vmem:[#allocation68_spill] sm:$0xff] }
 0x37c   : > { %8162 = vst [vmem:[#allocation168_spill] sm:$0xff] %v6617_v35  ;;  %8163 = vst [vmem:[#allocation58_spill] sm:$0xff] %v6621_v50  ;;  %v2220_v37 = vpop.f32.mrf.mxu0  ;;  %v8169_v36 = vld [vmem:[#allocation178_spill] sm:$0xff] }
 0x37d   : > { %v2999_v29 = vrot.slane %v2750_v43, 6  ;;  %v2751_v41 = vadd.f32 %v2220_v37, %v1563_v56  ;;  %v6625_v40 = vpop.f32.mrf.mxu1  ;;  %v6629_v1 = vsel %vm2882_vm1, %v2852_v63, %v2853_v5  ;;  %v1569_v57 = vadd.f32 %v8169_v36, %v8168_v22  ;;  %v8172_v43 = vld [vmem:[#allocation35_spill] sm:$0xff]  ;;  %v8173_v56 = vld [vmem:[#allocation124_spill] sm:$0xff]  ;;  %v8177_v22 = vld [vmem:[#allocation70_spill] sm:$0xff] }
 0x37e   : > { %8166 = vst [vmem:[#allocation170_spill] sm:$0xff] %v6625_v40  ;;  %8167 = vst [vmem:[#allocation60_spill] sm:$0xff] %v6629_v1  ;;  %v2224_v25 = vpop.f32.mrf.mxu0  ;;  %v1799_v37 = vadd.f32 %v8173_v56, %v8172_v43  ;;  %v8175_v40 = vld [vmem:[#allocation180_spill] sm:$0xff]  ;;  %v8178_v36 = vld [vmem:[#allocation182_spill] sm:$0xff] }
 0x37f   : > { %v2854_v20 = vrot.slane %v2751_v41, 7  ;;  %v2753_v35 = vadd.f32 %v2224_v25, %v1567_v19  ;;  %v6633_v58 = vpop.f32.mrf.mxu1  ;;  %v6637_v50 = vsel %vm3027_vm0, %v2998_v54, %v2999_v29  ;;  %v1573_v63 = vadd.f32 %v8175_v40, %v8174_v27  ;;  %v8182_v40 = vld [vmem:[#allocation126_spill] sm:$0xff]  ;;  %v8184_v27 = vld [vmem:[#allocation184_spill] sm:$0xff] }
 0x380   : > { %8170 = vst [vmem:[#allocation172_spill] sm:$0xff] %v6633_v58  ;;  %8171 = vst [vmem:[#allocation62_spill] sm:$0xff] %v6637_v50  ;;  %v2226_v0 = vpop.f32.mrf.mxu0  ;;  %v1575_v54 = vadd.f32 %v8178_v36, %v8177_v22 }
 0x381   : > { %v3000_v1 = vrot.slane %v2753_v35, 6  ;;  %v2754_v10 = vadd.f32 %v2226_v0, %v1569_v57  ;;  %v4145_v42 = vpop.f32.mrf.mxu1  ;;  %v6645_v41 = vsel %vm2882_vm1, %v2853_v5, %v2854_v20  ;;  %v8181_v35 = vld [vmem:[#allocation6_spill] sm:$0xff]  ;;  %v8183_v0 = vld [vmem:[#allocation72_spill] sm:$0xff] }
 0x382   : > { %8176 = vst [vmem:[#allocation174_spill] sm:$0xff] %v6645_v41  ;;  %v2230_v19 = vpop.f32.mrf.mxu0  ;;  %v2695_v25 = vadd.f32 %v4145_v42, %v1799_v37  ;;  %v1809_v57 = vadd.f32 %v8182_v40, %v8181_v35  ;;  %v1579_v42 = vadd.f32 %v8184_v27, %v8183_v0 }
 0x383   : > { %v2855_v58 = vrot.slane %v2754_v10, 7  ;;  %v2756_v50 = vadd.f32 %v2230_v19, %v1573_v63  ;;  %v6649_v16 = vpop.f32.mrf.mxu1  ;;  %v6653_v43 = vsel %vm3027_vm0, %v2999_v29, %v3000_v1  ;;  %v8185_v63 = vld [vmem:[#allocation36_spill] sm:$0xff]  ;;  %v8186_v19 = vld [vmem:[#allocation127_spill] sm:$0xff] }
 0x384   : > { %8179 = vst [vmem:[#allocation64_spill] sm:$0xff] %v6649_v16  ;;  %8180 = vst [vmem:[#allocation176_spill] sm:$0xff] %v6653_v43  ;;  %v2932_v56 = vadd.f32 %v6341_v24, %v2695_v25  ;;  %v2232_v5 = vpop.f32.mrf.mxu0  ;;  %v1804_v29 = vadd.f32 %v8186_v19, %v8185_v63  ;;  %v8187_v24 = vld [vmem:[#allocation74_spill] sm:$0xff]  ;;  %v8191_v19 = vld [vmem:[#allocation76_spill] sm:$0xff] }
 0x385   : > { %v3001_v37 = vrot.slane %v2756_v50, 6  ;;  %v2757_v41 = vadd.f32 %v2232_v5, %v1575_v54  ;;  %v4148_v22 = vpop.f32.mrf.mxu1  ;;  %v6662_v10 = vsel %vm2882_vm1, %v2854_v20, %v2855_v58  ;;  %v8188_v25 = vld [vmem:[#allocation186_spill] sm:$0xff]  ;;  %v8189_v20 = vld [vmem:[#allocation8_spill] sm:$0xff] }
 0x386   : > { %v6667_v36 = vadd.f32 %v6331_v15, %v2932_v56  ;;  %v2236_v35 = vpop.f32.mrf.mxu0  ;;  %v2701_v40 = vadd.f32 %v4148_v22, %v1809_v57  ;;  %v1581_v16 = vadd.f32 %v8188_v25, %v8187_v24  ;;  %v8190_v5 = vld [vmem:[#allocation128_spill] sm:$0xff]  ;;  %v1585_v57 = vadd.f32 %v6278_v14, %v8191_v19  ;;  %v8193_v24 = vld [vmem:[#allocation129_spill] sm:$0xff] }
 0x387   : > { %v2856_v43 = vrot.slane %v2757_v41, 7  ;;  %v6671_v0 = vadd.f32 %v2236_v35, %v1579_v42  ;;  %v2461_v50 = vpop.f32.mrf.mxu1  ;;  %v6675_v54 = vsel %vm3027_vm0, %v3000_v1, %v3001_v37  ;;  %v1819_v27 = vadd.f32 %v8190_v5, %v8189_v20  ;;  %v8192_v1 = vld [vmem:[#allocation38_spill] sm:$0xff]  ;;  %v8195_v5 = vld [vmem:[#allocation189_spill] sm:$0xff] }
 0x388   : > { %v2934_v63 = vadd.f32 %v6373_v28, %v2701_v40  ;;  %v2238_v15 = vpop.f32.mrf.mxu0  ;;  %v2698_v56 = vadd.f32 %v2461_v50, %v1804_v29  ;;  %v1814_v25 = vadd.f32 %v8193_v24, %v8192_v1  ;;  %v8194_v20 = vld [vmem:[#allocation78_spill] sm:$0xff] }
 0x389   : > { %v7873_v22 = vrot.slane %v6671_v0, 6  ;;  %v6683_v41 = vadd.f32 %v2238_v15, %v1581_v16  ;;  %v4151_v42 = vpop.f32.mrf.mxu1  ;;  %v6687_v35 = vsel %vm2882_vm1, %v2855_v58, %v2856_v43  ;;  %v1587_v28 = vadd.f32 %v8195_v5, %v8194_v20  ;;  %v8196_v1 = vld [vmem:[#allocation10_spill] sm:$0xff]  ;;  %v8199_v5 = vld [vmem:[#allocation191_spill] sm:$0xff] }
 0x38a   : > { %v6694_v29 = vadd.f32 %v6365_v61, %v2934_v63  ;;  %v2933_v14 = vadd.f32 %v6357_v32, %v2698_v56  ;;  %v2242_v40 = vpop.f32.mrf.mxu0  ;;  %v2707_v15 = vadd.f32 %v4151_v42, %v1819_v27  ;;  %v8197_v24 = vld [vmem:[#allocation130_spill] sm:$0xff]  ;;  %v8198_v56 = vld [vmem:[#allocation80_spill] sm:$0xff] }
 0x38b   : > { %v7874_v16 = vrot.slane %v6683_v41, 7  ;;  %v6698_v50 = vadd.f32 %v2242_v40, %v1585_v57  ;;  %v2471_v19 = vpop.f32.mrf.mxu1  ;;  %v6704_v58 = vsel %vm3027_vm0, %v3001_v37, %v7873_v22  ;;  %v1829_v20 = vadd.f32 %v8197_v24, %v8196_v1 }
 0x38c   : > { %v6709_v61 = vadd.f32 %v6349_v17, %v2933_v14  ;;  %v2244_v32 = vpop.f32.mrf.mxu0  ;;  %v2704_v63 = vadd.f32 %v2471_v19, %v1814_v25  ;;  %v1591_v57 = vadd.f32 %v8199_v5, %v8198_v56  ;;  %v2936_v27 = vadd.f32 %v6405_v8, %v2707_v15  ;;  %v8201_v8 = vld [vmem:[#allocation40_spill] sm:$0xff]  ;;  %v8204_v56 = vld [vmem:[#allocation193_spill] sm:$0xff] }
 0x38d   : > { %v6714_v42 = vadd.f32 %v2244_v32, %v1587_v28  ;;  %v4154_v40 = vpop.f32.mrf.mxu1  ;;  %v6720_v37 = vsel %vm2882_vm1, %v2856_v43, %v7874_v16  ;;  %v8202_v28 = vld [vmem:[#allocation131_spill] sm:$0xff]  ;;  %v8203_v32 = vld [vmem:[#allocation82_spill] sm:$0xff] }
 0x38e   : > { %v2935_v1 = vadd.f32 %v6389_v52, %v2704_v63  ;;  %v2248_v17 = vpop.f32.mrf.mxu0  ;;  %v6724_v14 = vadd.f32 %v6397_v38, %v2936_v27  ;;  %v2713_v19 = vadd.f32 %v4154_v40, %v1829_v20  ;;  %v1824_v15 = vadd.f32 %v8202_v28, %v8201_v8  ;;  %v8206_v27 = vld [vmem:[#allocation12_spill] sm:$0xff] }
 0x38f   : > { %v6726_v25 = vadd.f32 %v2248_v17, %v1591_v57  ;;  %v2481_v24 = vpop.f32.mrf.mxu1  ;;  %v1593_v5 = vadd.f32 %v8204_v56, %v8203_v32  ;;  %v8207_v20 = vld [vmem:[#allocation132_spill] sm:$0xff] }
 0x390   : > { %8200 = vst [vmem:[#allocation66_spill] sm:$0xff] %v6724_v14  ;;  %v6733_v22 = vadd.f32 %v6381_v34, %v2935_v1  ;;  %v2250_v43 = vpop.f32.mrf.mxu0  ;;  %v2938_v52 = vadd.f32 %v6437_v31, %v2713_v19  ;;  %v2710_v38 = vadd.f32 %v2481_v24, %v1824_v15  ;;  %v1839_v40 = vadd.f32 %v8207_v20, %v8206_v27  ;;  %v8208_v17 = vld [vmem:[#allocation84_spill] sm:$0xff]  ;;  %v8209_v14 = vld [vmem:[#allocation195_spill] sm:$0xff]  ;;  %v8211_v34 = vld [vmem:[#allocation86_spill] sm:$0xff] }
 0x391   : > { %v4157_v63 = vpop.f32.mrf.mxu1  ;;  %v6736_v16 = vadd.f32 %v2250_v43, %v1593_v5  ;;  %v1597_v8 = vadd.f32 %v8209_v14, %v8208_v17  ;;  %v1599_v1 = vadd.f32 %v6303_v9, %v8211_v34  ;;  %v8212_v5 = vld [vmem:[#allocation43_spill] sm:$0xff]  ;;  %v8213_v43 = vld [vmem:[#allocation133_spill] sm:$0xff]  ;;  %v8214_v20 = vld [vmem:[#allocation88_spill] sm:$0xff] }
 0x392   : > { %8205 = vst [vmem:[#allocation178_spill] sm:$0xff] %v6733_v22  ;;  %v2254_v57 = vpop.f32.mrf.mxu0  ;;  %v6743_v28 = vadd.f32 %v6429_v44, %v2938_v52  ;;  %v2937_v31 = vadd.f32 %v6421_v48, %v2710_v38  ;;  %v2719_v24 = vadd.f32 %v4157_v63, %v1839_v40  ;;  %v1834_v27 = vadd.f32 %v8213_v43, %v8212_v5  ;;  %v8215_v22 = vld [vmem:[#allocation198_spill] sm:$0xff]  ;;  %v8216_v9 = vld [vmem:[#allocation45_spill] sm:$0xff] }
 0x393   : > { %v2491_v32 = vpop.f32.mrf.mxu1  ;;  %v6748_v56 = vadd.f32 %v2254_v57, %v1597_v8  ;;  %v1603_v14 = vadd.f32 %v8215_v22, %v8214_v20  ;;  %v8217_v34 = vld [vmem:[#allocation134_spill] sm:$0xff]  ;;  %v8219_v22 = vld [vmem:[#allocation47_spill] sm:$0xff] }
 0x394   : > { %8210 = vst [vmem:[#allocation35_spill] sm:$0xff] %v6743_v28  ;;  %v2256_v19 = vpop.f32.mrf.mxu0  ;;  %v6755_v44 = vadd.f32 %v6413_v3, %v2937_v31  ;;  %v1849_v48 = vadd.f32 %v8217_v34, %v8216_v9  ;;  %v8218_v38 = vld [vmem:[#allocation90_spill] sm:$0xff]  ;;  %v2940_v63 = vadd.f32 %v6469_v55, %v2719_v24  ;;  %v2716_v8 = vadd.f32 %v2491_v32, %v1834_v27  ;;  %v8220_v20 = vld [vmem:[#allocation135_spill] sm:$0xff]  ;;  %v8221_v34 = vld [vmem:[#allocation49_spill] sm:$0xff] }
 0x395   : > { %v4160_v15 = vpop.f32.mrf.mxu1  ;;  %v6757_v52 = vadd.f32 %v2256_v19, %v1599_v1  ;;  %v1605_v57 = vadd.f32 %v6313_v60, %v8218_v38  ;;  %v1844_v3 = vadd.f32 %v8220_v20, %v8219_v22  ;;  %v8222_v28 = vld [vmem:[#allocation136_spill] sm:$0xff]  ;;  %v8226_v22 = vld [vmem:[#allocation94_spill] sm:$0xff] }
 0x396   : > { %v2260_v17 = vpop.f32.mrf.mxu0  ;;  %v6769_v1 = vadd.f32 %v6461_v49, %v2940_v63  ;;  %v2725_v31 = vadd.f32 %v4160_v15, %v1849_v48  ;;  %v1859_v60 = vadd.f32 %v8222_v28, %v8221_v34  ;;  %v8223_v38 = vld [vmem:[#allocation92_spill] sm:$0xff]  ;;  %v2939_v32 = vadd.f32 %v6453_v23, %v2716_v8  ;;  %v8224_v63 = vld [vmem:[#allocation51_spill] sm:$0xff] }
 0x397   : > { %v2501_v40 = vpop.f32.mrf.mxu1  ;;  %v6764_v5 = vadd.f32 %v2260_v17, %v1603_v14  ;;  %v1609_v55 = vadd.f32 %v6319_v53, %v8223_v38  ;;  %v1611_v53 = vadd.f32 %v6325_v39, %v8226_v22  ;;  %v8229_v38 = vld [vmem:[#allocation53_spill] sm:$0xff]  ;;  %v8237_v22 = vld [vmem:[#allocation140_spill] sm:$0xff] }
 0x398   : > { %v2262_v43 = vpop.f32.mrf.mxu0  ;;  %v2942_v27 = vadd.f32 %v6501_v26, %v2725_v31  ;;  %v2722_v14 = vadd.f32 %v2501_v40, %v1844_v3  ;;  %v6780_v49 = vadd.f32 %v6445_v51, %v2939_v32 }
 0x399   : > { %v6771_v19 = vadd.f32 %v2262_v43, %v1605_v57  ;;  %v4163_v9 = vpop.f32.mrf.mxu1  ;;  %v8225_v43 = vld [vmem:[#allocation137_spill] sm:$0xff] }
 0x39a   : > { %v2266_v24 = vpop.f32.mrf.mxu0  ;;  %v2731_v48 = vadd.f32 %v4163_v9, %v1859_v60  ;;  %v1854_v28 = vadd.f32 %v8225_v43, %v8224_v63  ;;  %v6789_v23 = vadd.f32 %v6493_v6, %v2942_v27  ;;  %v2941_v26 = vadd.f32 %v6485_v45, %v2722_v14  ;;  %v8227_v9 = vld [vmem:[#allocation96_spill] sm:$0xff]  ;;  %v8230_v6 = vld [vmem:[#allocation138_spill] sm:$0xff] }
 0x39b   : > { %v2511_v17 = vpop.f32.mrf.mxu1  ;;  %v6782_v15 = vadd.f32 %v2266_v24, %v1609_v55  ;;  %v1615_v34 = vadd.f32 %v6335_v21, %v8227_v9  ;;  %v1869_v55 = vadd.f32 %v8230_v6, %v8229_v38  ;;  %v8233_v21 = vld [vmem:[#allocation139_spill] sm:$0xff] }
 0x39c   : > { %v2268_v57 = vpop.f32.mrf.mxu0  ;;  %v2944_v40 = vadd.f32 %v6533_v12, %v2731_v48  ;;  %v2728_v3 = vadd.f32 %v2511_v17, %v1854_v28  ;;  %v6798_v60 = vadd.f32 %v6477_v4, %v2941_v26  ;;  %v8232_v48 = vld [vmem:[#allocation55_spill] sm:$0xff]  ;;  %v8234_v4 = vld [vmem:[#allocation98_spill] sm:$0xff]  ;;  %v8238_v26 = vld [vmem:[#allocation100_spill] sm:$0xff] }
 0x39d   : > { %v4166_v8 = vpop.f32.mrf.mxu1  ;;  %v6793_v20 = vadd.f32 %v2268_v57, %v1611_v53  ;;  %v1864_v57 = vadd.f32 %v8233_v21, %v8232_v48  ;;  %v1617_v63 = vadd.f32 %v6345_v30, %v8234_v4  ;;  %v8242_v48 = vld [vmem:[#allocation141_spill] sm:$0xff]  ;;  %v8243_v21 = vld [vmem:[#allocation104_spill] sm:$0xff] }
 0x39e   : > { %v2272_v51 = vpop.f32.mrf.mxu0  ;;  %8228 = vst [vmem:[#allocation124_spill] sm:$0xff] %v6798_v60  ;;  %v6803_v32 = vadd.f32 %v6525_v13, %v2944_v40  ;;  %v2943_v12 = vadd.f32 %v6517_v2, %v2728_v3  ;;  %v2737_v14 = vadd.f32 %v4166_v8, %v1869_v55  ;;  %v8236_v13 = vld [vmem:[#allocation57_spill] sm:$0xff]  ;;  %v1621_v2 = vadd.f32 %v6353_v18, %v8238_v26 }
 0x39f   : > { %v2521_v31 = vpop.f32.mrf.mxu1  ;;  %v6806_v24 = vadd.f32 %v2272_v51, %v1615_v34  ;;  %v1879_v53 = vadd.f32 %v8237_v22, %v8236_v13  ;;  %v8239_v34 = vld [vmem:[#allocation102_spill] sm:$0xff]  ;;  %v8247_v22 = vld [vmem:[#allocation61_spill] sm:$0xff] }
 0x3a0   : > { %v2274_v39 = vpop.f32.mrf.mxu0  ;;  %8231 = vst [vmem:[#allocation68_spill] sm:$0xff] %v6803_v32  ;;  %v6813_v43 = vadd.f32 %v6509_v47, %v2943_v12  ;;  %v2946_v40 = vadd.f32 %v6565_v62, %v2737_v14  ;;  %v2734_v3 = vadd.f32 %v2521_v31, %v1864_v57  ;;  %v1623_v30 = vadd.f32 %v6361_v11, %v8239_v34  ;;  %v8241_v12 = vld [vmem:[#allocation59_spill] sm:$0xff]  ;;  %v8244_v14 = vld [vmem:[#allocation52_spill] sm:$0xff] }
 0x3a1   : > { %v4169_v45 = vpop.f32.mrf.mxu1  ;;  %v6820_v51 = vadd.f32 %v2274_v39, %v1617_v63  ;;  %v1874_v18 = vadd.f32 %v8242_v48, %v8241_v12  ;;  %v1627_v62 = vadd.f32 %v6369_v59, %v8243_v21  ;;  %v8250_v59 = vld [vmem:[#allocation2_spill] sm:$0xff]  ;;  %v8269_v32 = vld [vmem:[#allocation112_spill] sm:$0xff] }
 0x3a2   : > { %v2278_v27 = vpop.f32.mrf.mxu0  ;;  %8235 = vst [vmem:[#allocation180_spill] sm:$0xff] %v6813_v43  ;;  %v6825_v47 = vadd.f32 %v6557_v46, %v2946_v40  ;;  %v2743_v6 = vadd.f32 %v4169_v45, %v1879_v53  ;;  %v2945_v39 = vadd.f32 %v6549_v33, %v2734_v3  ;;  %v8245_v46 = vld [vmem:[#allocation11_spill] sm:$0xff]  ;;  %v8248_v53 = vld [vmem:[#allocation142_spill] sm:$0xff] }
 0x3a3   : > { %v2531_v17 = vpop.f32.mrf.mxu1  ;;  %v6827_v38 = vadd.f32 %v2278_v27, %v1621_v2  ;;  %v1889_v26 = vadd.f32 %v8248_v53, %v8247_v22  ;;  %v8249_v2 = vld [vmem:[#allocation106_spill] sm:$0xff] }
 0x3a4   : > { %v2280_v28 = vpop.f32.mrf.mxu0  ;;  %8240 = vst [vmem:[#allocation70_spill] sm:$0xff] %v6825_v47  ;;  %v2948_v57 = vadd.f32 %v8244_v14, %v2743_v6  ;;  %v6838_v63 = vadd.f32 %v8245_v46, %v2945_v39  ;;  %v2740_v27 = vadd.f32 %v2531_v17, %v1874_v18  ;;  %v1629_v40 = vadd.f32 %v8250_v59, %v8249_v2  ;;  %v8251_v33 = vld [vmem:[#allocation50_spill] sm:$0xff]  ;;  %v8255_v18 = vld [vmem:[#allocation144_spill] sm:$0xff]  ;;  %v8257_v39 = vld [vmem:[#allocation199_spill] sm:$0xff] }
 0x3a5   : > { %v4172_v8 = vpop.f32.mrf.mxu1  ;;  %v6835_v4 = vadd.f32 %v2280_v28, %v1623_v30  ;;  %v8253_v28 = vld [vmem:[#allocation159_spill] sm:$0xff]  ;;  %v8258_v46 = vld [vmem:[#allocation44_spill] sm:$0xff]  ;;  %v8261_v2 = vld [vmem:[#allocation145_spill] sm:$0xff] }
 0x3a6   : > { %v2284_v9 = vpop.f32.mrf.mxu0  ;;  %8246 = vst [vmem:[#allocation182_spill] sm:$0xff] %v6838_v63  ;;  %v6847_v3 = vadd.f32 %v8251_v33, %v2948_v57  ;;  %v2947_v30 = vadd.f32 %v8253_v28, %v2740_v27  ;;  %v2749_v12 = vadd.f32 %v4172_v8, %v1889_v26  ;;  %v8260_v57 = vld [vmem:[#allocation65_spill] sm:$0xff]  ;;  %v8262_v33 = vld [vmem:[#allocation60_spill] sm:$0xff] }
 0x3a7   : > { %v2541_v55 = vpop.f32.mrf.mxu1  ;;  %v6840_v45 = vadd.f32 %v2284_v9, %v1627_v62  ;;  %v8254_v9 = vld [vmem:[#allocation63_spill] sm:$0xff]  ;;  %v8256_v62 = vld [vmem:[#allocation108_spill] sm:$0xff]  ;;  %v1899_v59 = vadd.f32 %v8261_v2, %v8260_v57  ;;  %v8270_v57 = vld [vmem:[#allocation201_spill] sm:$0xff] }
 0x3a8   : > { %v2286_v31 = vpop.f32.mrf.mxu0  ;;  %8252 = vst [vmem:[#allocation6_spill] sm:$0xff] %v6847_v3  ;;  %v1884_v21 = vadd.f32 %v8255_v18, %v8254_v9  ;;  %v1633_v14 = vadd.f32 %v8257_v39, %v8256_v62  ;;  %v6857_v22 = vadd.f32 %v8258_v46, %v2947_v30  ;;  %v2950_v27 = vadd.f32 %v8262_v33, %v2749_v12  ;;  %v8264_v3 = vld [vmem:[#allocation200_spill] sm:$0xff]  ;;  %v8265_v18 = vld [vmem:[#allocation58_spill] sm:$0xff]  ;;  %v8267_v39 = vld [vmem:[#allocation67_spill] sm:$0xff] }
 0x3a9   : > { %v4175_v11 = vpop.f32.mrf.mxu1  ;;  %v6850_v48 = vadd.f32 %v2286_v31, %v1629_v40  ;;  %v8263_v40 = vld [vmem:[#allocation110_spill] sm:$0xff]  ;;  %v8268_v46 = vld [vmem:[#allocation147_spill] sm:$0xff]  ;;  %v1639_v2 = vadd.f32 %v8270_v57, %v8269_v32  ;;  %v8271_v12 = vld [vmem:[#allocation56_spill] sm:$0xff] }
 0x3aa   : > { %v2290_v13 = vpop.f32.mrf.mxu0  ;;  %8259 = vst [vmem:[#allocation126_spill] sm:$0xff] %v6857_v22  ;;  %v2746_v8 = vadd.f32 %v2541_v55, %v1884_v21  ;;  %v1635_v9 = vadd.f32 %v8264_v3, %v8263_v40  ;;  %v6867_v47 = vadd.f32 %v8265_v18, %v2950_v27  ;;  %v2755_v62 = vadd.f32 %v4175_v11, %v1899_v59  ;;  %v8272_v3 = vld [vmem:[#allocation69_spill] sm:$0xff]  ;;  %v8274_v18 = vld [vmem:[#allocation54_spill] sm:$0xff]  ;;  %v8277_v32 = vld [vmem:[#allocation151_spill] sm:$0xff] }
 0x3ab   : > { %v2551_v34 = vpop.f32.mrf.mxu1  ;;  %v6862_v31 = vadd.f32 %v2290_v13, %v1633_v14  ;;  %v1894_v22 = vadd.f32 %v8268_v46, %v8267_v39  ;;  %v8273_v40 = vld [vmem:[#allocation149_spill] sm:$0xff]  ;;  %v8276_v46 = vld [vmem:[#allocation71_spill] sm:$0xff] }
 0x3ac   : > { %v2292_v6 = vpop.f32.mrf.mxu0  ;;  %8266 = vst [vmem:[#allocation72_spill] sm:$0xff] %v6867_v47  ;;  %v2949_v33 = vadd.f32 %v8271_v12, %v2746_v8  ;;  %v2952_v13 = vadd.f32 %v6662_v10, %v2755_v62  ;;  %v1909_v27 = vadd.f32 %v8273_v40, %v8272_v3  ;;  %v1904_v57 = vadd.f32 %v8277_v32, %v8276_v46  ;;  %v8278_v8 = vld [vmem:[#allocation114_spill] sm:$0xff]  ;;  %v8280_v10 = vld [vmem:[#allocation176_spill] sm:$0xff] }
 0x3ad   : > { %v4178_v17 = vpop.f32.mrf.mxu1  ;;  %v6875_v21 = vadd.f32 %v2292_v6, %v1635_v9  ;;  %v2752_v59 = vadd.f32 %v2551_v34, %v1894_v22  ;;  %v8279_v12 = vld [vmem:[#allocation202_spill] sm:$0xff] }
 0x3ae   : > { %v2296_v53 = vpop.f32.mrf.mxu0  ;;  %v6880_v11 = vadd.f32 %v8274_v18, %v2949_v33  ;;  %v1641_v63 = vadd.f32 %v8279_v12, %v8278_v8  ;;  %v6889_v6 = vadd.f32 %v8280_v10, %v2952_v13  ;;  %v8282_v62 = vld [vmem:[#allocation174_spill] sm:$0xff]  ;;  %v2761_v3 = vadd.f32 %v4178_v17, %v1909_v27  ;;  %v8287_v13 = vld [vmem:[#allocation73_spill] sm:$0xff]  ;;  %v8288_v12 = vld [vmem:[#allocation152_spill] sm:$0xff] }
 0x3af   : > { %v2561_v28 = vpop.f32.mrf.mxu1  ;;  %v6882_v47 = vadd.f32 %v2296_v53, %v1639_v2  ;;  %v2951_v43 = vadd.f32 %v8282_v62, %v2752_v59  ;;  %v8283_v53 = vld [vmem:[#allocation116_spill] sm:$0xff]  ;;  %v8284_v2 = vld [vmem:[#allocation203_spill] sm:$0xff]  ;;  %v1919_v10 = vadd.f32 %v8288_v12, %v8287_v13  ;;  %v3004_v59 = vrot.slane %v6726_v25, 6  ;;  %v8298_v13 = vld [vmem:[#allocation157_spill] sm:$0xff] }
 0x3b0   : > { %v2298_v26 = vpop.f32.mrf.mxu0  ;;  %8275 = vst [vmem:[#allocation184_spill] sm:$0xff] %v6880_v11  ;;  %8281 = vst [vmem:[#allocation36_spill] sm:$0xff] %v6889_v6  ;;  %v2758_v34 = vadd.f32 %v2561_v28, %v1904_v57  ;;  %v1645_v18 = vadd.f32 %v8284_v2, %v8283_v53  ;;  %v8285_v11 = vld [vmem:[#allocation62_spill] sm:$0xff]  ;;  %v2954_v32 = vadd.f32 %v6720_v37, %v2761_v3  ;;  %v2859_v17 = vrot.slane %v6736_v16, 7  ;;  %v8292_v53 = vld [vmem:[#allocation204_spill] sm:$0xff] }
 0x3b1   : > { %v4181_v30 = vpop.f32.mrf.mxu1  ;;  %v6892_v33 = vadd.f32 %v2298_v26, %v1641_v63  ;;  %v6897_v46 = vadd.f32 %v8285_v11, %v2951_v43  ;;  %v3003_v11 = vrot.slane %v6698_v50, 6  ;;  %v2858_v37 = vrot.slane %v6714_v42, 7  ;;  %v8291_v16 = vld [vmem:[#allocation118_spill] sm:$0xff]  ;;  %v8293_v50 = vld [vmem:[#allocation75_spill] sm:$0xff] }
 0x3b2   : > { %v2302_v55 = vpop.f32.mrf.mxu0  ;;  %v2953_v63 = vadd.f32 %v6687_v35, %v2758_v34  ;;  %v6906_v26 = vadd.f32 %v6704_v58, %v2954_v32  ;;  %v2767_v62 = vadd.f32 %v4181_v30, %v1919_v10  ;;  %v1647_v35 = vadd.f32 %v8292_v53, %v8291_v16  ;;  %v8294_v2 = vld [vmem:[#allocation154_spill] sm:$0xff]  ;;  %v8297_v30 = vld [vmem:[#allocation79_spill] sm:$0xff]  ;;  %v8299_v16 = vld [vmem:[#allocation120_spill] sm:$0xff] }
 0x3b3   : > { %v2571_v14 = vpop.f32.mrf.mxu1  ;;  %8286 = vst [vmem:[#allocation127_spill] sm:$0xff] %v6897_v46  ;;  %v6908_v27 = vadd.f32 %v2302_v55, %v1645_v18  ;;  %v2905_v58 = vsel %vm2882_vm1, %v2858_v37, %v2859_v17  ;;  %v3050_v55 = vsel %vm3027_vm0, %v3003_v11, %v3004_v59  ;;  %v1914_v42 = vadd.f32 %v8294_v2, %v8293_v50  ;;  %v8295_v18 = vld [vmem:[#allocation77_spill] sm:$0xff]  ;;  %v8302_v2 = vld [vmem:[#allocation206_spill] sm:$0xff] }
 0x3b4   : > { %v2304_v39 = vpop.f32.mrf.mxu0  ;;  %8289 = vst [vmem:[#allocation74_spill] sm:$0xff] %v6906_v26  ;;  %v6913_v57 = vadd.f32 %v6675_v54, %v2953_v63  ;;  %v8296_v54 = vld [vmem:[#allocation155_spill] sm:$0xff]  ;;  %v1924_v12 = vadd.f32 %v8298_v13, %v8297_v30  ;;  %v2956_v10 = vadd.f32 %v2905_v58, %v2767_v62  ;;  %v8300_v53 = vld [vmem:[#allocation205_spill] sm:$0xff]  ;;  %v3006_v26 = vrot.slane %v6764_v5, 6 }
 0x3b5   : > { %v4184_v9 = vpop.f32.mrf.mxu1  ;;  %v1929_v32 = vadd.f32 %v8296_v54, %v8295_v18  ;;  %v2861_v6 = vrot.slane %v6771_v19, 7  ;;  %v6935_v46 = vadd.f32 %v2304_v39, %v1647_v35  ;;  %v8301_v50 = vld [vmem:[#allocation121_spill] sm:$0xff]  ;;  %v2764_v30 = vadd.f32 %v2571_v14, %v1914_v42 }
 0x3b6   : > { %v2308_v40 = vpop.f32.mrf.mxu0  ;;  %8290 = vst [vmem:[#allocation186_spill] sm:$0xff] %v6913_v57  ;;  %v1651_v57 = vadd.f32 %v8300_v53, %v8299_v16  ;;  %v1653_v18 = vadd.f32 %v8302_v2, %v8301_v50  ;;  %v6941_v54 = vadd.f32 %v3050_v55, %v2956_v10  ;;  %v8303_v62 = vrot.slane %v6683_v41, 7  ;;  %v8306_v50 = vld [vmem:[#allocation158_spill] sm:$0xff] }
 0x3b7   : > { %v2581_v22 = vpop.f32.mrf.mxu1  ;;  %v3005_v5 = vrot.slane %v6748_v56, 6  ;;  %v2860_v19 = vrot.slane %v6757_v52, 7  ;;  %v8304_v35 = vrot.slane %v6671_v0, 6 }
 0x3b8   : > { %v2310_v8 = vpop.f32.mrf.mxu0  ;;  %v2906_v58 = vsel %vm2882_vm1, %v8303_v62, %v2858_v37  ;;  %v6959_v42 = vadd.f32 %v2308_v40, %v1651_v57  ;;  %v2773_v37 = vadd.f32 %v4184_v9, %v1929_v32  ;;  %v2770_v53 = vadd.f32 %v2581_v22, %v1924_v12  ;;  %v8307_v62 = vld [vmem:[#allocation122_spill] sm:$0xff]  ;;  %v8309_v12 = vld [vmem:[#allocation83_spill] sm:$0xff] }
 0x3b9   : > { %v4187_v28 = vpop.f32.mrf.mxu1  ;;  %v3051_v55 = vsel %vm3027_vm0, %v8304_v35, %v3003_v11  ;;  %v2955_v14 = vadd.f32 %v2906_v58, %v2764_v30  ;;  %v2903_v56 = vsel %vm2882_vm1, %v2860_v19, %v2861_v6  ;;  %v3048_v52 = vsel %vm3027_vm0, %v3005_v5, %v3006_v26  ;;  %v8305_v11 = vld [vmem:[#allocation81_spill] sm:$0xff]  ;;  %v8308_v35 = vld [vmem:[#allocation207_spill] sm:$0xff] }
 0x3ba   : > { %v2314_v43 = vpop.f32.mrf.mxu0  ;;  %v6967_v0 = vadd.f32 %v2310_v8, %v1653_v18  ;;  %v1939_v2 = vadd.f32 %v8306_v50, %v8305_v11  ;;  %v1657_v30 = vadd.f32 %v8308_v35, %v8307_v62  ;;  %v3007_v40 = vrot.slane %v6782_v15, 6  ;;  %v8310_v18 = vld [vmem:[#allocation160_spill] sm:$0xff]  ;;  %v8311_v50 = vld [vmem:[#allocation123_spill] sm:$0xff] }
 0x3bb   : > { %v2591_v25 = vpop.f32.mrf.mxu1  ;;  %v6974_v9 = vadd.f32 %v3051_v55, %v2955_v14  ;;  %v2862_v58 = vrot.slane %v6793_v20, 7  ;;  %v2958_v39 = vadd.f32 %v2903_v56, %v2773_v37  ;;  %v2904_v22 = vsel %vm2882_vm1, %v2859_v17, %v2860_v19  ;;  %v8312_v15 = vld [vmem:[#allocation208_spill] sm:$0xff] }
 0x3bc   : > { %v2316_v3 = vpop.f32.mrf.mxu0  ;;  %v3049_v8 = vsel %vm3027_vm0, %v3004_v59, %v3005_v5  ;;  %v1934_v11 = vadd.f32 %v8310_v18, %v8309_v12  ;;  %v1659_v55 = vadd.f32 %v8312_v15, %v8311_v50  ;;  %v2957_v14 = vadd.f32 %v2904_v22, %v2770_v53  ;;  %v8316_v12 = vld [vmem:[#allocation161_spill] sm:$0xff] }
 0x3bd   : > { %v6921_v34 = vpop.f32.mrf.mxu1  ;;  %v6989_v62 = vadd.f32 %v2314_v43, %v1657_v30  ;;  %v6993_v41 = vadd.f32 %v3048_v52, %v2958_v39  ;;  %v2779_v20 = vadd.f32 %v4187_v28, %v1939_v2  ;;  %v8313_v37 = vrot.slane %v6820_v51, 7  ;;  %v8317_v50 = vld [vmem:[#allocation13_spill] sm:$0xff] }
 0x3be   : > { %v6929_v63 = vpop.f32.mrf.mxu0  ;;  %v8314_v59 = vrot.slane %v6806_v24, 6  ;;  %v7003_v19 = vadd.f32 %v3049_v8, %v2957_v14  ;;  %v7009_v39 = vadd.f32 %v2316_v3, %v1659_v55  ;;  %v2776_v28 = vadd.f32 %v2591_v25, %v1934_v11  ;;  %v8315_v8 = vld [vmem:[#allocation85_spill] sm:$0xff]  ;;  %v8319_v55 = vld [vmem:[#allocation14_spill] sm:$0xff] }
 0x3bf   : > { %v6937_v60 = vpop.f32.mrf.mxu1  ;;  %v2901_v17 = vsel %vm2882_vm1, %v2862_v58, %v8313_v37  ;;  %v2865_v52 = vrot.slane %v6850_v48, 7  ;;  %v2902_v2 = vsel %vm2882_vm1, %v2861_v6, %v2862_v58  ;;  %v3047_v30 = vsel %vm3027_vm0, %v3006_v26, %v3007_v40  ;;  %v8318_v15 = vld [vmem:[#allocation209_spill] sm:$0xff]  ;;  %v8320_v37 = vld [vmem:[#allocation143_spill] sm:$0xff] }
 0x3c0   : > { %v6947_v13 = vpop.f32.mrf.mxu0  ;;  %v3046_v5 = vsel %vm3027_vm0, %v3007_v40, %v8314_v59  ;;  %v2960_v53 = vadd.f32 %v2901_v17, %v2779_v20  ;;  %v1949_v18 = vadd.f32 %v8316_v12, %v8315_v8  ;;  %v1663_v14 = vadd.f32 %v8318_v15, %v8317_v50 }
 0x3c1   : > { %v6956_v10 = vpop.f32.mrf.mxu1  ;;  %v2864_v25 = vrot.slane %v6835_v4, 7  ;;  %v3010_v48 = vrot.slane %v6840_v45, 6  ;;  %v2959_v3 = vadd.f32 %v2902_v2, %v2776_v28  ;;  %v3009_v26 = vrot.slane %v6827_v38, 6  ;;  %v8323_v2 = vld [vmem:[#allocation89_spill] sm:$0xff] }
 0x3c2   : > { %v6961_v16 = vpop.f32.mrf.mxu0  ;;  %v7022_v20 = vadd.f32 %v3046_v5, %v2960_v53  ;;  %v7032_v40 = vadd.f32 %v6929_v63, %v1663_v14  ;;  %v2785_v58 = vadd.f32 %v6921_v34, %v1949_v18  ;;  %v1665_v17 = vadd.f32 %v8320_v37, %v8319_v55  ;;  %v8321_v5 = vld [vmem:[#allocation87_spill] sm:$0xff]  ;;  %v8324_v38 = vld [vmem:[#allocation165_spill] sm:$0xff] }
 0x3c3   : > { %v6978_v32 = vpop.f32.mrf.mxu1  ;;  %v7037_v59 = vadd.f32 %v3047_v30, %v2959_v3  ;;  %v2899_v4 = vsel %vm2882_vm1, %v2864_v25, %v2865_v52  ;;  %v8322_v53 = vld [vmem:[#allocation163_spill] sm:$0xff]  ;;  %v1959_v8 = vadd.f32 %v8324_v38, %v8323_v2  ;;  %v3012_v63 = vrot.slane %v6882_v47, 6  ;;  %v8326_v3 = vld [vmem:[#allocation5_spill] sm:$0xff]  ;;  %v8329_v2 = vld [vmem:[#allocation16_spill] sm:$0xff] }
 0x3c4   : > { %v6976_v57 = vpop.f32.mrf.mxu0  ;;  %v1944_v28 = vadd.f32 %v8322_v53, %v8321_v5  ;;  %v2867_v34 = vrot.slane %v6892_v33, 7  ;;  %v2962_v12 = vadd.f32 %v2899_v4, %v2785_v58  ;;  %v3044_v30 = vsel %vm3027_vm0, %v3009_v26, %v3010_v48  ;;  %v8325_v14 = vld [vmem:[#allocation15_spill] sm:$0xff] }
 0x3c5   : > { %v7005_v56 = vpop.f32.mrf.mxu1  ;;  %v7052_v18 = vadd.f32 %v6947_v13, %v1665_v17  ;;  %v1669_v55 = vadd.f32 %v8326_v3, %v8325_v14  ;;  %v8327_v5 = vrot.slane %v6820_v51, 7  ;;  %v8328_v33 = vrot.slane %v6806_v24, 6  ;;  %v8332_v14 = vld [vmem:[#allocation167_spill] sm:$0xff]  ;;  %v8333_v3 = vld [vmem:[#allocation93_spill] sm:$0xff] }
 0x3c6   : > { %v6991_v35 = vpop.f32.mrf.mxu0  ;;  %v2782_v37 = vadd.f32 %v6937_v60, %v1944_v28  ;;  %v3011_v13 = vrot.slane %v6862_v31, 6  ;;  %v2866_v17 = vrot.slane %v6875_v21, 7  ;;  %v7069_v4 = vadd.f32 %v3044_v30, %v2962_v12  ;;  %v8330_v60 = vld [vmem:[#allocation7_spill] sm:$0xff]  ;;  %v8334_v31 = vld [vmem:[#allocation169_spill] sm:$0xff] }
 0x3c7   : > { %v7026_v11 = vpop.f32.mrf.mxu1  ;;  %v2900_v47 = vsel %vm2882_vm1, %v8327_v5, %v2864_v25  ;;  %v3045_v58 = vsel %vm3027_vm0, %v8328_v33, %v3009_v26  ;;  %v1671_v28 = vadd.f32 %v8330_v60, %v8329_v2  ;;  %v7076_v38 = vadd.f32 %v6961_v16, %v1669_v55  ;;  %v8331_v25 = vld [vmem:[#allocation91_spill] sm:$0xff] }
 0x3c8   : > { %v7007_v43 = vpop.f32.mrf.mxu0  ;;  %v2961_v51 = vadd.f32 %v2900_v47, %v2782_v37  ;;  %v2791_v24 = vadd.f32 %v6956_v10, %v1959_v8  ;;  %v1954_v26 = vadd.f32 %v8332_v14, %v8331_v25  ;;  %v1969_v5 = vadd.f32 %v8334_v31, %v8333_v3  ;;  %v8335_v37 = vld [vmem:[#allocation17_spill] sm:$0xff]  ;;  %v8336_v47 = vld [vmem:[#allocation146_spill] sm:$0xff] }
 0x3c9   : > { %v4199_v50 = vpop.f32.mrf.mxu1  ;;  %v2897_v21 = vsel %vm2882_vm1, %v2866_v17, %v2867_v34  ;;  %v3042_v12 = vsel %vm3027_vm0, %v3011_v13, %v3012_v63  ;;  %v2869_v16 = vrot.slane %v6967_v0, 7  ;;  %v7093_v8 = vadd.f32 %v6976_v57, %v1671_v28 }
 0x3ca   : > { %v7016_v22 = vpop.f32.mrf.mxu0  ;;  %v7090_v55 = vadd.f32 %v3045_v58, %v2961_v51  ;;  %v2964_v10 = vadd.f32 %v2897_v21, %v2791_v24  ;;  %v1675_v2 = vadd.f32 %v8336_v47, %v8335_v37  ;;  %v3014_v60 = vrot.slane %v6959_v42, 6  ;;  %v8337_v24 = vld [vmem:[#allocation18_spill] sm:$0xff]  ;;  %v8340_v21 = vld [vmem:[#allocation171_spill] sm:$0xff] }
 0x3cb   : > { %v2631_v30 = vpop.f32.mrf.mxu1  ;;  %v2788_v25 = vadd.f32 %v6978_v32, %v1954_v26  ;;  %v2898_v14 = vsel %vm2882_vm1, %v2865_v52, %v2866_v17  ;;  %v2868_v3 = vrot.slane %v6935_v46, 7  ;;  %v3043_v0 = vsel %vm3027_vm0, %v3010_v48, %v3011_v13  ;;  %v8338_v52 = vld [vmem:[#allocation37_spill] sm:$0xff]  ;;  %v8339_v26 = vld [vmem:[#allocation95_spill] sm:$0xff] }
 0x3cc   : > { %v7028_v6 = vpop.f32.mrf.mxu0  ;;  %v7102_v31 = vadd.f32 %v3042_v12, %v2964_v10  ;;  %v3013_v57 = vrot.slane %v6908_v27, 6  ;;  %v7108_v28 = vadd.f32 %v6991_v35, %v1675_v2  ;;  %v2797_v42 = vadd.f32 %v7005_v56, %v1969_v5  ;;  %v8341_v12 = vld [vmem:[#allocation97_spill] sm:$0xff] }
 0x3cd   : > { %v2963_v58 = vadd.f32 %v2898_v14, %v2788_v25  ;;  %v4202_v51 = vpop.f32.mrf.mxu1  ;;  %v1677_v17 = vadd.f32 %v8338_v52, %v8337_v24  ;;  %v2895_v46 = vsel %vm2882_vm1, %v2868_v3, %v2869_v16  ;;  %v1964_v48 = vadd.f32 %v8340_v21, %v8339_v26  ;;  %v8342_v10 = vld [vmem:[#allocation173_spill] sm:$0xff]  ;;  %v8345_v21 = vld [vmem:[#allocation99_spill] sm:$0xff] }
 0x3ce   : > { %v7041_v45 = vpop.f32.mrf.mxu0  ;;  %v2966_v27 = vadd.f32 %v2895_v46, %v2797_v42  ;;  %v3040_v35 = vsel %vm3027_vm0, %v3013_v57, %v3014_v60  ;;  %v2871_v56 = vrot.slane %v7052_v18, 7  ;;  %v1979_v37 = vadd.f32 %v8342_v10, %v8341_v12  ;;  %v8344_v42 = vld [vmem:[#allocation148_spill] sm:$0xff] }
 0x3cf   : > { %v7119_v13 = vadd.f32 %v3043_v0, %v2963_v58  ;;  %v7125_v5 = vadd.f32 %v7007_v43, %v1677_v17  ;;  %v3016_v47 = vrot.slane %v7032_v40, 6  ;;  %v2794_v25 = vadd.f32 %v7026_v11, %v1964_v48  ;;  %v2641_v14 = vpop.f32.mrf.mxu1  ;;  %v8343_v58 = vld [vmem:[#allocation19_spill] sm:$0xff] }
 0x3d0   : > { %v7054_v15 = vpop.f32.mrf.mxu0  ;;  %v7130_v2 = vadd.f32 %v3040_v35, %v2966_v27  ;;  %v1681_v24 = vadd.f32 %v8344_v42, %v8343_v58  ;;  %v2870_v18 = vrot.slane %v7009_v39, 7  ;;  %v2896_v43 = vsel %vm2882_vm1, %v2867_v34, %v2868_v3  ;;  %v8346_v48 = vld [vmem:[#allocation175_spill] sm:$0xff]  ;;  %v8347_v39 = vld [vmem:[#allocation101_spill] sm:$0xff]  ;;  %v8349_v34 = vld [vmem:[#allocation20_spill] sm:$0xff] }
 0x3d1   : > { %v3041_v52 = vsel %vm3027_vm0, %v3012_v63, %v3013_v57  ;;  %v3015_v40 = vrot.slane %v6989_v62, 6  ;;  %v2965_v17 = vadd.f32 %v2896_v43, %v2794_v25  ;;  %v2803_v11 = vadd.f32 %v4199_v50, %v1979_v37  ;;  %v8348_v35 = vld [vmem:[#allocation177_spill] sm:$0xff]  ;;  %v4205_v63 = vpop.f32.mrf.mxu1  ;;  %v8352_v50 = vld [vmem:[#allocation150_spill] sm:$0xff] }
 0x3d2   : > { %v7071_v53 = vpop.f32.mrf.mxu0  ;;  %v7144_v46 = vadd.f32 %v7016_v22, %v1681_v24  ;;  %v2893_v26 = vsel %vm2882_vm1, %v2870_v18, %v2871_v56  ;;  %v1974_v27 = vadd.f32 %v8346_v48, %v8345_v21  ;;  %v1989_v12 = vadd.f32 %v8348_v35, %v8347_v39  ;;  %v8350_v3 = vld [vmem:[#allocation9_spill] sm:$0xff] }
 0x3d3   : > { %v1683_v10 = vadd.f32 %v8350_v3, %v8349_v34  ;;  %v3038_v62 = vsel %vm3027_vm0, %v3015_v40, %v3016_v47  ;;  %v8351_v22 = vld [vmem:[#allocation21_spill] sm:$0xff]  ;;  %v2873_v25 = vrot.slane %v7125_v5, 7  ;;  %v7161_v58 = vadd.f32 %v3041_v52, %v2965_v17 }
 0x3d4   : > { %v7087_v33 = vpop.f32.mrf.mxu0  ;;  %v1687_v37 = vadd.f32 %v8352_v50, %v8351_v22  ;;  %v2968_v42 = vadd.f32 %v2893_v26, %v2803_v11  ;;  %v3018_v24 = vrot.slane %v7108_v28, 6  ;;  %v2800_v21 = vadd.f32 %v2631_v30, %v1974_v27  ;;  %v2651_v28 = vpop.f32.mrf.mxu1  ;;  %v8354_v30 = vld [vmem:[#allocation39_spill] sm:$0xff] }
 0x3d5   : > { %v2811_v43 = vadd.f32 %v7028_v6, %v1683_v10  ;;  %v2894_v48 = vsel %vm2882_vm1, %v2869_v16, %v2870_v18  ;;  %v2872_v39 = vrot.slane %v7093_v8, 7  ;;  %v3039_v34 = vsel %vm3027_vm0, %v3014_v60, %v3015_v40  ;;  %v8353_v6 = vld [vmem:[#allocation22_spill] sm:$0xff]  ;;  %v8355_v8 = vld [vmem:[#allocation103_spill] sm:$0xff] }
 0x3d6   : > { %v7111_v32 = vpop.f32.mrf.mxu0  ;;  %v7168_v35 = vadd.f32 %v3038_v62, %v2968_v42  ;;  %v3017_v5 = vrot.slane %v7076_v38, 6  ;;  %v2967_v52 = vadd.f32 %v2894_v48, %v2800_v21  ;;  %v2813_v17 = vadd.f32 %v7041_v45, %v1687_v37  ;;  %v8356_v18 = vld [vmem:[#allocation179_spill] sm:$0xff]  ;;  %v8357_v45 = vld [vmem:[#allocation105_spill] sm:$0xff] }
 0x3d7   : > { %v2809_v11 = vadd.f32 %v4202_v51, %v1989_v12  ;;  %v1689_v27 = vadd.f32 %v8354_v30, %v8353_v6  ;;  %v2891_v16 = vsel %vm2882_vm1, %v2872_v39, %v2873_v25  ;;  %v1984_v3 = vadd.f32 %v8356_v18, %v8355_v8  ;;  %v8358_v51 = vld [vmem:[#allocation181_spill] sm:$0xff]  ;;  %v8359_v12 = vld [vmem:[#allocation23_spill] sm:$0xff]  ;;  %v8363_v18 = vld [vmem:[#allocation24_spill] sm:$0xff] }
 0x3d8   : > { %v7133_v0 = vpop.f32.mrf.mxu0  ;;  %v7182_v10 = vadd.f32 %v3039_v34, %v2967_v52  ;;  %v3036_v38 = vsel %vm3027_vm0, %v3017_v5, %v3018_v24  ;;  %v1999_v40 = vadd.f32 %v8358_v51, %v8357_v45  ;;  %v8360_v62 = vld [vmem:[#allocation153_spill] sm:$0xff]  ;;  %v3020_v50 = vrot.slane %v2813_v17, 6  ;;  %v4208_v52 = vpop.f32.mrf.mxu1  ;;  %v8361_v8 = vld [vmem:[#allocation107_spill] sm:$0xff] }
 0x3d9   : > { %v2970_v60 = vadd.f32 %v2891_v16, %v2809_v11  ;;  %v1693_v22 = vadd.f32 %v8360_v62, %v8359_v12  ;;  %v2814_v37 = vadd.f32 %v7054_v15, %v1689_v27  ;;  %v3019_v42 = vrot.slane %v7144_v46, 6  ;;  %v8362_v15 = vld [vmem:[#allocation183_spill] sm:$0xff] }
 0x3da   : > { %v7156_v57 = vpop.f32.mrf.mxu0  ;;  %v2806_v48 = vadd.f32 %v2641_v14, %v1984_v3  ;;  %v2892_v34 = vsel %vm2882_vm1, %v2871_v56, %v2872_v39  ;;  %v2874_v6 = vrot.slane %v2811_v43, 7  ;;  %v3037_v16 = vsel %vm3027_vm0, %v3016_v47, %v3017_v5  ;;  %v8365_v5 = vld [vmem:[#allocation111_spill] sm:$0xff] }
 0x3db   : > { %v7192_v21 = vadd.f32 %v3036_v38, %v2970_v60  ;;  %v2875_v30 = vrot.slane %v2814_v37, 7  ;;  %v2816_v17 = vadd.f32 %v7071_v53, %v1693_v22  ;;  %v1994_v27 = vadd.f32 %v8362_v15, %v8361_v8  ;;  %v8364_v60 = vld [vmem:[#allocation41_spill] sm:$0xff]  ;;  %v2661_v38 = vpop.f32.mrf.mxu1  ;;  %v8366_v53 = vld [vmem:[#allocation187_spill] sm:$0xff]  ;;  %v8368_v37 = vld [vmem:[#allocation42_spill] sm:$0xff] }
 0x3dc   : > { %v7174_v26 = vpop.f32.mrf.mxu0  ;;  %v2969_v46 = vadd.f32 %v2892_v34, %v2806_v48  ;;  %v1695_v14 = vadd.f32 %v8364_v60, %v8363_v18  ;;  %v2815_v3 = vadd.f32 %v4205_v63, %v1999_v40  ;;  %v3034_v43 = vsel %vm3027_vm0, %v3019_v42, %v3020_v50  ;;  %v8367_v22 = vld [vmem:[#allocation25_spill] sm:$0xff]  ;;  %v8370_v8 = vld [vmem:[#allocation156_spill] sm:$0xff] }
 0x3dd   : > { %v2889_v56 = vsel %vm2882_vm1, %v2874_v6, %v2875_v30  ;;  %v2004_v45 = vadd.f32 %v8366_v53, %v8365_v5  ;;  %v2812_v62 = vadd.f32 %v2651_v28, %v1994_v27  ;;  %v1699_v63 = vadd.f32 %v8368_v37, %v8367_v22  ;;  %v4211_v28 = vpop.f32.mrf.mxu1 }
 0x3de   : > { %v7196_v11 = vpop.f32.mrf.mxu0  ;;  %v7209_v39 = vadd.f32 %v3037_v16, %v2969_v46  ;;  %v2972_v51 = vadd.f32 %v2889_v56, %v2815_v3  ;;  %v2817_v12 = vadd.f32 %v7087_v33, %v1695_v14  ;;  %v3021_v40 = vrot.slane %v2816_v17, 6  ;;  %v8369_v16 = vld [vmem:[#allocation26_spill] sm:$0xff] }
 0x3df   : > { %v2890_v48 = vsel %vm2882_vm1, %v2873_v25, %v2874_v6  ;;  %v3035_v34 = vsel %vm3027_vm0, %v3018_v24, %v3019_v42  ;;  %v1701_v15 = vadd.f32 %v8370_v8, %v8369_v16  ;;  %v2819_v33 = vadd.f32 %v7111_v32, %v1699_v63  ;;  %v3449_v25 = vld [vmem:[%s7841_s3 + $0x78] sm:$0xff]  ;;  %v3448_v24 = vld [vmem:[%s7841_s3 + $0x70] sm:$0xff]  ;;  %v8371_v42 = vld [vmem:[#allocation27_spill] sm:$0xff]  ;;  %v2671_v37 = vpop.f32.mrf.mxu1 }
 0x3e0   : > { %v2370_v47 = vpop.f32.mrf.mxu0  ;;  %v7222_v46 = vadd.f32 %v3034_v43, %v2972_v51  ;;  %v2876_v18 = vrot.slane %v2817_v12, 7  ;;  %v2971_v60 = vadd.f32 %v2890_v48, %v2812_v62  ;;  %v2818_v3 = vadd.f32 %v2661_v38, %v2004_v45  ;;  %v8372_v6 = vld [vmem:[#allocation46_spill] sm:$0xff]  ;;  %4216 = vmatpush3.msra.mxu1 %v3449_v25  ;;  %v8374_v38 = vld [vmem:[#allocation185_spill] sm:$0xff]  ;;  %v3447_v51 = vld [vmem:[%s7841_s3 + $0x68] sm:$0xff] }
 0x3e1   : > { %v2820_v17 = vadd.f32 %v7133_v0, %v1701_v15  ;;  %v1705_v56 = vadd.f32 %v8372_v6, %v8371_v42  ;;  %v3022_v43 = vrot.slane %v2819_v33, 6  ;;  %v3033_v5 = vsel %vm3027_vm0, %v3020_v50, %v3021_v40  ;;  %v8373_v0 = vld [vmem:[#allocation109_spill] sm:$0xff]  ;;  %v8376_v50 = vld [vmem:[#allocation28_spill] sm:$0xff]  ;;  %v3446_v8 = vld [vmem:[%s7841_s3 + $0x60] sm:$0xff] }
 0x3e2   : > { %v2374_v27 = vpop.f32.mrf.mxu0  ;;  %v7225_v14 = vadd.f32 %v3035_v34, %v2971_v60  ;;  %v2888_v32 = vsel %vm2882_vm1, %v2875_v30, %v2876_v18  ;;  %v2009_v53 = vadd.f32 %v8374_v38, %v8373_v0  ;;  %v8375_v45 = vmov 0.0   ;;  %v8377_v48 = vld [vmem:[#allocation48_spill] sm:$0xff]  ;;  %v8378_v15 = vld [vmem:[#allocation29_spill] sm:$0xff]  ;;  %v8379_v60 = vld [vmem:[#allocation162_spill] sm:$0xff] }
 0x3e3   : > { %4217 = vmatprep.subr.mxu1 %v8375_v45  ;;  %v3032_v12 = vsel %vm3027_vm0, %v3021_v40, %v3022_v43  ;;  %v2877_v62 = vrot.slane %v2820_v17, 7  ;;  %v2973_v22 = vadd.f32 %v2888_v32, %v2818_v3  ;;  %v2822_v30 = vadd.f32 %v7156_v57, %v1705_v56  ;;  %v8380_v3 = vld [vmem:[#allocation30_spill] sm:$0xff]  ;;  %v8381_v25 = vld [vmem:[#allocation164_spill] sm:$0xff]  ;;  %v3445_v6 = vld [vmem:[%s7841_s3 + $0x58] sm:$0xff]  ;;  %4247 = vmatprep.mubr.msk.f32.mxu1 %vm4410_vm2, %v8375_v45 }
 0x3e4   : > { %v2376_v63 = vpop.f32.mrf.mxu0  ;;  %4218 = vmatpush3.msra.mxu1 %v3448_v24  ;;  %v1707_v34 = vadd.f32 %v8377_v48, %v8376_v50  ;;  %v2821_v16 = vadd.f32 %v4208_v52, %v2009_v53  ;;  %v1711_v40 = vadd.f32 %v8379_v60, %v8378_v15  ;;  %v1713_v24 = vadd.f32 %v8381_v25, %v8380_v3  ;;  %v8382_v56 = vld [vmem:[#allocation115_spill] sm:$0xff]  ;;  %v8383_v32 = vld [vmem:[#allocation190_spill] sm:$0xff]  ;;  %v8387_v50 = vld [vmem:[#allocation168_spill] sm:$0xff] }
 0x3e5   : > { %4219 = vmatprep.subr.mxu1 %v8375_v45  ;;  %v2887_v33 = vsel %vm2882_vm1, %v2876_v18, %v2877_v62  ;;  %v7259_v57 = vadd.f32 %v3033_v5, %v2973_v22  ;;  %v3023_v17 = vrot.slane %v2822_v30, 6  ;;  %v2014_v0 = vadd.f32 %v8383_v32, %v8382_v56  ;;  %v8384_v18 = vld [vmem:[#allocation31_spill] sm:$0xff]  ;;  %v8385_v5 = vld [vmem:[#allocation166_spill] sm:$0xff]  ;;  %v4214_v22 = vpop.f32.mrf.mxu1  ;;  %v3444_v60 = vld [vmem:[%s7841_s3 + $0x50] sm:$0xff] }
 0x3e6   : > { %4220 = vmatpush3.msra.mxu1 %v3447_v51  ;;  %v2974_v52 = vadd.f32 %v2887_v33, %v2821_v16  ;;  %v2823_v42 = vadd.f32 %v7174_v26, %v1707_v34  ;;  %v1717_v38 = vadd.f32 %v8385_v5, %v8384_v18  ;;  %v2825_v51 = vadd.f32 %v7196_v11, %v1711_v40  ;;  %v2380_v30 = vpop.f32.mrf.mxu0  ;;  %v8386_v26 = vld [vmem:[#allocation32_spill] sm:$0xff]  ;;  %v8388_v33 = vld [vmem:[#allocation113_spill] sm:$0xff] }
 0x3e7   : > { %4221 = vmatprep.subr.mxu1 %v8375_v45  ;;  %v3031_v53 = vsel %vm3027_vm0, %v3022_v43, %v3023_v17  ;;  %v1719_v48 = vadd.f32 %v8387_v50, %v8386_v26  ;;  %v2826_v15 = vadd.f32 %v2370_v47, %v1713_v24  ;;  %v8389_v43 = vld [vmem:[#allocation188_spill] sm:$0xff]  ;;  %v2824_v11 = vadd.f32 %v2671_v37, %v2014_v0  ;;  %v3443_v47 = vld [vmem:[%s7841_s3 + $0x48] sm:$0xff]  ;;  %v2681_v37 = vpop.f32.mrf.mxu1  ;;  %v8391_v0 = vld [vmem:[#allocation194_spill] sm:$0xff] }
 0x3e8   : > { %4222 = vmatpush3.msra.mxu1 %v3446_v8  ;;  %v7277_v34 = vadd.f32 %v3032_v12, %v2974_v52  ;;  %v2878_v16 = vrot.slane %v2823_v42, 7  ;;  %v2019_v3 = vadd.f32 %v8389_v43, %v8388_v33  ;;  %v3024_v40 = vrot.slane %v2825_v51, 6  ;;  %v8392_v18 = vld [vmem:[#allocation33_spill] sm:$0xff]  ;;  %v8395_v51 = vld [vmem:[#allocation172_spill] sm:$0xff] }
 0x3e9   : > { %4223 = vmatprep.subr.mxu1 %v8375_v45  ;;  %v2828_v25 = vadd.f32 %v2374_v27, %v1717_v38  ;;  %v2879_v12 = vrot.slane %v2826_v15, 7  ;;  %v2829_v52 = vadd.f32 %v2376_v63, %v1719_v48  ;;  %v2382_v27 = vpop.f32.mrf.mxu0  ;;  %v8393_v63 = vld [vmem:[#allocation170_spill] sm:$0xff] }
 0x3ea   : > { %4224 = vmatpush3.msra.mxu1 %v3445_v6  ;;  %v2886_v8 = vsel %vm2882_vm1, %v2877_v62, %v2878_v16  ;;  %v2827_v24 = vadd.f32 %v4211_v28, %v2019_v3  ;;  %v3030_v56 = vsel %vm3027_vm0, %v3023_v17, %v3024_v40  ;;  %v8390_v6 = vld [vmem:[#allocation119_spill] sm:$0xff]  ;;  %v1723_v5 = vadd.f32 %v8393_v63, %v8392_v18  ;;  %v8394_v38 = vld [vmem:[#allocation34_spill] sm:$0xff] }
 0x3eb   : > { %4225 = vmatprep.subr.mxu1 %v8375_v45  ;;  %v2975_v42 = vadd.f32 %v2886_v8, %v2824_v11  ;;  %v3025_v32 = vrot.slane %v2828_v25, 6  ;;  %v2024_v62 = vadd.f32 %v8391_v0, %v8390_v6  ;;  %v1725_v26 = vadd.f32 %v8395_v51, %v8394_v38  ;;  %v3442_v17 = vld [vmem:[%s7841_s3 + $0x40] sm:$0xff]  ;;  %v8396_v11 = vld [vmem:[#allocation4_spill] sm:$0xff]  ;;  %v8397_v25 = vld [vmem:[#allocation125_spill] sm:$0xff] }
 0x3ec   : > { %4226 = vmatpush3.msra.mxu1 %v3444_v60  ;;  %v2885_v28 = vsel %vm2882_vm1, %v2878_v16, %v2879_v12  ;;  %v2880_v60 = vrot.slane %v2829_v52, 7  ;;  %v2831_v43 = vadd.f32 %v2380_v30, %v1723_v5  ;;  %v3441_v16 = vld [vmem:[%s7841_s3 + $0x38] sm:$0xff]  ;;  %v1794_v8 = vadd.f32 %v8397_v25, %v8396_v11  ;;  %v3439_v5 = vld [vmem:[%s7841_s3 + $0x28] sm:$0xff]  ;;  %v3436_v25 = vld [vmem:[%s7841_s3 + $0x10] sm:$0xff] }
 0x3ed   : > { %4227 = vmatprep.subr.mxu1 %v8375_v45  ;;  %v7305_v50 = vadd.f32 %v3031_v53, %v2975_v42  ;;  %v2976_v48 = vadd.f32 %v2885_v28, %v2827_v24  ;;  %v3029_v15 = vsel %vm3027_vm0, %v3024_v40, %v3025_v32  ;;  %v2830_v33 = vadd.f32 %v2681_v37, %v2024_v62  ;;  %v8398_v30 = vld [vmem:[#allocation117_spill] sm:$0xff]  ;;  %v8399_v40 = vld [vmem:[#allocation192_spill] sm:$0xff] }
 0x3ee   : > { %4228 = vmatpush3.msra.mxu1 %v3443_v47  ;;  %v2832_v3 = vadd.f32 %v2382_v27, %v1725_v26  ;;  %v2884_v24 = vsel %vm2882_vm1, %v2879_v12, %v2880_v60  ;;  %v2029_v52 = vadd.f32 %v8399_v40, %v8398_v30  ;;  %v3026_v42 = vrot.slane %v2831_v43, 6  ;;  %v8400_v27 = vld [vmem:[#allocation64_spill] sm:$0xff]  ;;  %v7330_v12 = vld [vmem:[%s7840_s2] ss:$0 sm:$0xff]  ;;  %v8401_v38 = vld [vmem:[#allocation197_spill] sm:$0xff] }
 0x3ef   : > { %4229 = vmatprep.subr.mxu1 %v8375_v45  ;;  %v7315_v53 = vadd.f32 %v3030_v56, %v2976_v48  ;;  %v2977_v47 = vadd.f32 %v2884_v24, %v2830_v33  ;;  %v3440_v56 = vld [vmem:[%s7841_s3 + $0x30] sm:$0xff]  ;;  %v2692_v6 = vadd.f32 %v8400_v27, %v1794_v8  ;;  %v8402_v51 = vrot.slane %v8401_v38, 7  ;;  %v8405_v24 = vld [vmem:[#allocation66_spill] sm:$0xff] }
 0x3f0   : > { %4230 = vmatpush3.msra.mxu1 %v3442_v17  ;;  %v2881_v37 = vrot.slane %v2832_v3, 7  ;;  %v2833_v0 = vadd.f32 %v4214_v22, %v2029_v52  ;;  %v3028_v18 = vsel %vm3027_vm0, %v3025_v32, %v3026_v42  ;;  %v3133_v22 = vadd.f32 %v7330_v12, %v6709_v61  ;;  %v3438_v17 = vld [vmem:[%s7841_s3 + $0x20] sm:$0xff]  ;;  %v3437_v3 = vld [vmem:[%s7841_s3 + $0x18] sm:$0xff]  ;;  %v3435_v52 = vld [vmem:[%s7841_s3 + $0x8] sm:$0xff] }
 0x3f1   : > { %4231 = vmatprep.subr.mxu1 %v8375_v45  ;;  %v7332_v62 = vadd.f32 %v3029_v15, %v2977_v47  ;;  %v3132_v48 = vadd.f32 %v7330_v12, %v6667_v36  ;;  %v8403_v15 = vld [vmem:[#allocation196_spill] sm:$0xff]  ;;  %v3134_v61 = vadd.f32 %v7330_v12, %v6694_v29  ;;  %v3136_v30 = vadd.f32 %v7330_v12, %v8405_v24  ;;  %v8406_v47 = vld [vmem:[#allocation3_spill] sm:$0xff] }
 0x3f2   : > { %4232 = vmatpush3.msra.mxu1 %v3441_v16  ;;  %v2883_v63 = vsel %vm2882_vm1, %v2880_v60, %v2881_v37  ;;  %v2930_v26 = vsel %vm2882_vm1, %v2881_v37, %v8402_v51  ;;  %v8404_v60 = vrot.slane %v8403_v15, 6  ;;  %v3229_v36 = vmul.f32 0.01, %v3133_v22  ;;  %v8409_v24 = vld [vmem:[#allocation124_spill] sm:$0xff] }
 0x3f3   : > { %4233 = vmatprep.subr.mxu1 %v8375_v45  ;;  %v2931_v28 = vadd.f32 %v2930_v26, %v2692_v6  ;;  %v2978_v32 = vadd.f32 %v2883_v63, %v2833_v0  ;;  %vm3180_vm3 = vcmp.gt.f32.partialorder %v3132_v48, 0.0  ;;  %v3228_v29 = vmul.f32 0.01, %v3132_v48  ;;  %v3434_v0 = vld [vmem:[%s7841_s3] sm:$0xff] }
 0x3f4   : > { %4234 = vmatpush3.msra.mxu1 %v3440_v56  ;;  %v3075_v33 = vsel %vm3027_vm0, %v3026_v42, %v8404_v60  ;;  %vm3181_vm4 = vcmp.gt.f32.partialorder %v3133_v22, 0.0  ;;  %v3230_v8 = vmul.f32 0.01, %v3134_v61  ;;  %vm3328_vm6 = vcmp.lt.s32.totalorder %v8406_v47, 18  ;;  %v8407_v42 = vld [vmem:[#allocation178_spill] sm:$0xff] }
 0x3f5   : > { %4235 = vmatprep.subr.mxu1 %v8375_v45  ;;  %v3076_v43 = vadd.f32 %v3075_v33, %v2931_v28  ;;  %v7364_v16 = vadd.f32 %v3028_v18, %v2978_v32  ;;  %vm3182_vm7 = vcmp.gt.f32.partialorder %v3134_v61, 0.0  ;;  %v3135_v37 = vadd.f32 %v7330_v12, %v8407_v42 }
 0x3f6   : > { %4236 = vmatpush3.msra.mxu1 %v3439_v5  ;;  %v3277_v56 = vsel %vm3181_vm4, %v3133_v22, %v3229_v36  ;;  %v3137_v27 = vadd.f32 %v7330_v12, %v6755_v44  ;;  %v7388_v18 = vsel %vm3180_vm3, %v3132_v48, %v3228_v29  ;;  %v3278_v5 = vsel %vm3182_vm7, %v3134_v61, %v3230_v8  ;;  %v8408_v48 = vld [vmem:[#allocation35_spill] sm:$0xff] }
 0x3f7   : > { %4237 = vmatprep.subr.mxu1 %v8375_v45  ;;  %v3131_v11 = vadd.f32 %v7330_v12, %v3076_v43  ;;  %v3232_v38 = vmul.f32 0.01, %v3136_v30  ;;  %v7399_v51 = vsel %vm3328_vm6, %v3277_v56, 0.0  ;;  %vm3184_vm9 = vcmp.gt.f32.partialorder %v3136_v30, 0.0 }
 0x3f8   : > { %4238 = vmatpush3.msra.mxu1 %v3438_v17  ;;  %v3231_v26 = vmul.f32 0.01, %v3135_v37  ;;  %vm3183_vm10 = vcmp.gt.f32.partialorder %v3135_v37, 0.0  ;;  %v3233_v22 = vmul.f32 0.01, %v3137_v27  ;;  %v3139_v28 = vadd.f32 %v7330_v12, %v6780_v49 }
 0x3f9   : > { %4239 = vmatprep.subr.mxu1 %v8375_v45  ;;  %vm3179_vm5 = vcmp.gt.f32.partialorder %v3131_v11, 0.0  ;;  %v3227_v40 = vmul.f32 0.01, %v3131_v11  ;;  %v7406_v17 = vsel %vm3323_vm8, %v3278_v5, 0.0  ;;  %vm3185_vm11 = vcmp.gt.f32.partialorder %v3137_v27, 0.0 }
 0x3fa   : > { %4240 = vmatpush3.msra.mxu1 %v3437_v3  ;;  %v3280_v15 = vsel %vm3184_vm9, %v3136_v30, %v3232_v38  ;;  %v3140_v60 = vadd.f32 %v7330_v12, %v6769_v1  ;;  %v7413_v61 = vsel %vm3183_vm10, %v3135_v37, %v3231_v26  ;;  %v3281_v43 = vsel %vm3185_vm11, %v3137_v27, %v3233_v22 }
 0x3fb   : > { %4241 = vmatprep.subr.mxu1 %v8375_v45  ;;  %v3275_v6 = vsel %vm3179_vm5, %v3131_v11, %v3227_v40  ;;  %v3235_v49 = vmul.f32 0.01, %v3139_v28  ;;  %v7418_v36 = vsel %vm3328_vm6, %v3280_v15, 0.0  ;;  %vm3187_vm12 = vcmp.gt.f32.partialorder %v3139_v28, 0.0  ;;  %v8413_v15 = vld [vmem:[#allocation70_spill] sm:$0xff] }
 0x3fc   : > { %4242 = vmatpush3.msra.mxu1 %v3436_v25  ;;  %v7392_v63 = vsel %vm3323_vm8, %v3275_v6, 0.0  ;;  %v3236_v25 = vmul.f32 0.01, %v3140_v60  ;;  %v3142_v29 = vadd.f32 %v7330_v12, %v6789_v23  ;;  %v7425_v8 = vsel %vm3323_vm8, %v3281_v43, 0.0 }
 0x3fd   : > { %4243 = vmatprep.subr.mxu1 %v8375_v45  ;;  %v3380_v44 = vadd.f32 %v7392_v63, %v7388_v18  ;;  %vm3188_vm14 = vcmp.gt.f32.partialorder %v3140_v60, 0.0  ;;  %v3141_v30 = vadd.f32 %v7330_v12, %v8409_v24  ;;  %v3283_v40 = vsel %vm3187_vm12, %v3139_v28, %v3235_v49 }
 0x3fe   : > { %4244 = vmatpush3.msra.mxu1 %v3435_v52  ;;  %v8410_v52 = vld [vmem:[#allocation180_spill] sm:$0xff]  ;;  %v3284_v27 = vsel %vm3188_vm14, %v3140_v60, %v3236_v25  ;;  %v3238_v23 = vmul.f32 0.01, %v3142_v29  ;;  %vm3190_vm15 = vcmp.gt.f32.partialorder %v3142_v29, 0.0  ;;  %v3146_v60 = vadd.f32 %v7330_v12, %v8413_v15 }
 0x3ff   : > { %4245 = vmatprep.subr.mxu1 %v8375_v45  ;;  %v3381_v32 = vadd.f32 %v3380_v44, %v7399_v51  ;;  %v3138_v45 = vadd.f32 %v7330_v12, %v8408_v48  ;;  %v3143_v42 = vadd.f32 %v7330_v12, %v8410_v52  ;;  %v3237_v5 = vmul.f32 0.01, %v3141_v30  ;;  %v8411_v44 = vld [vmem:[#allocation182_spill] sm:$0xff] }
 0x400   : > { %4246 = vmatpush3.msra.mxu1 %v3434_v0  ;;  %v7437_v0 = vsel %vm3328_vm6, %v3283_v40, 0.0  ;;  %vm3189_vm0 = vcmp.gt.f32.partialorder %v3141_v30, 0.0  ;;  %v3145_v26 = vadd.f32 %v7330_v12, %v8411_v44  ;;  %v7444_v28 = vsel %vm3323_vm8, %v3284_v27, 0.0 }
 0x401   : > { %v3382_v33 = vadd.f32 %v3381_v32, %v7406_v17  ;;  %v3234_v11 = vmul.f32 0.01, %v3138_v45  ;;  %vm3186_vm13 = vcmp.gt.f32.partialorder %v3138_v45, 0.0  ;;  %v3239_v38 = vmul.f32 0.01, %v3143_v42  ;;  %v8412_v32 = vld [vmem:[#allocation68_spill] sm:$0xff] }
 0x402   : > { %v3144_v48 = vadd.f32 %v7330_v12, %v8412_v32  ;;  %vm3191_vm1 = vcmp.gt.f32.partialorder %v3143_v42, 0.0  ;;  %v7451_v43 = vsel %vm3189_vm0, %v3141_v30, %v3237_v5  ;;  %vm3193_vm2 = vcmp.gt.f32.partialorder %v3145_v26, 0.0 }
 0x403   : > { %v3383_v3 = vadd.f32 %v3382_v33, %v7413_v61  ;;  %v7432_v56 = vsel %vm3186_vm13, %v3138_v45, %v3234_v11  ;;  %v3286_v45 = vsel %vm3190_vm15, %v3142_v29, %v3238_v23  ;;  %v3287_v49 = vsel %vm3191_vm1, %v3143_v42, %v3239_v38  ;;  %v8414_v29 = vld [vmem:[#allocation6_spill] sm:$0xff]  ;;  %v8416_v23 = vld [vmem:[#allocation184_spill] sm:$0xff] }
 0x404   : > { %v7456_v25 = vsel %vm3328_vm6, %v3286_v45, 0.0  ;;  %vm3192_vm3 = vcmp.gt.f32.partialorder %v3144_v48, 0.0  ;;  %v3242_v24 = vmul.f32 0.01, %v3146_v60  ;;  %v3148_v40 = vadd.f32 %v7330_v12, %v8414_v29  ;;  %v8415_v42 = vld [vmem:[#allocation126_spill] sm:$0xff] }
 0x405   : > { %v3384_v1 = vadd.f32 %v3383_v3, %v7418_v36  ;;  %v3241_v3 = vmul.f32 0.01, %v3145_v26  ;;  %v7463_v30 = vsel %vm3323_vm8, %v3287_v49, 0.0  ;;  %vm3194_vm4 = vcmp.gt.f32.partialorder %v3146_v60, 0.0 }
 0x406   : > { %v3290_v44 = vsel %vm3194_vm4, %v3146_v60, %v3242_v24  ;;  %vm3196_vm5 = vcmp.gt.f32.partialorder %v3148_v40, 0.0  ;;  %v8418_v60 = vld [vmem:[#allocation72_spill] sm:$0xff] }
 0x407   : > { %v3385_v37 = vadd.f32 %v3384_v1, %v7425_v8  ;;  %v3240_v1 = vmul.f32 0.01, %v3144_v48  ;;  %v3289_v27 = vsel %vm3193_vm2, %v3145_v26, %v3241_v3  ;;  %v8417_v26 = vld [vmem:[#allocation127_spill] sm:$0xff]  ;;  %v8419_v24 = vld [vmem:[#allocation36_spill] sm:$0xff] }
 0x408   : > { %v7475_v45 = vsel %vm3328_vm6, %v3289_v27, 0.0  ;;  %v3151_v49 = vadd.f32 %v7330_v12, %v8417_v26  ;;  %v3152_v29 = vadd.f32 %v7330_v12, %v8419_v24 }
 0x409   : > { %v3386_v6 = vadd.f32 %v3385_v37, %v7432_v56  ;;  %v3147_v37 = vadd.f32 %v7330_v12, %v8415_v42  ;;  %v7470_v38 = vsel %vm3192_vm3, %v3144_v48, %v3240_v1  ;;  %v7482_v48 = vsel %vm3323_vm8, %v3290_v44, 0.0 }
 0x40a   : > { %vm3199_vm10 = vcmp.gt.f32.partialorder %v3151_v49, 0.0  ;;  %v3248_v26 = vmul.f32 0.01, %v3152_v29  ;;  %vm3200_vm12 = vcmp.gt.f32.partialorder %v3152_v29, 0.0 }
 0x40b   : > { %v3387_v22 = vadd.f32 %v3386_v6, %v7437_v0  ;;  %v3149_v6 = vadd.f32 %v7330_v12, %v8416_v23  ;;  %v3243_v15 = vmul.f32 0.01, %v3147_v37  ;;  %vm3195_vm7 = vcmp.gt.f32.partialorder %v3147_v37, 0.0 }
 0x40c   : > { %v3247_v23 = vmul.f32 0.01, %v3151_v49 }
 0x40d   : > { %v3388_v33 = vadd.f32 %v3387_v22, %v7444_v28  ;;  %v3244_v22 = vmul.f32 0.01, %v3148_v40  ;;  %vm3197_vm9 = vcmp.gt.f32.partialorder %v3149_v6, 0.0  ;;  %v7489_v42 = vsel %vm3195_vm7, %v3147_v37, %v3243_v15 }
 0x40f   : > { %v3389_v11 = vadd.f32 %v3388_v33, %v7451_v43  ;;  %v3245_v33 = vmul.f32 0.01, %v3149_v6  ;;  %v3292_v1 = vsel %vm3196_vm5, %v3148_v40, %v3244_v22  ;;  %v8421_v40 = vld [vmem:[#allocation74_spill] sm:$0xff] }
 0x410   : > { %v7494_v44 = vsel %vm3328_vm6, %v3292_v1, 0.0  ;;  %v3154_v22 = vadd.f32 %v7330_v12, %v8421_v40 }
 0x411   : > { %v3390_v52 = vadd.f32 %v3389_v11, %v7456_v25  ;;  %v3150_v11 = vadd.f32 %v7330_v12, %v8418_v60  ;;  %v3293_v27 = vsel %vm3197_vm9, %v3149_v6, %v3245_v33  ;;  %8420 = vst [vmem:[#allocation8_spill] sm:$0xff] %v7494_v44  ;;  %v8422_v6 = vld [vmem:[#allocation186_spill] sm:$0xff]  ;;  %v3295_v33 = vsel %vm3199_vm10, %v3151_v49, %v3247_v23 }
 0x412   : > { %v7501_v37 = vsel %vm3323_vm8, %v3293_v27, 0.0  ;;  %v3153_v15 = vadd.f32 %v7330_v12, %v8422_v6  ;;  %v3250_v40 = vmul.f32 0.01, %v3154_v22  ;;  %v7513_v27 = vsel %vm3328_vm6, %v3295_v33, 0.0 }
 0x413   : > { %v3391_v5 = vadd.f32 %v3390_v52, %v7463_v30  ;;  %vm3198_vm11 = vcmp.gt.f32.partialorder %v3150_v11, 0.0  ;;  %vm3202_vm13 = vcmp.gt.f32.partialorder %v3154_v22, 0.0  ;;  %v3157_v49 = vadd.f32 %v7330_v12, %v7003_v19 }
 0x414   : > { %vm3201_vm14 = vcmp.gt.f32.partialorder %v3153_v15, 0.0  ;;  %v3298_v23 = vsel %vm3202_vm13, %v3154_v22, %v3250_v40  ;;  %v3160_v22 = vadd.f32 %v7330_v12, %v7022_v20  ;;  %v3161_v40 = vadd.f32 %v7330_v12, %v7090_v55 }
 0x415   : > { %v3392_v32 = vadd.f32 %v3391_v5, %v7470_v38  ;;  %v3253_v19 = vmul.f32 0.01, %v3157_v49  ;;  %vm3205_vm0 = vcmp.gt.f32.partialorder %v3157_v49, 0.0 }
 0x416   : > { %v3256_v20 = vmul.f32 0.01, %v3160_v22  ;;  %vm3208_vm3 = vcmp.gt.f32.partialorder %v3160_v22, 0.0  ;;  %vm3209_vm5 = vcmp.gt.f32.partialorder %v3161_v40, 0.0 }
 0x417   : > { %v3393_v3 = vadd.f32 %v3392_v32, %v7475_v45  ;;  %v3246_v32 = vmul.f32 0.01, %v3150_v11 }
 0x419   : > { %v3394_v52 = vadd.f32 %v3393_v3, %v7482_v48  ;;  %v3155_v3 = vadd.f32 %v7330_v12, %v6974_v9  ;;  %v7508_v24 = vsel %vm3198_vm11, %v3150_v11, %v3246_v32  ;;  %v3158_v32 = vadd.f32 %v7330_v12, %v6993_v41 }
 0x41b   : > { %v3395_v5 = vadd.f32 %v3394_v52, %v7489_v42  ;;  %v3296_v52 = vsel %vm3200_vm12, %v3152_v29, %v3248_v26  ;;  %v3251_v6 = vmul.f32 0.01, %v3155_v3  ;;  %v3156_v29 = vadd.f32 %v7330_v12, %v6941_v54 }
 0x41c   : > { %v7520_v11 = vsel %vm3323_vm8, %v3296_v52, 0.0  ;;  %vm3203_vm15 = vcmp.gt.f32.partialorder %v3155_v3, 0.0  ;;  %v7532_v52 = vsel %vm3328_vm6, %v3298_v23, 0.0  ;;  %v3254_v54 = vmul.f32 0.01, %v3158_v32 }
 0x41d   : > { %v3396_v60 = vadd.f32 %v3395_v5, %v7494_v44  ;;  %v3249_v44 = vmul.f32 0.01, %v3153_v15  ;;  %v3299_v33 = vsel %vm3203_vm15, %v3155_v3, %v3251_v6  ;;  %vm3204_vm1 = vcmp.gt.f32.partialorder %v3156_v29, 0.0 }
 0x41e   : > { %vm3206_vm2 = vcmp.gt.f32.partialorder %v3158_v32, 0.0  ;;  %v3301_v3 = vsel %vm3205_vm0, %v3157_v49, %v3253_v19  ;;  %v3163_v49 = vadd.f32 %v7330_v12, %v7119_v13  ;;  %v3304_v19 = vsel %vm3208_vm3, %v3160_v22, %v3256_v20 }
 0x41f   : > { %v3397_v1 = vadd.f32 %v3396_v60, %v7501_v37  ;;  %v7527_v60 = vsel %vm3201_vm14, %v3153_v15, %v3249_v44  ;;  %v7539_v44 = vsel %vm3323_vm8, %v3299_v33, 0.0  ;;  %v3159_v15 = vadd.f32 %v7330_v12, %v7037_v59 }
 0x420   : > { %v3302_v23 = vsel %vm3206_vm2, %v3158_v32, %v3254_v54  ;;  %v7551_v33 = vsel %vm3328_vm6, %v3301_v3, 0.0  ;;  %v3257_v59 = vmul.f32 0.01, %v3161_v40  ;;  %v3162_v32 = vadd.f32 %v7330_v12, %v7069_v4 }
 0x421   : > { %v3398_v5 = vadd.f32 %v3397_v1, %v7508_v24  ;;  %vm3207_vm4 = vcmp.gt.f32.partialorder %v3159_v15, 0.0  ;;  %v3259_v13 = vmul.f32 0.01, %v3163_v49  ;;  %vm3211_vm7 = vcmp.gt.f32.partialorder %v3163_v49, 0.0 }
 0x422   : > { %v3305_v3 = vsel %vm3209_vm5, %v3161_v40, %v3257_v59  ;;  %vm3210_vm9 = vcmp.gt.f32.partialorder %v3162_v32, 0.0  ;;  %v3166_v22 = vadd.f32 %v7330_v12, %v7130_v2  ;;  %v3165_v40 = vadd.f32 %v7330_v12, %v7161_v58 }
 0x423   : > { %v3399_v9 = vadd.f32 %v3398_v5, %v7513_v27  ;;  %v3252_v5 = vmul.f32 0.01, %v3156_v29  ;;  %v3307_v20 = vsel %vm3211_vm7, %v3163_v49, %v3259_v13  ;;  %v3169_v49 = vadd.f32 %v7330_v12, %v7209_v39 }
 0x424   : > { %v3262_v2 = vmul.f32 0.01, %v3166_v22  ;;  %vm3214_vm11 = vcmp.gt.f32.partialorder %v3166_v22, 0.0  ;;  %vm3213_vm12 = vcmp.gt.f32.partialorder %v3165_v40, 0.0 }
 0x425   : > { %v3400_v26 = vadd.f32 %v3399_v9, %v7520_v11  ;;  %v7546_v9 = vsel %vm3204_vm1, %v3156_v29, %v3252_v5  ;;  %v7558_v29 = vsel %vm3323_vm8, %v3302_v23, 0.0  ;;  %v3164_v5 = vadd.f32 %v7330_v12, %v7102_v31 }
 0x426   : > { %v7570_v23 = vsel %vm3328_vm6, %v3304_v19, 0.0  ;;  %v3310_v13 = vsel %vm3214_vm11, %v3166_v22, %v3262_v2  ;;  %v3265_v39 = vmul.f32 0.01, %v3169_v49  ;;  %vm3217_vm14 = vcmp.gt.f32.partialorder %v3169_v49, 0.0 }
 0x427   : > { %v3401_v1 = vadd.f32 %v3400_v26, %v7527_v60  ;;  %v3260_v4 = vmul.f32 0.01, %v3164_v5  ;;  %vm3212_vm10 = vcmp.gt.f32.partialorder %v3164_v5, 0.0  ;;  %v3172_v22 = vadd.f32 %v7330_v12, %v7222_v46 }
 0x428   : > { %v3313_v2 = vsel %vm3217_vm14, %v3169_v49, %v3265_v39  ;;  %v3175_v49 = vadd.f32 %v7330_v12, %v7305_v50 }
 0x429   : > { %v3402_v41 = vadd.f32 %v3401_v1, %v7532_v52  ;;  %v3255_v1 = vmul.f32 0.01, %v3159_v15  ;;  %v3308_v19 = vsel %vm3212_vm10, %v3164_v5, %v3260_v4  ;;  %v3168_v5 = vadd.f32 %v7330_v12, %v7168_v35 }
 0x42a   : > { %v3268_v46 = vmul.f32 0.01, %v3172_v22  ;;  %vm3220_vm1 = vcmp.gt.f32.partialorder %v3172_v22, 0.0  ;;  %v3271_v50 = vmul.f32 0.01, %v3175_v49 }
 0x42b   : > { %v3403_v6 = vadd.f32 %v3402_v41, %v7539_v44  ;;  %v7565_v41 = vsel %vm3207_vm4, %v3159_v15, %v3255_v1  ;;  %v7577_v15 = vsel %vm3323_vm8, %v3305_v3, 0.0  ;;  %v3167_v1 = vadd.f32 %v7330_v12, %v7182_v10 }
 0x42c   : > { %v7589_v3 = vsel %vm3328_vm6, %v3307_v20, 0.0  ;;  %vm3216_vm15 = vcmp.gt.f32.partialorder %v3168_v5, 0.0  ;;  %v3316_v39 = vsel %vm3220_vm1, %v3172_v22, %v3268_v46  ;;  %vm3223_vm4 = vcmp.gt.f32.partialorder %v3175_v49, 0.0 }
 0x42d   : > { %v3404_v26 = vadd.f32 %v3403_v6, %v7546_v9  ;;  %v3263_v58 = vmul.f32 0.01, %v3167_v1  ;;  %vm3215_vm13 = vcmp.gt.f32.partialorder %v3167_v1, 0.0  ;;  %v3178_v22 = vadd.f32 %v7330_v12, %v7364_v16 }
 0x42e   : > { %v3319_v46 = vsel %vm3223_vm4, %v3175_v49, %v3271_v50 }
 0x42f   : > { %v3405_v55 = vadd.f32 %v3404_v26, %v7551_v33  ;;  %v3258_v26 = vmul.f32 0.01, %v3162_v32  ;;  %v3311_v20 = vsel %vm3215_vm13, %v3167_v1, %v3263_v58  ;;  %v3171_v1 = vadd.f32 %v7330_v12, %v7225_v14 }
 0x430   : > { %v7663_v16 = vsel %vm3328_vm6, %v3319_v46, 0.0 }
 0x431   : > { %v3406_v54 = vadd.f32 %v3405_v55, %v7558_v29  ;;  %v7584_v55 = vsel %vm3210_vm9, %v3162_v32, %v3258_v26  ;;  %v7596_v32 = vsel %vm3323_vm8, %v3308_v19, 0.0  ;;  %v3170_v26 = vadd.f32 %v7330_v12, %v7192_v21 }
 0x432   : > { %v7608_v19 = vsel %vm3328_vm6, %v3310_v13, 0.0  ;;  %vm3219_vm2 = vcmp.gt.f32.partialorder %v3171_v1, 0.0  ;;  %vm3226_vm9 = vcmp.gt.f32.partialorder %v3178_v22, 0.0 }
 0x433   : > { %v3407_v6 = vadd.f32 %v3406_v54, %v7565_v41  ;;  %v3266_v35 = vmul.f32 0.01, %v3170_v26  ;;  %vm3218_vm0 = vcmp.gt.f32.partialorder %v3170_v26, 0.0 }
 0x435   : > { %v3408_v31 = vadd.f32 %v3407_v6, %v7570_v23  ;;  %v3261_v6 = vmul.f32 0.01, %v3165_v40  ;;  %v3314_v13 = vsel %vm3218_vm0, %v3170_v26, %v3266_v35  ;;  %v3174_v26 = vadd.f32 %v7330_v12, %v7277_v34 }
 0x437   : > { %v3409_v59 = vadd.f32 %v3408_v31, %v7577_v15  ;;  %v7603_v31 = vsel %vm3213_vm12, %v3165_v40, %v3261_v6  ;;  %v7615_v40 = vsel %vm3323_vm8, %v3311_v20, 0.0  ;;  %v3173_v6 = vadd.f32 %v7330_v12, %v7259_v57 }
 0x438   : > { %v7627_v20 = vsel %vm3328_vm6, %v3313_v2, 0.0  ;;  %vm3222_vm5 = vcmp.gt.f32.partialorder %v3174_v26, 0.0 }
 0x439   : > { %v3410_v54 = vadd.f32 %v3409_v59, %v7584_v55  ;;  %v3269_v14 = vmul.f32 0.01, %v3173_v6  ;;  %vm3221_vm3 = vcmp.gt.f32.partialorder %v3173_v6, 0.0 }
 0x43b   : > { %v3411_v10 = vadd.f32 %v3410_v54, %v7589_v3  ;;  %v3264_v54 = vmul.f32 0.01, %v3168_v5  ;;  %v3317_v2 = vsel %vm3221_vm3, %v3173_v6, %v3269_v14  ;;  %v3177_v6 = vadd.f32 %v7330_v12, %v7332_v62 }
 0x43d   : > { %v3412_v4 = vadd.f32 %v3411_v10, %v7596_v32  ;;  %v7622_v10 = vsel %vm3216_vm15, %v3168_v5, %v3264_v54  ;;  %v7634_v5 = vsel %vm3323_vm8, %v3314_v13, 0.0  ;;  %v3176_v54 = vadd.f32 %v7330_v12, %v7315_v53 }
 0x43e   : > { %v7646_v13 = vsel %vm3328_vm6, %v3316_v39, 0.0  ;;  %v3274_v39 = vmul.f32 0.01, %v3178_v22  ;;  %vm3225_vm10 = vcmp.gt.f32.partialorder %v3177_v6, 0.0 }
 0x43f   : > { %v3413_v59 = vadd.f32 %v3412_v4, %v7603_v31  ;;  %v3272_v34 = vmul.f32 0.01, %v3176_v54  ;;  %vm3224_vm7 = vcmp.gt.f32.partialorder %v3176_v54, 0.0 }
 0x440   : > { %v3322_v62 = vsel %vm3226_vm9, %v3178_v22, %v3274_v39 }
 0x441   : > { %v3414_v21 = vadd.f32 %v3413_v59, %v7608_v19  ;;  %v3267_v59 = vmul.f32 0.01, %v3171_v1  ;;  %v7676_v50 = vsel %vm3328_vm6, %v3322_v62, 0.0 }
 0x443   : > { %v3415_v58 = vadd.f32 %v3414_v21, %v7615_v40  ;;  %v7641_v21 = vsel %vm3219_vm2, %v3171_v1, %v3267_v59  ;;  %v7653_v1 = vsel %vm3323_vm8, %v3317_v2, 0.0 }
 0x445   : > { %v3416_v4 = vadd.f32 %v3415_v58, %v7622_v10 }
 0x447   : > { %v3417_v57 = vadd.f32 %v3416_v4, %v7627_v20  ;;  %v3270_v4 = vmul.f32 0.01, %v3174_v26 }
 0x449   : > { %v3418_v35 = vadd.f32 %v3417_v57, %v7634_v5  ;;  %v7658_v14 = vsel %vm3222_vm5, %v3174_v26, %v3270_v4  ;;  %v3320_v57 = vsel %vm3224_vm7, %v3176_v54, %v3272_v34 }
 0x44a   : > { %v7668_v12 = vsel %vm3323_vm8, %v3320_v57, 0.0 }
 0x44b   : > { %v3419_v58 = vadd.f32 %v3418_v35, %v7641_v21 }
 0x44d   : > { %v3420_v53 = vadd.f32 %v3419_v58, %v7646_v13  ;;  %v3273_v58 = vmul.f32 0.01, %v3177_v6 }
 0x44f   : > { %v3421_v59 = vadd.f32 %v3420_v53, %v7653_v1  ;;  %v7671_v26 = vsel %vm3225_vm10, %v3177_v6, %v3273_v58  ;;  %v3450_v6 = vld [vmem:[%s7842_s4] sm:$0x1] }
 0x451   : > { %v3422_v35 = vadd.f32 %v3421_v59, %v7658_v14 }
 0x453   : > { %v3423_v2 = vadd.f32 %v3422_v35, %v7663_v16 }
 0x455   : > { %v3424_v49 = vadd.f32 %v3423_v2, %v7668_v12 }
 0x457   : > { %v3425_v54 = vadd.f32 %v3424_v49, %v7671_v26 }
 0x459   : > { %v3426_v4 = vadd.f32 %v3425_v54, %v7676_v50  ;;  %v3529_v54 = vsub.s32 0, %v8092_v7 }
 0x45b   : > { %v3427_v34 = vrot.slane %v3426_v4, 4 }
 0x45d   : > { %v3428_v53 = vadd.f32 %v3427_v34, %v3426_v4 }
 0x45f   : > { %v3429_v46 = vrot.slane %v3428_v53, 2 }
 0x461   : > { %v3430_v59 = vadd.f32 %v3429_v46, %v3428_v53 }
 0x463   : > { %v3431_v57 = vrot.slane %v3430_v59, 1 }
 0x465   : > { %v3432_v35 = vadd.f32 %v3431_v57, %v3430_v59 }
 0x467   : > { %v3433_v22 = vmul.f32 0.00390625, %v3432_v35 }
 0x469   : > { %4248 = vmatmul.mubr.f32.vlgmr.msra.gmra.mxu1 %v3433_v22 }
 0x529   : > { %v3517_v39 = vpop.f32.mrf.mxu1 }
 0x52a   : > { %v3518_v58 = vadd.f32 %v3517_v39, %v3450_v6 }
 0x52b   : > { %v4249_v47 = vpop.f32.mrf.mxu1 }
 0x52c   : > { %v3691_v2 = vmul.f32 -1.442695, %v3518_v58 }
 0x52e   : > { %4298 = vpow2.f32 %v3691_v2 }
 0x53b   : > { %v4299_v62 = vpop.eup %4298 }
 0x53c   : > { %v3524_v49 = vadd.f32 1.0, %v4299_v62 }
 0x53e   : > { %4300 = vrcp.f32 %v3524_v49 }
 0x54b   : > { %v4301_v4 = vpop.eup %4300 }
 0x54c   : > { %v7684_v34 = vrot.slane %v4301_v4, %v3529_v54 }
 0x54e   : > { %v3531_v53 = vmul.f32 %v7684_v34, %v7392_v63  ;;  %v3532_v46 = vmul.f32 %v7684_v34, %v7388_v18  ;;  %v3533_v7 = vmul.f32 %v7684_v34, %v7399_v51  ;;  %v3534_v59 = vmul.f32 %v7684_v34, %v7406_v17 }
 0x54f   : > { %v3535_v57 = vmul.f32 %v7684_v34, %v7413_v61  ;;  %v3536_v35 = vmul.f32 %v7684_v34, %v7418_v36  ;;  %v3537_v63 = vmul.f32 %v7684_v34, %v7425_v8  ;;  %v3538_v18 = vmul.f32 %v7684_v34, %v7432_v56 }
 0x550   : > { %v3539_v51 = vmul.f32 %v7684_v34, %v7437_v0  ;;  %v3540_v17 = vmul.f32 %v7684_v34, %v7444_v28  ;;  %v3541_v61 = vmul.f32 %v7684_v34, %v7451_v43  ;;  %v3542_v36 = vmul.f32 %v7684_v34, %v7456_v25  ;;  %3579 = vst [vmem:[%s7689_s16] sm:$0xff] %v3531_v53  ;;  %v8423_v25 = vld [vmem:[#allocation8_spill] sm:$0xff] }
 0x551   : > { %3580 = vst [vmem:[%s7689_s16 + $0x8] sm:$0xff] %v3532_v46  ;;  %3581 = vst [vmem:[%s7689_s16 + $0x10] sm:$0xff] %v3533_v7  ;;  %v3543_v8 = vmul.f32 %v7684_v34, %v7463_v30  ;;  %v3544_v56 = vmul.f32 %v7684_v34, %v7470_v38  ;;  %v3545_v0 = vmul.f32 %v7684_v34, %v7475_v45 }
 0x552   : > { %3582 = vst [vmem:[%s7689_s16 + $0x18] sm:$0xff] %v3534_v59  ;;  %v3546_v28 = vmul.f32 %v7684_v34, %v7482_v48  ;;  %3583 = vst [vmem:[%s7689_s16 + $0x20] sm:$0xff] %v3535_v57  ;;  %v3547_v43 = vmul.f32 %v7684_v34, %v7489_v42  ;;  %v3548_v30 = vmul.f32 %v7684_v34, %v8423_v25 }
 0x553   : > { %3584 = vst [vmem:[%s7689_s16 + $0x28] sm:$0xff] %v3536_v35  ;;  %3585 = vst [vmem:[%s7689_s16 + $0x30] sm:$0xff] %v3537_v63  ;;  %v3549_v38 = vmul.f32 %v7684_v34, %v7501_v37  ;;  %v3550_v45 = vmul.f32 %v7684_v34, %v7508_v24  ;;  %v3551_v48 = vmul.f32 %v7684_v34, %v7513_v27 }
 0x554   : > { %3586 = vst [vmem:[%s7689_s16 + $0x38] sm:$0xff] %v3538_v18  ;;  %3587 = vst [vmem:[%s7689_s16 + $0x40] sm:$0xff] %v3539_v51  ;;  %v3552_v42 = vmul.f32 %v7684_v34, %v7520_v11  ;;  %v3553_v37 = vmul.f32 %v7684_v34, %v7527_v60  ;;  %v3554_v24 = vmul.f32 %v7684_v34, %v7532_v52 }
 0x555   : > { %3588 = vst [vmem:[%s7689_s16 + $0x48] sm:$0xff] %v3540_v17  ;;  %3589 = vst [vmem:[%s7689_s16 + $0x50] sm:$0xff] %v3541_v61  ;;  %v3555_v27 = vmul.f32 %v7684_v34, %v7539_v44  ;;  %v3556_v11 = vmul.f32 %v7684_v34, %v7546_v9  ;;  %v3557_v60 = vmul.f32 %v7684_v34, %v7551_v33 }
 0x556   : > { %3590 = vst [vmem:[%s7689_s16 + $0x58] sm:$0xff] %v3542_v36  ;;  %3591 = vst [vmem:[%s7689_s16 + $0x60] sm:$0xff] %v3543_v8  ;;  %v3558_v52 = vmul.f32 %v7684_v34, %v7558_v29  ;;  %v3559_v44 = vmul.f32 %v7684_v34, %v7565_v41  ;;  %v3560_v9 = vmul.f32 %v7684_v34, %v7570_v23 }
 0x557   : > { %3592 = vst [vmem:[%s7689_s16 + $0x68] sm:$0xff] %v3544_v56  ;;  %3593 = vst [vmem:[%s7689_s16 + $0x70] sm:$0xff] %v3545_v0  ;;  %v3561_v33 = vmul.f32 %v7684_v34, %v7577_v15  ;;  %v3562_v29 = vmul.f32 %v7684_v34, %v7584_v55  ;;  %v3563_v41 = vmul.f32 %v7684_v34, %v7589_v3 }
 0x558   : > { %3594 = vst [vmem:[%s7689_s16 + $0x78] sm:$0xff] %v3546_v28  ;;  %3595 = vst [vmem:[%s7689_s16 + $0x80] sm:$0xff] %v3547_v43  ;;  %v3564_v23 = vmul.f32 %v7684_v34, %v7596_v32  ;;  %v3565_v15 = vmul.f32 %v7684_v34, %v7603_v31  ;;  %v3566_v55 = vmul.f32 %v7684_v34, %v7608_v19 }
 0x559   : > { %3596 = vst [vmem:[%s7689_s16 + $0x88] sm:$0xff] %v3548_v30  ;;  %3597 = vst [vmem:[%s7689_s16 + $0x90] sm:$0xff] %v3549_v38  ;;  %v3567_v3 = vmul.f32 %v7684_v34, %v7615_v40  ;;  %v3568_v32 = vmul.f32 %v7684_v34, %v7622_v10  ;;  %v3569_v31 = vmul.f32 %v7684_v34, %v7627_v20 }
 0x55a   : > { %3598 = vst [vmem:[%s7689_s16 + $0x98] sm:$0xff] %v3550_v45  ;;  %3599 = vst [vmem:[%s7689_s16 + $0xa0] sm:$0xff] %v3551_v48  ;;  %v3570_v19 = vmul.f32 %v7684_v34, %v7634_v5  ;;  %v3571_v40 = vmul.f32 %v7684_v34, %v7641_v21  ;;  %v3572_v10 = vmul.f32 %v7684_v34, %v7646_v13 }
 0x55b   : > { %3600 = vst [vmem:[%s7689_s16 + $0xa8] sm:$0xff] %v3552_v42  ;;  %3601 = vst [vmem:[%s7689_s16 + $0xb0] sm:$0xff] %v3553_v37  ;;  %v3573_v20 = vmul.f32 %v7684_v34, %v7653_v1  ;;  %v3574_v5 = vmul.f32 %v7684_v34, %v7658_v14  ;;  %v3575_v21 = vmul.f32 %v7684_v34, %v7663_v16 }
 0x55c   : > { %3602 = vst [vmem:[%s7689_s16 + $0xb8] sm:$0xff] %v3554_v24  ;;  %3603 = vst [vmem:[%s7689_s16 + $0xc0] sm:$0xff] %v3555_v27  ;;  %v3576_v13 = vmul.f32 %v7684_v34, %v7668_v12  ;;  %v3577_v1 = vmul.f32 %v7684_v34, %v7671_v26  ;;  %v3578_v14 = vmul.f32 %v7684_v34, %v7676_v50 }
 0x55d   : > { %3604 = vst [vmem:[%s7689_s16 + $0xc8] sm:$0xff] %v3556_v11  ;;  %3605 = vst [vmem:[%s7689_s16 + $0xd0] sm:$0xff] %v3557_v60 }
 0x55e   : > { %3606 = vst [vmem:[%s7689_s16 + $0xd8] sm:$0xff] %v3558_v52  ;;  %3607 = vst [vmem:[%s7689_s16 + $0xe0] sm:$0xff] %v3559_v44 }
 0x55f   : > { %3608 = vst [vmem:[%s7689_s16 + $0xe8] sm:$0xff] %v3560_v9  ;;  %3609 = vst [vmem:[%s7689_s16 + $0xf0] sm:$0xff] %v3561_v33 }
 0x560   : > { %3610 = vst [vmem:[%s7689_s16 + $0xf8] sm:$0xff] %v3562_v29  ;;  %3611 = vst [vmem:[%s7689_s16 + $0x100] sm:$0xff] %v3563_v41 }
 0x561   : > { %3612 = vst [vmem:[%s7689_s16 + $0x108] sm:$0xff] %v3564_v23  ;;  %3613 = vst [vmem:[%s7689_s16 + $0x110] sm:$0xff] %v3565_v15 }
 0x562   : > { %3614 = vst [vmem:[%s7689_s16 + $0x118] sm:$0xff] %v3566_v55  ;;  %3615 = vst [vmem:[%s7689_s16 + $0x120] sm:$0xff] %v3567_v3 }
 0x563   : > { %3616 = vst [vmem:[%s7689_s16 + $0x128] sm:$0xff] %v3568_v32  ;;  %3617 = vst [vmem:[%s7689_s16 + $0x130] sm:$0xff] %v3569_v31 }
 0x564   : > { %3618 = vst [vmem:[%s7689_s16 + $0x138] sm:$0xff] %v3570_v19  ;;  %3619 = vst [vmem:[%s7689_s16 + $0x140] sm:$0xff] %v3571_v40 }
 0x565   : > { %3620 = vst [vmem:[%s7689_s16 + $0x148] sm:$0xff] %v3572_v10  ;;  %3621 = vst [vmem:[%s7689_s16 + $0x150] sm:$0xff] %v3573_v20 }
 0x566   : > { %3622 = vst [vmem:[%s7689_s16 + $0x158] sm:$0xff] %v3574_v5  ;;  %3623 = vst [vmem:[%s7689_s16 + $0x160] sm:$0xff] %v3575_v21 }
 0x567   : > { %3624 = vst [vmem:[%s7689_s16 + $0x168] sm:$0xff] %v3576_v13  ;;  %3625 = vst [vmem:[%s7689_s16 + $0x170] sm:$0xff] %v3577_v1 }
 0x568   : > { %3626 = vst [vmem:[%s7689_s16 + $0x178] sm:$0xff] %v3578_v14 }
 0x569 PF: > { %s15_s18 = sadd.s32 1, %s4407_s18  }
 0x56a   : > { %p12_p4 = scmp.ge.s32.totalorder %s15_s18, 4  }
 0x56c   :  { %14 = sbr.rel (!%p12_p4) target bundleno = 1 (0x1), region = 70 }

</bundles_post_ra>
